<compile_context>
chip_gen: v7x
topology: tpu7x:2x2x1
jax: 0.10.0
libtpu: 0.0.40
codegen_flags: <defaults>
</compile_context>

<pallas_src>
import functools

import jax
import jax.numpy as jnp
from jax import lax
from jax.experimental import pallas as pl
from jax.experimental.pallas import tpu as pltpu

EPS = 1e-5
SLOPE = 0.1  # LeakyReLU negative slope


# --------------------------------------------------------------------------
# The fused CSPStage kernel (one grid step == one image)
# --------------------------------------------------------------------------
def _csp_stage_kernel(x_ref, w12_ref, ss12_ref, wr1_ref, ssr1_ref, w9_ref, ssr2_ref,
                      w3a_ref, w3b_ref, ss3_ref, mask_ref,
                      o_ref,
                      r1buf, y1buf, tbuf,
                      *, width, pad_rows):
    hw, cp = x_ref.shape

    def bn(acc, ss_ref, lo, hi):          # folded conv-bias + BatchNorm (f32)
        return acc * ss_ref[0:1, lo:hi] + ss_ref[1:2, lo:hi]

    def leaky(y):                          # LeakyReLU(0.1): max(y, 0.1*y), f32 epilogue
        return jnp.maximum(y, SLOPE * y)

    x = x_ref[...]                                                    # (HW, CP) bf16

    # --- conv1 / conv2 (1x1): fused weight operand, x read from HBM once --------
    y1 = leaky(bn(jnp.dot(x, w12_ref[:, :cp], preferred_element_type=jnp.float32),
                  ss12_ref, 0, cp))
    y1buf[...] = y1.astype(jnp.bfloat16)                              # kept for conv3

    t = leaky(bn(jnp.dot(x, w12_ref[:, cp:], preferred_element_type=jnp.float32),
                 ss12_ref, cp, 2 * cp))
    t_bf = t.astype(jnp.bfloat16)
    tbuf[...] = t_bf                                                  # kept for residual

    # --- CSPResBlock.conv1 (1x1) ------------------------------------------------
    r = leaky(bn(jnp.dot(t_bf, wr1_ref[...], preferred_element_type=jnp.float32),
                 ssr1_ref, 0, cp))

    # H-halo-padded flat copy of r1 (zero halo rows handle the top/bottom border).
    # Only the halo regions are zero-filled; the interior is written directly.
    r1buf[pl.ds(0, pad_rows), :] = jnp.zeros((pad_rows, cp), jnp.bfloat16)
    r1buf[pl.ds(pad_rows + hw, pad_rows), :] = jnp.zeros((pad_rows, cp), jnp.bfloat16)
    r1buf[pl.ds(pad_rows, hw), :] = r.astype(jnp.bfloat16)

    # --- CSPResBlock.conv2 (3x3, BN only): 9 shifted-window matmuls, K=CP each ---
    # Local f32 accumulator (no VMEM scratch round-trips per tap).
    acc = jnp.zeros((hw, cp), jnp.float32)
    k = 0
    for dh in (-1, 0, 1):
        for dw in (-1, 0, 1):
            tap = r1buf[pl.ds(pad_rows + dh * width + dw, hw), :]     # (HW, CP) bf16
            if dw != 0:
                tap = tap * mask_ref[dw + 1]      # zero rows that wrapped across W
            acc = acc + jnp.dot(tap, w9_ref[k], preferred_element_type=jnp.float32)
            k += 1

    h3 = bn(acc, ssr2_ref, 0, cp)                                     # act=False
    y2 = leaky(tbuf[...].astype(jnp.float32) + h3)                    # residual + act

    # --- conv3 with the channel concat folded in: [y1|y2]@W3 = y1@W3a + y2@W3b ---
    o = jnp.dot(y1buf[...], w3a_ref[...], preferred_element_type=jnp.float32)
    o = o + jnp.dot(y2.astype(jnp.bfloat16), w3b_ref[...],
                    preferred_element_type=jnp.float32)
    o_ref[...] = leaky(bn(o, ss3_ref, 0, cp)).astype(o_ref.dtype)


# --------------------------------------------------------------------------
# Host-side parameter prep (BN folding, channel padding to 128 lanes)
# --------------------------------------------------------------------------
def _round_up(v, m):
    return ((v + m - 1) // m) * m


def _pad2(a, rows, cols):
    return jnp.pad(a, ((0, rows - a.shape[0]), (0, cols - a.shape[1])))


def _pw_weight_padded(p, cp):
    cout, cin = p["w"].shape[:2]
    w2d = p["w"].reshape(cout, cin).T                 # (Cin, Cout)
    return _pad2(w2d, cp, cp).astype(jnp.bfloat16)


def _fold_bn_padded(p, cp):
    cout = p["gamma"].shape[0]
    scale = p["gamma"] / jnp.sqrt(p["var"] + EPS)
    shift = p["beta"] + (p["b"] - p["mean"]) * scale
    scale = jnp.pad(scale, (0, cp - cout), constant_values=1.0)
    shift = jnp.pad(shift, (0, cp - cout))
    return jnp.stack([scale, shift], axis=0).astype(jnp.float32)      # (2, cp)


# --------------------------------------------------------------------------
# CSPStage forward (Pallas path)
# --------------------------------------------------------------------------
def csp_stage_forward(x_nchw, params):
    N, C, H, W = x_nchw.shape
    h_dim = C // 2
    HW = H * W
    CP = _round_up(max(C, h_dim), 128)     # lane-dense padded channel width
    PAD = _round_up(W + 1, 8)              # halo rows above/below the flat image

    # activations: NCHW -> (N, H*W, C) rows, channel-padded, bf16 matmul operands
    x_rows = jnp.transpose(x_nchw, (0, 2, 3, 1)).reshape(N, HW, C)
    x_pad = jnp.pad(x_rows, ((0, 0), (0, 0), (0, CP - C))).astype(jnp.bfloat16)

    # conv1 & conv2 fused into one weight operand
    w12 = jnp.concatenate([_pw_weight_padded(params["conv1"], CP),
                           _pw_weight_padded(params["conv2"], CP)], axis=1)
    ss12 = jnp.concatenate([_fold_bn_padded(params["conv1"], CP),
                            _fold_bn_padded(params["conv2"], CP)], axis=1)

    wr1 = _pw_weight_padded(params["res_conv1"], CP)
    ssr1 = _fold_bn_padded(params["res_conv1"], CP)

    # 3x3 weights: one (CP, CP) matrix per tap, tap order (dh, dw) row-major
    w3x3 = params["res_conv2"]["w"]                                   # (h, h, 3, 3) OIHW
    w9 = jnp.stack([_pad2(w3x3[:, :, kh, kw].T, CP, CP)
                    for kh in range(3) for kw in range(3)], axis=0).astype(jnp.bfloat16)
    ssr2 = _fold_bn_padded(params["res_conv2"], CP)

    # conv3 with the concat folded in: split its weight into y1 / y2 halves
    w3 = params["conv3"]["w"].reshape(C, 2 * h_dim).T                 # (2h, C)
    w3a = _pad2(w3[:h_dim, :], CP, CP).astype(jnp.bfloat16)
    w3b = _pad2(w3[h_dim:, :], CP, CP).astype(jnp.bfloat16)
    ss3 = _fold_bn_padded(params["conv3"], CP)

    # column-boundary masks for the dw = -1 / 0 / +1 taps
    col = jnp.arange(HW, dtype=jnp.int32) % W
    masks = jnp.stack([(col != 0), jnp.ones((HW,), bool), (col != W - 1)],
                      axis=0).astype(jnp.bfloat16).reshape(3, HW, 1)

    flops = int(2 * N * HW * CP * CP * (2 + 1 + 9 + 2))
    bytes_accessed = int(
        x_pad.size * 2 + N * HW * CP * 4
        + (w12.size + wr1.size + w9.size + w3a.size + w3b.size) * 2
        + (ss12.size + ssr1.size + ssr2.size + ss3.size) * 4 + masks.size * 2)

    out_pad = pl.pallas_call(
        functools.partial(_csp_stage_kernel, width=W, pad_rows=PAD),
        out_shape=jax.ShapeDtypeStruct((N, HW, CP), jnp.float32),
        grid=(N,),
        in_specs=[
            pl.BlockSpec((None, HW, CP), lambda n: (n, 0, 0)),        # x rows
            pl.BlockSpec((CP, 2 * CP), lambda n: (0, 0)),             # w12
            pl.BlockSpec((2, 2 * CP), lambda n: (0, 0)),              # scale/shift 1&2
            pl.BlockSpec((CP, CP), lambda n: (0, 0)),                 # wr1
            pl.BlockSpec((2, CP), lambda n: (0, 0)),                  # scale/shift r1
            pl.BlockSpec((9, CP, CP), lambda n: (0, 0, 0)),           # 3x3 tap weights
            pl.BlockSpec((2, CP), lambda n: (0, 0)),                  # scale/shift r2
            pl.BlockSpec((CP, CP), lambda n: (0, 0)),                 # w3a (y1 half)
            pl.BlockSpec((CP, CP), lambda n: (0, 0)),                 # w3b (y2 half)
            pl.BlockSpec((2, CP), lambda n: (0, 0)),                  # scale/shift 3
            pl.BlockSpec((3, HW, 1), lambda n: (0, 0, 0)),            # W-boundary masks
        ],
        out_specs=pl.BlockSpec((None, HW, CP), lambda n: (n, 0, 0)),
        scratch_shapes=[
            pltpu.VMEM((HW + 2 * PAD, CP), jnp.bfloat16),             # halo-padded r1
            pltpu.VMEM((HW, CP), jnp.bfloat16),                       # y1
            pltpu.VMEM((HW, CP), jnp.bfloat16),                       # t
        ],
        compiler_params=pltpu.CompilerParams(
            dimension_semantics=("parallel",),
            vmem_limit_bytes=32 * 1024 * 1024,
            internal_scratch_in_bytes=4 * 1024 * 1024,
        ),
        cost_estimate=pl.CostEstimate(flops=flops, transcendentals=0,
                                      bytes_accessed=bytes_accessed),
    )(x_pad, w12, ss12, wr1, ssr1, w9, ssr2, w3a, w3b, ss3, masks)

    out = out_pad[:, :, :C].reshape(N, H, W, C)
    return jnp.transpose(out, (0, 3, 1, 2))


# --------------------------------------------------------------------------
# Parameter setup (deterministic, synthetic)
# --------------------------------------------------------------------------
def make_conv_params(key, cin, cout, k):
    kw_, kb, kg, kbe, km, kv = jax.random.split(key, 6)
    return dict(
        w=jax.random.normal(kw_, (cout, cin, k, k), jnp.float32) * 0.2,  # OIHW
        b=jax.random.normal(kb, (cout,), jnp.float32) * 0.1,
        gamma=1.0 + 0.1 * jax.random.normal(kg, (cout,), jnp.float32),
        beta=0.1 * jax.random.normal(kbe, (cout,), jnp.float32),
        mean=0.1 * jax.random.normal(km, (cout,), jnp.float32),
        var=jax.random.uniform(kv, (cout,), jnp.float32, minval=0.5, maxval=1.5),
    )


# --------------------------------------------------------------------------
# Pure-JAX f32 reference (mirrors the PyTorch module, NCHW) for verification
# --------------------------------------------------------------------------
def _conv_bn_ref(x, p, pad, act):
    y = lax.conv_general_dilated(
        x, p["w"], (1, 1), [(pad, pad), (pad, pad)],
        dimension_numbers=("NCHW", "OIHW", "NCHW"))
    y = y + p["b"][None, :, None, None]
    y = (p["gamma"][None, :, None, None] * (y - p["mean"][None, :, None, None])
         / jnp.sqrt(p["var"][None, :, None, None] + EPS)
         + p["beta"][None, :, None, None])
    if act:
        y = jnp.where(y > 0.0, y, SLOPE * y)
    return y


def csp_stage_ref(x, params):
    y1 = _conv_bn_ref(x, params["conv1"], 0, True)
    t = _conv_bn_ref(x, params["conv2"], 0, True)
    h = _conv_bn_ref(_conv_bn_ref(t, params["res_conv1"], 0, True),
                     params["res_conv2"], 1, False)
    s = t + h
    y2 = jnp.where(s > 0.0, s, SLOPE * s)
    return _conv_bn_ref(jnp.concatenate([y1, y2], axis=1), params["conv3"], 0, True)


if __name__ == "__main__":
    key = jax.random.PRNGKey(0)
    kx, k1, k2, k3, k4, k5 = jax.random.split(key, 6)

    N, C, H, W = 2, 4, 16, 16   # small shapes consistent with CSPStage(c=4, n=1)
    h_dim = C // 2
    x = jax.random.normal(kx, (N, C, H, W), jnp.float32)

    params = dict(
        conv1=make_conv_params(k1, C, h_dim, 1),
        conv2=make_conv_params(k2, C, h_dim, 1),
        res_conv1=make_conv_params(k3, h_dim, h_dim, 1),
        res_conv2=make_conv_params(k4, h_dim, h_dim, 3),
        conv3=make_conv_params(k5, 2 * h_dim, C, 1),
    )

    out = jax.block_until_ready(csp_stage_forward(x, params))
    ref = csp_stage_ref(x, params)

    assert out.shape == (N, C, H, W)
    err_max = float(jnp.max(jnp.abs(out - ref)))
    rel = float(jnp.linalg.norm(out - ref) / (jnp.linalg.norm(ref) + 1e-12))
    # bf16 matmul operands -> loose-but-meaningful tolerance vs the f32 reference
    assert err_max < 2e-1 and rel < 3e-2, f"max abs err={err_max}, rel fro err={rel}"

    print("KERNEL_OK")
</pallas_src>

<mosaic_0001>
module attributes {stable_mosaic.version = 11 : i64} {
  func.func @_csp_stage_kernel(%arg0: i32, %arg1: memref<1x256x128xbf16, #tpu.memory_space<vmem>>, %arg2: memref<128x256xbf16, #tpu.memory_space<vmem>>, %arg3: memref<2x256xf32, #tpu.memory_space<vmem>>, %arg4: memref<128x128xbf16, #tpu.memory_space<vmem>>, %arg5: memref<2x128xf32, #tpu.memory_space<vmem>>, %arg6: memref<9x128x128xbf16, #tpu.memory_space<vmem>>, %arg7: memref<2x128xf32, #tpu.memory_space<vmem>>, %arg8: memref<128x128xbf16, #tpu.memory_space<vmem>>, %arg9: memref<128x128xbf16, #tpu.memory_space<vmem>>, %arg10: memref<2x128xf32, #tpu.memory_space<vmem>>, %arg11: memref<3x256x1xbf16, #tpu.memory_space<vmem>>, %arg12: memref<1x256x128xf32, #tpu.memory_space<vmem>>, %arg13: memref<304x128xbf16, #tpu.memory_space<vmem>>, %arg14: memref<256x128xbf16, #tpu.memory_space<vmem>>, %arg15: memref<256x128xbf16, #tpu.memory_space<vmem>>) attributes {dimension_semantics = [#tpu.dimension_semantics<parallel>], iteration_bounds = array<i64: 2>, scalar_prefetch = 0 : i64, scratch_operands = 3 : i64, tpu.core_type = #tpu.core_type<tc>, window_params = [{transform_indices = @transform_0, window_bounds = array<i64: 1, 256, 128>}, {pipeline_mode = #tpu.pipeline_mode<synchronous>, transform_indices = @transform_1, window_bounds = array<i64: 128, 256>}, {pipeline_mode = #tpu.pipeline_mode<synchronous>, transform_indices = @transform_2, window_bounds = array<i64: 2, 256>}, {pipeline_mode = #tpu.pipeline_mode<synchronous>, transform_indices = @transform_3, window_bounds = array<i64: 128, 128>}, {pipeline_mode = #tpu.pipeline_mode<synchronous>, transform_indices = @transform_4, window_bounds = array<i64: 2, 128>}, {pipeline_mode = #tpu.pipeline_mode<synchronous>, transform_indices = @transform_5, window_bounds = array<i64: 9, 128, 128>}, {pipeline_mode = #tpu.pipeline_mode<synchronous>, transform_indices = @transform_6, window_bounds = array<i64: 2, 128>}, {pipeline_mode = #tpu.pipeline_mode<synchronous>, transform_indices = @transform_7, window_bounds = array<i64: 128, 128>}, {pipeline_mode = #tpu.pipeline_mode<synchronous>, transform_indices = @transform_8, window_bounds = array<i64: 128, 128>}, {pipeline_mode = #tpu.pipeline_mode<synchronous>, transform_indices = @transform_9, window_bounds = array<i64: 2, 128>}, {pipeline_mode = #tpu.pipeline_mode<synchronous>, transform_indices = @transform_10, window_bounds = array<i64: 3, 256, 1>}, {transform_indices = @transform_11, window_bounds = array<i64: 1, 256, 128>}]} {
    %c0 = arith.constant 0 : index
    %c0_0 = arith.constant 0 : index
    %c0_1 = arith.constant 0 : index
    %0 = vector.load %arg1[%c0, %c0_0, %c0_1] : memref<1x256x128xbf16, #tpu.memory_space<vmem>>, vector<1x256x128xbf16>
    %1 = vector.shape_cast %0 : vector<1x256x128xbf16> to vector<256x128xbf16>
    %c0_2 = arith.constant 0 : index
    %c0_3 = arith.constant 0 : index
    %2 = vector.load %arg2[%c0_2, %c0_3] : memref<128x256xbf16, #tpu.memory_space<vmem>>, vector<128x128xbf16>
    %cst = arith.constant dense<0.000000e+00> : vector<256x128xf32>
    %3 = tpu.matmul %1, %2, %cst {dimension_numbers = #tpu.dot_dimension_numbers<[1], [0], [0], [1], [0, 0, 1, 1], [], []>} : vector<256x128xbf16>, vector<128x128xbf16>, vector<256x128xf32> -> vector<256x128xf32>
    %c0_4 = arith.constant 0 : index
    %c0_5 = arith.constant 0 : index
    %4 = vector.load %arg3[%c0_4, %c0_5] : memref<2x256xf32, #tpu.memory_space<vmem>>, vector<1x128xf32>
    %5 = vector.broadcast %4 : vector<1x128xf32> to vector<256x128xf32>
    %6 = arith.mulf %3, %5 : vector<256x128xf32>
    %c1 = arith.constant 1 : index
    %c0_6 = arith.constant 0 : index
    %7 = vector.load %arg3[%c1, %c0_6] : memref<2x256xf32, #tpu.memory_space<vmem>>, vector<1x128xf32>
    %8 = vector.broadcast %7 : vector<1x128xf32> to vector<256x128xf32>
    %9 = arith.addf %6, %8 : vector<256x128xf32>
    %cst_7 = arith.constant 1.000000e-01 : f32
    %10 = vector.broadcast %cst_7 : f32 to vector<256x128xf32>
    %11 = arith.mulf %10, %9 : vector<256x128xf32>
    %12 = arith.maximumf %9, %11 : vector<256x128xf32>
    %13 = arith.truncf %12 : vector<256x128xf32> to vector<256x128xbf16>
    %c0_8 = arith.constant 0 : index
    %c0_9 = arith.constant 0 : index
    %14 = vector.load %arg14[%c0_8, %c0_9] : memref<256x128xbf16, #tpu.memory_space<vmem>>, vector<256x128xbf16>
    tpu.vector_store %arg14[%c0_8, %c0_9], %13 {strides = array<i32>} : memref<256x128xbf16, #tpu.memory_space<vmem>>, vector<256x128xbf16>,
    %c0_10 = arith.constant 0 : index
    %c128 = arith.constant 128 : index
    %15 = vector.load %arg2[%c0_10, %c128] : memref<128x256xbf16, #tpu.memory_space<vmem>>, vector<128x128xbf16>
    %cst_11 = arith.constant dense<0.000000e+00> : vector<256x128xf32>
    %16 = tpu.matmul %1, %15, %cst_11 {dimension_numbers = #tpu.dot_dimension_numbers<[1], [0], [0], [1], [0, 0, 1, 1], [], []>} : vector<256x128xbf16>, vector<128x128xbf16>, vector<256x128xf32> -> vector<256x128xf32>
    %c0_12 = arith.constant 0 : index
    %c128_13 = arith.constant 128 : index
    %17 = vector.load %arg3[%c0_12, %c128_13] : memref<2x256xf32, #tpu.memory_space<vmem>>, vector<1x128xf32>
    %18 = vector.broadcast %17 : vector<1x128xf32> to vector<256x128xf32>
    %19 = arith.mulf %16, %18 : vector<256x128xf32>
    %c1_14 = arith.constant 1 : index
    %c128_15 = arith.constant 128 : index
    %20 = vector.load %arg3[%c1_14, %c128_15] : memref<2x256xf32, #tpu.memory_space<vmem>>, vector<1x128xf32>
    %21 = vector.broadcast %20 : vector<1x128xf32> to vector<256x128xf32>
    %22 = arith.addf %19, %21 : vector<256x128xf32>
    %cst_16 = arith.constant 1.000000e-01 : f32
    %23 = vector.broadcast %cst_16 : f32 to vector<256x128xf32>
    %24 = arith.mulf %23, %22 : vector<256x128xf32>
    %25 = arith.maximumf %22, %24 : vector<256x128xf32>
    %26 = arith.truncf %25 : vector<256x128xf32> to vector<256x128xbf16>
    %c0_17 = arith.constant 0 : index
    %c0_18 = arith.constant 0 : index
    %27 = vector.load %arg15[%c0_17, %c0_18] : memref<256x128xbf16, #tpu.memory_space<vmem>>, vector<256x128xbf16>
    tpu.vector_store %arg15[%c0_17, %c0_18], %26 {strides = array<i32>} : memref<256x128xbf16, #tpu.memory_space<vmem>>, vector<256x128xbf16>,
    %c0_19 = arith.constant 0 : index
    %c0_20 = arith.constant 0 : index
    %28 = vector.load %arg4[%c0_19, %c0_20] : memref<128x128xbf16, #tpu.memory_space<vmem>>, vector<128x128xbf16>
    %cst_21 = arith.constant dense<0.000000e+00> : vector<256x128xf32>
    %29 = tpu.matmul %26, %28, %cst_21 {dimension_numbers = #tpu.dot_dimension_numbers<[1], [0], [0], [1], [0, 0, 1, 1], [], []>} : vector<256x128xbf16>, vector<128x128xbf16>, vector<256x128xf32> -> vector<256x128xf32>
    %c0_22 = arith.constant 0 : index
    %c0_23 = arith.constant 0 : index
    %30 = vector.load %arg5[%c0_22, %c0_23] : memref<2x128xf32, #tpu.memory_space<vmem>>, vector<1x128xf32>
    %31 = vector.broadcast %30 : vector<1x128xf32> to vector<256x128xf32>
    %32 = arith.mulf %29, %31 : vector<256x128xf32>
    %c1_24 = arith.constant 1 : index
    %c0_25 = arith.constant 0 : index
    %33 = vector.load %arg5[%c1_24, %c0_25] : memref<2x128xf32, #tpu.memory_space<vmem>>, vector<1x128xf32>
    %34 = vector.broadcast %33 : vector<1x128xf32> to vector<256x128xf32>
    %35 = arith.addf %32, %34 : vector<256x128xf32>
    %cst_26 = arith.constant 1.000000e-01 : f32
    %36 = vector.broadcast %cst_26 : f32 to vector<256x128xf32>
    %37 = arith.mulf %36, %35 : vector<256x128xf32>
    %38 = arith.maximumf %35, %37 : vector<256x128xf32>
    %cst_27 = arith.constant 0.000000e+00 : bf16
    %39 = vector.broadcast %cst_27 : bf16 to vector<24x128xbf16>
    %c0_28 = arith.constant 0 : index
    %c0_29 = arith.constant 0 : index
    %40 = vector.load %arg13[%c0_28, %c0_29] : memref<304x128xbf16, #tpu.memory_space<vmem>>, vector<24x128xbf16>
    tpu.vector_store %arg13[%c0_28, %c0_29], %39 {strides = array<i32>} : memref<304x128xbf16, #tpu.memory_space<vmem>>, vector<24x128xbf16>,
    %cst_30 = arith.constant 0.000000e+00 : bf16
    %41 = vector.broadcast %cst_30 : bf16 to vector<24x128xbf16>
    %c280 = arith.constant 280 : index
    %c0_31 = arith.constant 0 : index
    %42 = vector.load %arg13[%c280, %c0_31] : memref<304x128xbf16, #tpu.memory_space<vmem>>, vector<24x128xbf16>
    tpu.vector_store %arg13[%c280, %c0_31], %41 {strides = array<i32>} : memref<304x128xbf16, #tpu.memory_space<vmem>>, vector<24x128xbf16>,
    %43 = arith.truncf %38 : vector<256x128xf32> to vector<256x128xbf16>
    %c24 = arith.constant 24 : index
    %c0_32 = arith.constant 0 : index
    %44 = vector.load %arg13[%c24, %c0_32] : memref<304x128xbf16, #tpu.memory_space<vmem>>, vector<256x128xbf16>
    tpu.vector_store %arg13[%c24, %c0_32], %43 {strides = array<i32>} : memref<304x128xbf16, #tpu.memory_space<vmem>>, vector<256x128xbf16>,
    %cst_33 = arith.constant 0.000000e+00 : f32
    %45 = vector.broadcast %cst_33 : f32 to vector<256x128xf32>
    %c7 = arith.constant 7 : index
    %c0_34 = arith.constant 0 : index
    %46 = vector.load %arg13[%c7, %c0_34] : memref<304x128xbf16, #tpu.memory_space<vmem>>, vector<256x128xbf16>
    %c0_35 = arith.constant 0 : index
    %c0_36 = arith.constant 0 : index
    %c0_37 = arith.constant 0 : index
    %47 = vector.load %arg11[%c0_35, %c0_36, %c0_37] : memref<3x256x1xbf16, #tpu.memory_space<vmem>>, vector<1x256x1xbf16>
    %48 = vector.shape_cast %47 : vector<1x256x1xbf16> to vector<256x1xbf16>
    %49 = vector.broadcast %48 : vector<256x1xbf16> to vector<256x128xbf16>
    %50 = arith.mulf %46, %49 : vector<256x128xbf16>
    %c0_38 = arith.constant 0 : index
    %c0_39 = arith.constant 0 : index
    %c0_40 = arith.constant 0 : index
    %51 = vector.load %arg6[%c0_38, %c0_39, %c0_40] : memref<9x128x128xbf16, #tpu.memory_space<vmem>>, vector<1x128x128xbf16>
    %52 = vector.shape_cast %51 : vector<1x128x128xbf16> to vector<128x128xbf16>
    %cst_41 = arith.constant dense<0.000000e+00> : vector<256x128xf32>
    %53 = tpu.matmul %50, %52, %cst_41 {dimension_numbers = #tpu.dot_dimension_numbers<[1], [0], [0], [1], [0, 0, 1, 1], [], []>} : vector<256x128xbf16>, vector<128x128xbf16>, vector<256x128xf32> -> vector<256x128xf32>
    %54 = arith.addf %45, %53 : vector<256x128xf32>
    %c8 = arith.constant 8 : index
    %c0_42 = arith.constant 0 : index
    %55 = vector.load %arg13[%c8, %c0_42] : memref<304x128xbf16, #tpu.memory_space<vmem>>, vector<256x128xbf16>
    %c1_43 = arith.constant 1 : index
    %c0_44 = arith.constant 0 : index
    %c0_45 = arith.constant 0 : index
    %56 = vector.load %arg6[%c1_43, %c0_44, %c0_45] : memref<9x128x128xbf16, #tpu.memory_space<vmem>>, vector<1x128x128xbf16>
    %57 = vector.shape_cast %56 : vector<1x128x128xbf16> to vector<128x128xbf16>
    %cst_46 = arith.constant dense<0.000000e+00> : vector<256x128xf32>
    %58 = tpu.matmul %55, %57, %cst_46 {dimension_numbers = #tpu.dot_dimension_numbers<[1], [0], [0], [1], [0, 0, 1, 1], [], []>} : vector<256x128xbf16>, vector<128x128xbf16>, vector<256x128xf32> -> vector<256x128xf32>
    %59 = arith.addf %54, %58 : vector<256x128xf32>
    %c9 = arith.constant 9 : index
    %c0_47 = arith.constant 0 : index
    %60 = vector.load %arg13[%c9, %c0_47] : memref<304x128xbf16, #tpu.memory_space<vmem>>, vector<256x128xbf16>
    %c2 = arith.constant 2 : index
    %c0_48 = arith.constant 0 : index
    %c0_49 = arith.constant 0 : index
    %61 = vector.load %arg11[%c2, %c0_48, %c0_49] : memref<3x256x1xbf16, #tpu.memory_space<vmem>>, vector<1x256x1xbf16>
    %62 = vector.shape_cast %61 : vector<1x256x1xbf16> to vector<256x1xbf16>
    %63 = vector.broadcast %62 : vector<256x1xbf16> to vector<256x128xbf16>
    %64 = arith.mulf %60, %63 : vector<256x128xbf16>
    %c2_50 = arith.constant 2 : index
    %c0_51 = arith.constant 0 : index
    %c0_52 = arith.constant 0 : index
    %65 = vector.load %arg6[%c2_50, %c0_51, %c0_52] : memref<9x128x128xbf16, #tpu.memory_space<vmem>>, vector<1x128x128xbf16>
    %66 = vector.shape_cast %65 : vector<1x128x128xbf16> to vector<128x128xbf16>
    %cst_53 = arith.constant dense<0.000000e+00> : vector<256x128xf32>
    %67 = tpu.matmul %64, %66, %cst_53 {dimension_numbers = #tpu.dot_dimension_numbers<[1], [0], [0], [1], [0, 0, 1, 1], [], []>} : vector<256x128xbf16>, vector<128x128xbf16>, vector<256x128xf32> -> vector<256x128xf32>
    %68 = arith.addf %59, %67 : vector<256x128xf32>
    %c23 = arith.constant 23 : index
    %c0_54 = arith.constant 0 : index
    %69 = vector.load %arg13[%c23, %c0_54] : memref<304x128xbf16, #tpu.memory_space<vmem>>, vector<256x128xbf16>
    %c0_55 = arith.constant 0 : index
    %c0_56 = arith.constant 0 : index
    %c0_57 = arith.constant 0 : index
    %70 = vector.load %arg11[%c0_55, %c0_56, %c0_57] : memref<3x256x1xbf16, #tpu.memory_space<vmem>>, vector<1x256x1xbf16>
    %71 = vector.shape_cast %70 : vector<1x256x1xbf16> to vector<256x1xbf16>
    %72 = vector.broadcast %71 : vector<256x1xbf16> to vector<256x128xbf16>
    %73 = arith.mulf %69, %72 : vector<256x128xbf16>
    %c3 = arith.constant 3 : index
    %c0_58 = arith.constant 0 : index
    %c0_59 = arith.constant 0 : index
    %74 = vector.load %arg6[%c3, %c0_58, %c0_59] : memref<9x128x128xbf16, #tpu.memory_space<vmem>>, vector<1x128x128xbf16>
    %75 = vector.shape_cast %74 : vector<1x128x128xbf16> to vector<128x128xbf16>
    %cst_60 = arith.constant dense<0.000000e+00> : vector<256x128xf32>
    %76 = tpu.matmul %73, %75, %cst_60 {dimension_numbers = #tpu.dot_dimension_numbers<[1], [0], [0], [1], [0, 0, 1, 1], [], []>} : vector<256x128xbf16>, vector<128x128xbf16>, vector<256x128xf32> -> vector<256x128xf32>
    %77 = arith.addf %68, %76 : vector<256x128xf32>
    %c24_61 = arith.constant 24 : index
    %c0_62 = arith.constant 0 : index
    %78 = vector.load %arg13[%c24_61, %c0_62] : memref<304x128xbf16, #tpu.memory_space<vmem>>, vector<256x128xbf16>
    %c4 = arith.constant 4 : index
    %c0_63 = arith.constant 0 : index
    %c0_64 = arith.constant 0 : index
    %79 = vector.load %arg6[%c4, %c0_63, %c0_64] : memref<9x128x128xbf16, #tpu.memory_space<vmem>>, vector<1x128x128xbf16>
    %80 = vector.shape_cast %79 : vector<1x128x128xbf16> to vector<128x128xbf16>
    %cst_65 = arith.constant dense<0.000000e+00> : vector<256x128xf32>
    %81 = tpu.matmul %78, %80, %cst_65 {dimension_numbers = #tpu.dot_dimension_numbers<[1], [0], [0], [1], [0, 0, 1, 1], [], []>} : vector<256x128xbf16>, vector<128x128xbf16>, vector<256x128xf32> -> vector<256x128xf32>
    %82 = arith.addf %77, %81 : vector<256x128xf32>
    %c25 = arith.constant 25 : index
    %c0_66 = arith.constant 0 : index
    %83 = vector.load %arg13[%c25, %c0_66] : memref<304x128xbf16, #tpu.memory_space<vmem>>, vector<256x128xbf16>
    %c2_67 = arith.constant 2 : index
    %c0_68 = arith.constant 0 : index
    %c0_69 = arith.constant 0 : index
    %84 = vector.load %arg11[%c2_67, %c0_68, %c0_69] : memref<3x256x1xbf16, #tpu.memory_space<vmem>>, vector<1x256x1xbf16>
    %85 = vector.shape_cast %84 : vector<1x256x1xbf16> to vector<256x1xbf16>
    %86 = vector.broadcast %85 : vector<256x1xbf16> to vector<256x128xbf16>
    %87 = arith.mulf %83, %86 : vector<256x128xbf16>
    %c5 = arith.constant 5 : index
    %c0_70 = arith.constant 0 : index
    %c0_71 = arith.constant 0 : index
    %88 = vector.load %arg6[%c5, %c0_70, %c0_71] : memref<9x128x128xbf16, #tpu.memory_space<vmem>>, vector<1x128x128xbf16>
    %89 = vector.shape_cast %88 : vector<1x128x128xbf16> to vector<128x128xbf16>
    %cst_72 = arith.constant dense<0.000000e+00> : vector<256x128xf32>
    %90 = tpu.matmul %87, %89, %cst_72 {dimension_numbers = #tpu.dot_dimension_numbers<[1], [0], [0], [1], [0, 0, 1, 1], [], []>} : vector<256x128xbf16>, vector<128x128xbf16>, vector<256x128xf32> -> vector<256x128xf32>
    %91 = arith.addf %82, %90 : vector<256x128xf32>
    %c39 = arith.constant 39 : index
    %c0_73 = arith.constant 0 : index
    %92 = vector.load %arg13[%c39, %c0_73] : memref<304x128xbf16, #tpu.memory_space<vmem>>, vector<256x128xbf16>
    %c0_74 = arith.constant 0 : index
    %c0_75 = arith.constant 0 : index
    %c0_76 = arith.constant 0 : index
    %93 = vector.load %arg11[%c0_74, %c0_75, %c0_76] : memref<3x256x1xbf16, #tpu.memory_space<vmem>>, vector<1x256x1xbf16>
    %94 = vector.shape_cast %93 : vector<1x256x1xbf16> to vector<256x1xbf16>
    %95 = vector.broadcast %94 : vector<256x1xbf16> to vector<256x128xbf16>
    %96 = arith.mulf %92, %95 : vector<256x128xbf16>
    %c6 = arith.constant 6 : index
    %c0_77 = arith.constant 0 : index
    %c0_78 = arith.constant 0 : index
    %97 = vector.load %arg6[%c6, %c0_77, %c0_78] : memref<9x128x128xbf16, #tpu.memory_space<vmem>>, vector<1x128x128xbf16>
    %98 = vector.shape_cast %97 : vector<1x128x128xbf16> to vector<128x128xbf16>
    %cst_79 = arith.constant dense<0.000000e+00> : vector<256x128xf32>
    %99 = tpu.matmul %96, %98, %cst_79 {dimension_numbers = #tpu.dot_dimension_numbers<[1], [0], [0], [1], [0, 0, 1, 1], [], []>} : vector<256x128xbf16>, vector<128x128xbf16>, vector<256x128xf32> -> vector<256x128xf32>
    %100 = arith.addf %91, %99 : vector<256x128xf32>
    %c40 = arith.constant 40 : index
    %c0_80 = arith.constant 0 : index
    %101 = vector.load %arg13[%c40, %c0_80] : memref<304x128xbf16, #tpu.memory_space<vmem>>, vector<256x128xbf16>
    %c7_81 = arith.constant 7 : index
    %c0_82 = arith.constant 0 : index
    %c0_83 = arith.constant 0 : index
    %102 = vector.load %arg6[%c7_81, %c0_82, %c0_83] : memref<9x128x128xbf16, #tpu.memory_space<vmem>>, vector<1x128x128xbf16>
    %103 = vector.shape_cast %102 : vector<1x128x128xbf16> to vector<128x128xbf16>
    %cst_84 = arith.constant dense<0.000000e+00> : vector<256x128xf32>
    %104 = tpu.matmul %101, %103, %cst_84 {dimension_numbers = #tpu.dot_dimension_numbers<[1], [0], [0], [1], [0, 0, 1, 1], [], []>} : vector<256x128xbf16>, vector<128x128xbf16>, vector<256x128xf32> -> vector<256x128xf32>
    %105 = arith.addf %100, %104 : vector<256x128xf32>
    %c41 = arith.constant 41 : index
    %c0_85 = arith.constant 0 : index
    %106 = vector.load %arg13[%c41, %c0_85] : memref<304x128xbf16, #tpu.memory_space<vmem>>, vector<256x128xbf16>
    %c2_86 = arith.constant 2 : index
    %c0_87 = arith.constant 0 : index
    %c0_88 = arith.constant 0 : index
    %107 = vector.load %arg11[%c2_86, %c0_87, %c0_88] : memref<3x256x1xbf16, #tpu.memory_space<vmem>>, vector<1x256x1xbf16>
    %108 = vector.shape_cast %107 : vector<1x256x1xbf16> to vector<256x1xbf16>
    %109 = vector.broadcast %108 : vector<256x1xbf16> to vector<256x128xbf16>
    %110 = arith.mulf %106, %109 : vector<256x128xbf16>
    %c8_89 = arith.constant 8 : index
    %c0_90 = arith.constant 0 : index
    %c0_91 = arith.constant 0 : index
    %111 = vector.load %arg6[%c8_89, %c0_90, %c0_91] : memref<9x128x128xbf16, #tpu.memory_space<vmem>>, vector<1x128x128xbf16>
    %112 = vector.shape_cast %111 : vector<1x128x128xbf16> to vector<128x128xbf16>
    %cst_92 = arith.constant dense<0.000000e+00> : vector<256x128xf32>
    %113 = tpu.matmul %110, %112, %cst_92 {dimension_numbers = #tpu.dot_dimension_numbers<[1], [0], [0], [1], [0, 0, 1, 1], [], []>} : vector<256x128xbf16>, vector<128x128xbf16>, vector<256x128xf32> -> vector<256x128xf32>
    %114 = arith.addf %105, %113 : vector<256x128xf32>
    %c0_93 = arith.constant 0 : index
    %c0_94 = arith.constant 0 : index
    %115 = vector.load %arg7[%c0_93, %c0_94] : memref<2x128xf32, #tpu.memory_space<vmem>>, vector<1x128xf32>
    %116 = vector.broadcast %115 : vector<1x128xf32> to vector<256x128xf32>
    %117 = arith.mulf %114, %116 : vector<256x128xf32>
    %c1_95 = arith.constant 1 : index
    %c0_96 = arith.constant 0 : index
    %118 = vector.load %arg7[%c1_95, %c0_96] : memref<2x128xf32, #tpu.memory_space<vmem>>, vector<1x128xf32>
    %119 = vector.broadcast %118 : vector<1x128xf32> to vector<256x128xf32>
    %120 = arith.addf %117, %119 : vector<256x128xf32>
    %c0_97 = arith.constant 0 : index
    %c0_98 = arith.constant 0 : index
    %121 = vector.load %arg15[%c0_97, %c0_98] : memref<256x128xbf16, #tpu.memory_space<vmem>>, vector<256x128xbf16>
    %122 = arith.extf %121 : vector<256x128xbf16> to vector<256x128xf32>
    %123 = arith.addf %122, %120 : vector<256x128xf32>
    %cst_99 = arith.constant 1.000000e-01 : f32
    %124 = vector.broadcast %cst_99 : f32 to vector<256x128xf32>
    %125 = arith.mulf %124, %123 : vector<256x128xf32>
    %126 = arith.maximumf %123, %125 : vector<256x128xf32>
    %c0_100 = arith.constant 0 : index
    %c0_101 = arith.constant 0 : index
    %127 = vector.load %arg14[%c0_100, %c0_101] : memref<256x128xbf16, #tpu.memory_space<vmem>>, vector<256x128xbf16>
    %c0_102 = arith.constant 0 : index
    %c0_103 = arith.constant 0 : index
    %128 = vector.load %arg8[%c0_102, %c0_103] : memref<128x128xbf16, #tpu.memory_space<vmem>>, vector<128x128xbf16>
    %cst_104 = arith.constant dense<0.000000e+00> : vector<256x128xf32>
    %129 = tpu.matmul %127, %128, %cst_104 {dimension_numbers = #tpu.dot_dimension_numbers<[1], [0], [0], [1], [0, 0, 1, 1], [], []>} : vector<256x128xbf16>, vector<128x128xbf16>, vector<256x128xf32> -> vector<256x128xf32>
    %130 = arith.truncf %126 : vector<256x128xf32> to vector<256x128xbf16>
    %c0_105 = arith.constant 0 : index
    %c0_106 = arith.constant 0 : index
    %131 = vector.load %arg9[%c0_105, %c0_106] : memref<128x128xbf16, #tpu.memory_space<vmem>>, vector<128x128xbf16>
    %cst_107 = arith.constant dense<0.000000e+00> : vector<256x128xf32>
    %132 = tpu.matmul %130, %131, %cst_107 {dimension_numbers = #tpu.dot_dimension_numbers<[1], [0], [0], [1], [0, 0, 1, 1], [], []>} : vector<256x128xbf16>, vector<128x128xbf16>, vector<256x128xf32> -> vector<256x128xf32>
    %133 = arith.addf %129, %132 : vector<256x128xf32>
    %c0_108 = arith.constant 0 : index
    %c0_109 = arith.constant 0 : index
    %134 = vector.load %arg10[%c0_108, %c0_109] : memref<2x128xf32, #tpu.memory_space<vmem>>, vector<1x128xf32>
    %135 = vector.broadcast %134 : vector<1x128xf32> to vector<256x128xf32>
    %136 = arith.mulf %133, %135 : vector<256x128xf32>
    %c1_110 = arith.constant 1 : index
    %c0_111 = arith.constant 0 : index
    %137 = vector.load %arg10[%c1_110, %c0_111] : memref<2x128xf32, #tpu.memory_space<vmem>>, vector<1x128xf32>
    %138 = vector.broadcast %137 : vector<1x128xf32> to vector<256x128xf32>
    %139 = arith.addf %136, %138 : vector<256x128xf32>
    %cst_112 = arith.constant 1.000000e-01 : f32
    %140 = vector.broadcast %cst_112 : f32 to vector<256x128xf32>
    %141 = arith.mulf %140, %139 : vector<256x128xf32>
    %142 = arith.maximumf %139, %141 : vector<256x128xf32>
    %c0_113 = arith.constant 0 : index
    %c0_114 = arith.constant 0 : index
    %c0_115 = arith.constant 0 : index
    %143 = vector.load %arg12[%c0_113, %c0_114, %c0_115] : memref<1x256x128xf32, #tpu.memory_space<vmem>>, vector<1x256x128xf32>
    %144 = vector.shape_cast %143 : vector<1x256x128xf32> to vector<256x128xf32>
    %145 = vector.shape_cast %142 : vector<256x128xf32> to vector<1x256x128xf32>
    tpu.vector_store %arg12[%c0_113, %c0_114, %c0_115], %145 {strides = array<i32>} : memref<1x256x128xf32, #tpu.memory_space<vmem>>, vector<1x256x128xf32>,
    return
  }
  func.func @transform_0(%arg0: i32) -> (i32, i32, i32) {
    %c0_i32 = arith.constant 0 : i32
    %c0_i32_0 = arith.constant 0 : i32
    %c0_i32_1 = arith.constant 0 : i32
    return %arg0, %c0_i32, %c0_i32_0 : i32, i32, i32
  }
  func.func @transform_1(%arg0: i32) -> (i32, i32) {
    %c0_i32 = arith.constant 0 : i32
    %c0_i32_0 = arith.constant 0 : i32
    %c0_i32_1 = arith.constant 0 : i32
    return %c0_i32, %c0_i32_0 : i32, i32
  }
  func.func @transform_2(%arg0: i32) -> (i32, i32) {
    %c0_i32 = arith.constant 0 : i32
    %c0_i32_0 = arith.constant 0 : i32
    %c0_i32_1 = arith.constant 0 : i32
    return %c0_i32, %c0_i32_0 : i32, i32
  }
  func.func @transform_3(%arg0: i32) -> (i32, i32) {
    %c0_i32 = arith.constant 0 : i32
    %c0_i32_0 = arith.constant 0 : i32
    %c0_i32_1 = arith.constant 0 : i32
    return %c0_i32, %c0_i32_0 : i32, i32
  }
  func.func @transform_4(%arg0: i32) -> (i32, i32) {
    %c0_i32 = arith.constant 0 : i32
    %c0_i32_0 = arith.constant 0 : i32
    %c0_i32_1 = arith.constant 0 : i32
    return %c0_i32, %c0_i32_0 : i32, i32
  }
  func.func @transform_5(%arg0: i32) -> (i32, i32, i32) {
    %c0_i32 = arith.constant 0 : i32
    %c0_i32_0 = arith.constant 0 : i32
    %c0_i32_1 = arith.constant 0 : i32
    %c0_i32_2 = arith.constant 0 : i32
    return %c0_i32, %c0_i32_0, %c0_i32_1 : i32, i32, i32
  }
  func.func @transform_6(%arg0: i32) -> (i32, i32) {
    %c0_i32 = arith.constant 0 : i32
    %c0_i32_0 = arith.constant 0 : i32
    %c0_i32_1 = arith.constant 0 : i32
    return %c0_i32, %c0_i32_0 : i32, i32
  }
  func.func @transform_7(%arg0: i32) -> (i32, i32) {
    %c0_i32 = arith.constant 0 : i32
    %c0_i32_0 = arith.constant 0 : i32
    %c0_i32_1 = arith.constant 0 : i32
    return %c0_i32, %c0_i32_0 : i32, i32
  }
  func.func @transform_8(%arg0: i32) -> (i32, i32) {
    %c0_i32 = arith.constant 0 : i32
    %c0_i32_0 = arith.constant 0 : i32
    %c0_i32_1 = arith.constant 0 : i32
    return %c0_i32, %c0_i32_0 : i32, i32
  }
  func.func @transform_9(%arg0: i32) -> (i32, i32) {
    %c0_i32 = arith.constant 0 : i32
    %c0_i32_0 = arith.constant 0 : i32
    %c0_i32_1 = arith.constant 0 : i32
    return %c0_i32, %c0_i32_0 : i32, i32
  }
  func.func @transform_10(%arg0: i32) -> (i32, i32, i32) {
    %c0_i32 = arith.constant 0 : i32
    %c0_i32_0 = arith.constant 0 : i32
    %c0_i32_1 = arith.constant 0 : i32
    %c0_i32_2 = arith.constant 0 : i32
    return %c0_i32, %c0_i32_0, %c0_i32_1 : i32, i32, i32
  }
  func.func @transform_11(%arg0: i32) -> (i32, i32, i32) {
    %c0_i32 = arith.constant 0 : i32
    %c0_i32_0 = arith.constant 0 : i32
    %c0_i32_1 = arith.constant 0 : i32
    return %arg0, %c0_i32, %c0_i32_0 : i32, i32, i32
  }
}

</mosaic_0001>

<bundles_post_ra>
// kernel: tpu_custom_call.1
= control target key start
LH: loop header
LB: loop body
LE: loop exit
PB: predicated region body
PF: predicated region fallthrough
CT: control target
= control target key end

     0   :  { %s12251_s0 = inlined_call_operand.vmem [shape: bf16[2,256,128], index: 0, kind: input, shape index: {}]   ;;  %s12252_s1 = inlined_call_operand.vmem [shape: bf16[128,256], index: 1, kind: input, shape index: {}]   ;;  %s12253_s2 = inlined_call_operand.vmem [shape: f32[2,256], index: 2, kind: input, shape index: {}]   ;;  %s12254_s3 = inlined_call_operand.hbm [shape: bf16[128,128], index: 3, kind: input, shape index: {}]   ;;  %s12255_s4 = inlined_call_operand.vmem [shape: f32[2,128], index: 4, kind: input, shape index: {}]   ;;  %s12256_s5 = inlined_call_operand.hbm [shape: bf16[9,128,128], index: 5, kind: input, shape index: {}]   ;;  %s12257_s6 = inlined_call_operand.vmem [shape: f32[2,128], index: 6, kind: input, shape index: {}]   ;;  %s12258_s7 = inlined_call_operand.hbm [shape: bf16[128,128], index: 7, kind: input, shape index: {}]   ;;  %s12259_s8 = inlined_call_operand.hbm [shape: bf16[128,128], index: 8, kind: input, shape index: {}]   ;;  %s12260_s9 = inlined_call_operand.vmem [shape: f32[2,128], index: 9, kind: input, shape index: {}]   ;;  %s12261_s10 = inlined_call_operand.vmem [shape: bf16[3,256,1], index: 10, kind: input, shape index: {}]   ;;  %s12262_s11 = inlined_call_operand.hbm [shape: f32[2,256,128], index: 11, kind: output, shape index: {}]  }
   0x1   :  { %12369 = sst [smem:[#allocation92_spill]] %s12262_s11 }
   0x2   :  { %16 = vsyncpa [#allocation6], 0 }
   0x3   :  { %17 = vsyncpa [#allocation9], 0 }
   0x4   :  { %18 = vsyncpa [#allocation12], 0 }
   0x5   :  { %19 = vsyncpa [#allocation7], 0 }
   0x6   :  { %21 = vsyncpa [#allocation7 + $0x1], 0  ;;  %s9755_s17 = smov 0   ;;  %s9757_s18 = smov 0  }
   0x7   :  { %s9759_s19 = smov 0   ;;  %s9761_s20 = smov 0  }
   0x8 LB: > { %12370 = sst [smem:[#allocation18_spill]] %s9670_s17  ;;  %s9776_s21 = sadd.s32 4294967295, %s9682_s20   ;;  %s9682_s20 = sphi %s9761_s20, %s12594_s20   ;;  %s9678_s19 = sphi %s9759_s19, %s12599_s19   ;;  %s9674_s18 = sphi %s9757_s18, %s12598_s18   ;;  %s9670_s17 = sphi %s9755_s17, %s12597_s17  }
   0x9   : > { %12371 = sst [smem:[#allocation19_spill]] %s9678_s19  ;;  %s7752_s22 = sadd.s32 4294967294, %s9682_s20  }
   0xa   : > { %12372 = sst [smem:[#allocation20_spill]] %s9682_s20  ;;  %s9780_s23 = sadd.s32 1, %s9682_s20  }
   0xb   : > { %12373 = sst [smem:[#allocation21_spill]] %s9780_s23  ;;  %s270_s24 = sadd.s32 1, %s9678_s19 }
   0xc   : > { %s267_s25 = ssub.s32 %s9682_s20, %s9780_s23  ;;  %p280_p0 = scmp.ne.s32.totalorder %s9678_s19, %s9674_s18 }
   0xd   : > { %p268_p1 = scmp.eq.s32.totalorder %s267_s25, 0  ;;  %p281_p2 = scmp.eq.s32.totalorder %s9776_s21, 1 }
   0xe   : > { %p286_p3 = scmp.ne.s32.totalorder %s9674_s18, %s9670_s17  ;;  %p287_p4 = scmp.eq.s32.totalorder %s7752_s22, 1 }
   0xf   : > { %s9791_s26 = scalar_select %p268_p1, %s9678_s19, %s270_s24  }
  0x10   : > { %p9793_p5 = por %p281_p2, %p280_p0  ;;  %p9797_p6 = por %p287_p4, %p286_p3 }
  0x11   : > { %12374 = sst [smem:[#allocation22_spill]] %s9791_s26  ;;  %p7753_p7 = scmp.ge.s32.totalorder %s9682_s20, 1 }
  0x12   : > { %s12375_s27 = scalar_select %p9793_p5, 1, 0 }
  0x13   : > { %s12376_s28 = scalar_select %p9797_p6, 1, 0 }
  0x14   : > { %p294_p8 = scmp.lt.s32.totalorder %s9682_s20, 3  ;;  %p12266_p9 = scmp.eq.s32.totalorder %s9776_s21, 0 }
  0x15   : > { %12377 = sst [smem:[#allocation23_spill]] %s12376_s28  ;;  %s9684_s30 = smov [#allocation8]  }
  0x16   : > { %p9804_p10 = pnand %p7753_p7, %p294_p8  ;;  %s328_s12 = sshll.u32 %s9684_s30, 4  ;;  %s9810_s12 = int_to_ptr.vmem [resolvable:$true] %s328_s12 }
  0x17   : > { %s9685_s14 = smov [#allocation5]   ;;  %s9686_s16 = smov [#allocation10]  }
  0x18   : > { %s12378_s29 = scalar_select %p9804_p10, 1, 0 }
  0x19   : > { %p9290_p11 = pneg %p9804_p10  ;;  %s312_s15 = sshll.u32 %s9685_s14, 4  ;;  %s9818_s15 = int_to_ptr.vmem [resolvable:$true] %s312_s15 }
  0x1a   : > { %s9820_s22 = sshll.u32 %s9686_s16, 4  ;;  %s9496_s26 = scalar_lea.hbm %s12256_s5, 9216  ;;  %s345_s22 = int_to_ptr.vmem [resolvable:$true] %s9820_s22 }
  0x1b   : > { %p9814_p12 = pnand %p12266_p9, %p9290_p11  ;;  %p9497_p13 = scmp.ne.s32.totalorder %s12256_s5, %s9496_s26 }
  0x1c   : > { %p9503_p3 = scmp.lt.u32.totalorder %s9496_s26, %s12256_s5 }
  0x1d   : > { %p9830_p0 = pneg %p9814_p12 }
  0x1f   : > { %p9499_p1 = pnand %p9830_p0, %p9497_p13 }
  0x21   : > { %p9500_p2 = pneg %p9499_p1 }
  0x23   : > { %p9505_p4 = pnand %p9503_p3, %p9500_p2 }
  0x25   : > { %9508 = shalt.err (!%p9505_p4)
}
  0x26   : > { %s9509_s19 = scalar_lea.vmem %s9810_s12, 9216  ;;  %p9517_p9 = scmp.lt.s32.totalorder %s9810_s12, %s9810_s12 }
  0x27   : > { %p9510_p7 = scmp.ne.s32.totalorder %s9810_s12, %s9509_s19  ;;  %p9518_p6 = scmp.lt.s32.totalorder %s9509_s19, %s9509_s19 }
  0x29   : > { %p9512_p8 = pnand %p9510_p7, %p9830_p0  ;;  %p9519_p13 = por %p9518_p6, %p9517_p9 }
  0x2b   : > { %p9513_p11 = pneg %p9512_p8 }
  0x2d   : > { %p9520_p1 = pnand %p9519_p13, %p9513_p11 }
  0x2f   : > { %9523 = shalt.err (!%p9520_p1)
}
  0x30   : > { %s9687_s24 = smov 64   ;;  %s9688_s26 = smov 4  }
  0x31   : > { %9296 = dma.hbm_to_vmem [thread:$0]  (!%p9814_p12), %s12256_s5, 9216, %s9810_s12, [#allocation9], %s9687_s24, %s9687_s24, %s9688_s26  }
  0x32   : > { %s9524_s19 = scalar_lea.hbm %s12254_s3, 1024 }
  0x33   : > { %p9525_p6 = scmp.ne.s32.totalorder %s12254_s3, %s9524_s19  ;;  %p9531_p3 = scmp.lt.u32.totalorder %s9524_s19, %s12254_s3 }
  0x35   : > { %p9527_p9 = pnand %p9525_p6, %p9830_p0 }
  0x37   : > { %p9528_p2 = pneg %p9527_p9 }
  0x39   : > { %p9533_p4 = pnand %p9531_p3, %p9528_p2 }
  0x3b   : > { %9536 = shalt.err (!%p9533_p4)
}
  0x3c   : > { %s9537_s12 = scalar_lea.vmem %s9818_s15, 1024  ;;  %p9545_p13 = scmp.lt.s32.totalorder %s9818_s15, %s9818_s15 }
  0x3d   : > { %p9538_p7 = scmp.ne.s32.totalorder %s9818_s15, %s9537_s12  ;;  %p9546_p1 = scmp.lt.s32.totalorder %s9537_s12, %s9537_s12 }
  0x3f   : > { %p9540_p8 = pnand %p9538_p7, %p9830_p0  ;;  %p9547_p6 = por %p9546_p1, %p9545_p13 }
  0x41   : > { %p9541_p11 = pneg %p9540_p8 }
  0x43   : > { %p9548_p9 = pnand %p9547_p6, %p9541_p11 }
  0x45   : > { %9551 = shalt.err (!%p9548_p9)
}
  0x46   : > { %9293 = dma.hbm_to_vmem [thread:$0]  (!%p9814_p12), %s12254_s3, 1024, %s9818_s15, [#allocation6], %s9687_s24, %s9687_s24, %s9688_s26  }
  0x47   : > { %s9552_s25 = scalar_lea.hbm %s12258_s7, 1024 }
  0x48   : > { %p9553_p2 = scmp.ne.s32.totalorder %s12258_s7, %s9552_s25  ;;  %p9559_p7 = scmp.lt.u32.totalorder %s9552_s25, %s12258_s7 }
  0x4a   : > { %p9555_p3 = pnand %p9553_p2, %p9830_p0 }
  0x4c   : > { %p9556_p4 = pneg %p9555_p3 }
  0x4e   : > { %p9561_p8 = pnand %p9559_p7, %p9556_p4 }
  0x50   : > { %9564 = shalt.err (!%p9561_p8)
}
  0x51   : > { %s9565_s12 = scalar_lea.vmem %s345_s22, 1024  ;;  %p9573_p6 = scmp.lt.s32.totalorder %s345_s22, %s345_s22 }
  0x52   : > { %p9566_p11 = scmp.ne.s32.totalorder %s345_s22, %s9565_s12  ;;  %p9574_p9 = scmp.lt.s32.totalorder %s9565_s12, %s9565_s12 }
  0x54   : > { %p9568_p13 = pnand %p9566_p11, %p9830_p0  ;;  %p9575_p5 = por %p9574_p9, %p9573_p6 }
  0x56   : > { %p9569_p1 = pneg %p9568_p13 }
  0x58   : > { %p9576_p10 = pnand %p9575_p5, %p9569_p1 }
  0x5a   : > { %9579 = shalt.err (!%p9576_p10)
}
  0x5b   : > { %9299 = dma.hbm_to_vmem [thread:$0]  (!%p9814_p12), %s12258_s7, 1024, %s345_s22, [#allocation9], %s9687_s24, %s9687_s24, %s9688_s26  }
  0x5c   : > { %s9689_s17 = smov [#allocation11]   ;;  %s9580_s30 = scalar_lea.hbm %s12259_s8, 1024 }
  0x5d   : > { %s357_s20 = sshll.u32 %s9689_s17, 4  ;;  %p9581_p5 = scmp.ne.s32.totalorder %s12259_s8, %s9580_s30  ;;  %s358_s20 = int_to_ptr.vmem [resolvable:$true] %s357_s20 }
  0x5e   : > { %p9587_p3 = scmp.lt.u32.totalorder %s9580_s30, %s12259_s8 }
  0x5f   : > { %p9583_p10 = pnand %p9581_p5, %p9830_p0 }
  0x61   : > { %p9584_p2 = pneg %p9583_p10 }
  0x63   : > { %p9589_p4 = pnand %p9587_p3, %p9584_p2 }
  0x65   : > { %9592 = shalt.err (!%p9589_p4)
}
  0x66   : > { %s9593_s22 = scalar_lea.vmem %s358_s20, 1024  ;;  %p9601_p13 = scmp.lt.s32.totalorder %s358_s20, %s358_s20 }
  0x67   : > { %p9594_p7 = scmp.ne.s32.totalorder %s358_s20, %s9593_s22  ;;  %p9602_p1 = scmp.lt.s32.totalorder %s9593_s22, %s9593_s22 }
  0x69   : > { %p9596_p8 = pnand %p9594_p7, %p9830_p0  ;;  %p9603_p6 = por %p9602_p1, %p9601_p13 }
  0x6b   : > { %p9597_p11 = pneg %p9596_p8 }
  0x6d   : > { %p9604_p9 = pnand %p9603_p6, %p9597_p11 }
  0x6f   : > { %9607 = shalt.err (!%p9604_p9)
}
  0x70   : > { %9302 = dma.hbm_to_vmem [thread:$0]  (!%p9814_p12), %s12259_s8, 1024, %s358_s20, [#allocation12], %s9687_s24, %s9687_s24, %s9688_s26  }
  0x71   : > { %p12381_p5 = scmp.ne.s32.totalorder %s12378_s29, 0 }
  0x73   : > { %387 = sbr.rel (%p12381_p5) target bundleno = 1689 (0x699), region = 64 }
  0x7a   : > { %p12382_p0 = scmp.eq.s32.totalorder %s9776_s21, 0 }
  0x7c   : > { %9653 = dma.done.wait (%p12382_p0), [#allocation6], 1024   ;;  %p12383_p10 = pmov %p12382_p0 }
  0x7d   : > { %p12384_p2 = pmov %p12382_p0 }
  0x7e   : > { %9655 = vsyncadd (%p12383_p10), [#allocation6], 4294966272 }
  0x7f   : > { %9657 = dma.done.wait (%p12384_p2), [#allocation9], 10240   ;;  %p12385_p3 = pmov %p12382_p0 }
  0x80   : > { %p12386_p4 = pmov %p12382_p0 }
  0x81   : > { %9659 = vsyncadd (%p12385_p3), [#allocation9], 4294957056 }
  0x82   : > { %9661 = dma.done.wait (%p12386_p4), [#allocation12], 1024   ;;  %p12387_p12 = pmov %p12382_p0 }
  0x83   : > { %p439_p7 = scmp.lt.s32.totalorder %s9776_s21, 1  ;;  %v9360_v0 = vld [vmem:[%s12252_s1] ss:$8 sps:$4 sm:$0xff]   ;;  %v9361_v1 = vld [vmem:[%s12252_s1 + $0x10] ss:$8 sps:$4 sm:$0xff]   ;;  %v9690_v36 = vmov 0  }
  0x84   : > { %9663 = vsyncadd (%p12387_p12), [#allocation12], 4294966272  ;;  %8312 = vmatprep.subr.bf16.mxu0 %v9360_v0  ;;  %v9362_v2 = vld [vmem:[%s12252_s1 + $0x20] ss:$8 sps:$4 sm:$0xff]   ;;  %v9363_v3 = vld [vmem:[%s12252_s1 + $0x30] ss:$8 sps:$4 sm:$0xff]   ;;  %9359 = vset.pattern.permute.xlu1 %v9690_v36 }
  0x85   : > { %s440_s23 = scalar_select %p439_p7, %s9776_s21, 1  ;;  %8313 = vmatpush3.bf16.msra.mxu0 %v9360_v0  ;;  %v9364_v5 = vld [vmem:[%s12252_s1 + $0x40] ss:$8 sps:$4 sm:$0xff]   ;;  %v9365_v6 = vld [vmem:[%s12252_s1 + $0x50] ss:$8 sps:$4 sm:$0xff]   ;;  %1726 = vst [vmem:[#allocation2] sm:$0xff] %v9690_v36  ;;  %9358 = vset.pattern.permute.xlu0 %v9690_v36 }
  0x86   : > { %8314 = vmatprep.subr.bf16.mxu0 %v9361_v1  ;;  %v9366_v7 = vld [vmem:[%s12252_s1 + $0x60] ss:$8 sps:$4 sm:$0xff]   ;;  %v9367_v8 = vld [vmem:[%s12252_s1 + $0x70] ss:$8 sps:$4 sm:$0xff]   ;;  %v9370_v9 = vld [vmem:[%s12252_s1 + $0x4] ss:$8 sps:$4 sm:$0xff]  }
  0x87   : > { %s7974_s17 = sshll.u32 %s440_s23, 7  ;;  %v9373_v12 = vld [vmem:[%s12252_s1 + $0x14] ss:$8 sps:$4 sm:$0xff]   ;;  %v9376_v13 = vld [vmem:[%s12252_s1 + $0x24] ss:$8 sps:$4 sm:$0xff]   ;;  %1729 = vst [vmem:[#allocation2 + $0x90] sm:$0xff] %v9690_v36 }
  0x88   : > { %s9951_s14 = scalar_lea.vmem %s12251_s0, %s7974_s17  ;;  %v9379_v16 = vld [vmem:[%s12252_s1 + $0x34] ss:$8 sps:$4 sm:$0xff]   ;;  %v9382_v17 = vld [vmem:[%s12252_s1 + $0x44] ss:$8 sps:$4 sm:$0xff]   ;;  %1727 = vst [vmem:[#allocation2 + $0x8] sm:$0xf] %v9690_v36 }
  0x89   : > { %8315 = vmatpush3.bf16.msra.mxu0 %v9361_v1  ;;  %v9957_v4 = vld [vmem:[%s9951_s14] sm:$0xff]   ;;  %v9369_v10 = vld [vmem:[%s9951_s14 + $0x8] sm:$0xff]   ;;  %v9371_v11 = vld [vmem:[%s9951_s14 + $0x10] sm:$0xff]   ;;  %1728 = vst [vmem:[#allocation2 + $0x88] sm:$0xf0] %v9690_v36  ;;  %vm1762_vm2 = vcmask 1043456  }
  0x8a   : > { %8316 = vmatprep.subr.bf16.mxu0 %v9362_v2  ;;  %8328 = vmatprep.mubr.bf16.mxu0 %v9957_v4  ;;  %v9372_v14 = vld [vmem:[%s9951_s14 + $0x18] sm:$0xff]   ;;  %v9374_v15 = vld [vmem:[%s9951_s14 + $0x20] sm:$0xff]   ;;  %v9375_v18 = vld [vmem:[%s9951_s14 + $0x28] sm:$0xff]   ;;  %vm2828_vm0 = vsmask.f32 4352  ;;  %s436_s22 = sand.u32 1, %s9674_s18  }
  0x8b   : > { %v9377_v19 = vld [vmem:[%s9951_s14 + $0x30] sm:$0xff]   ;;  %v9388_v21 = vld [vmem:[%s12252_s1 + $0x64] ss:$8 sps:$4 sm:$0xff]   ;;  %v9378_v22 = vld [vmem:[%s9951_s14 + $0x38] sm:$0xff]   ;;  %vm2341_vm1 = vsmask.f32 3328 }
  0x8c   : > { %v9385_v20 = vld [vmem:[%s12252_s1 + $0x54] ss:$8 sps:$4 sm:$0xff]   ;;  %v9380_v23 = vld [vmem:[%s9951_s14 + $0x40] sm:$0xff]   ;;  %v9381_v25 = vld [vmem:[%s9951_s14 + $0x48] sm:$0xff]   ;;  %s7764_s23 = sshll.u32 %s436_s22, 8  ;;  %s7975_s13 = sshll.u32 %s9776_s21, 12 }
  0x8d   : > { %8317 = vmatpush3.bf16.msra.mxu0 %v9362_v2  ;;  %v9391_v24 = vld [vmem:[%s12252_s1 + $0x74] ss:$8 sps:$4 sm:$0xff]   ;;  %v9386_v28 = vld [vmem:[%s9951_s14 + $0x60] sm:$0xff]   ;;  %v9387_v29 = vld [vmem:[%s9951_s14 + $0x68] sm:$0xff]   ;;  %s12109_s29 = scalar_lea.vmem [#allocation13], %s7764_s23  ;;  %s12587_s17 = sld [smem:[#allocation92_spill]] }
  0x8e   : > { %8318 = vmatprep.subr.bf16.mxu0 %v9363_v3  ;;  %v9383_v26 = vld [vmem:[%s9951_s14 + $0x50] sm:$0xff]   ;;  %v9384_v27 = vld [vmem:[%s9951_s14 + $0x58] sm:$0xff]   ;;  %v9393_v33 = vld [vmem:[#allocation5 + $0x8] sm:$0xff]   ;;  %s7649_s24 = sshll.u32 %s12109_s29, 4  ;;  %s12210_s21 = scalar_lea.sflag [#allocation7], %s436_s22  ;;  %s12203_s24 = int_to_ptr.vmem [resolvable:$true] %s7649_s24 }
  0x8f   : > { %v9389_v30 = vld [vmem:[%s9951_s14 + $0x70] sm:$0xff]   ;;  %v9390_v31 = vld [vmem:[%s9951_s14 + $0x78] sm:$0xff]   ;;  %v9394_v34 = vld [vmem:[#allocation5 + $0x10] sm:$0xff]   ;;  %s9608_s25 = scalar_lea.vmem %s12203_s24, 4096  ;;  %p12589_p11 = scmp.ne.s32.totalorder %s12375_s27, 0 }
  0x90   : > { %v9392_v32 = vld [vmem:[#allocation5] sm:$0xff]   ;;  %v9395_v35 = vld [vmem:[#allocation5 + $0x18] sm:$0xff]   ;;  %v7847_v37 = vld [vmem:[%s12261_s10 + $0x108] sm:$0xf]  ;;  %p9609_p8 = scmp.ne.s32.totalorder %s12203_s24, %s9608_s25  ;;  %s9692_s30 = smov [#allocation13]  }
  0x91   : > { %8319 = vmatpush3.bf16.msra.mxu0 %v9363_v3  ;;  %v7845_v38 = vld [vmem:[%s12261_s10 + $0x100] sm:$0xf]  ;;  %3266 = vperm.xlu1 %9359, %v7847_v37   ;;  %v7848_v39 = vld [vmem:[%s12261_s10 + $0x10c] sm:$0xf]  ;;  %v7846_v40 = vld [vmem:[%s12261_s10 + $0x104] sm:$0xf] }
  0x92   : > { %8320 = vmatprep.subr.bf16.mxu0 %v9364_v5  ;;  %3242 = vperm.xlu0 %9358, %v7845_v38   ;;  %v9396_v41 = vld [vmem:[#allocation5 + $0x20] sm:$0xff]   ;;  %v7850_v42 = vld [vmem:[%s12261_s10 + $0x114] sm:$0xf]  ;;  %v7849_v43 = vld [vmem:[%s12261_s10 + $0x110] sm:$0xf]  ;;  %p9610_p13 = pnand %p9609_p8, %p12589_p11  ;;  %s9612_s16 = sshll.u32 %s9692_s30, 4  ;;  %s9613_s16 = int_to_ptr.vmem [resolvable:$false] %s9612_s16 }
  0x93   : > { %v7852_v44 = vld [vmem:[%s12261_s10 + $0x11c] sm:$0xf]  ;;  %v7851_v45 = vld [vmem:[%s12261_s10 + $0x118] sm:$0xf]  ;;  %v9397_v46 = vld [vmem:[#allocation5 + $0x28] sm:$0xff]   ;;  %s12588_s28 = smov %s12587_s17  ;;  %s12201_s20 = scalar_lea.hbm %s12587_s17, %s7975_s13 }
  0x94   : > { %v7854_v47 = vld [vmem:[%s12261_s10 + $0x124] sm:$0xf]  ;;  %v7853_v48 = vld [vmem:[%s12261_s10 + $0x120] sm:$0xf]  ;;  %v7856_v49 = vld [vmem:[%s12261_s10 + $0x12c] sm:$0xf]  ;;  %p9611_p1 = pneg %p9610_p13  ;;  %p9615_p6 = scmp.lt.s32.totalorder %s12203_s24, %s9613_s16 }
  0x95   : > { %8321 = vmatpush3.bf16.msra.mxu0 %v9364_v5  ;;  %3278 = vperm.xlu1 %9359, %v7848_v39   ;;  %v7855_v50 = vld [vmem:[%s12261_s10 + $0x128] sm:$0xf]  ;;  %v7858_v52 = vld [vmem:[%s12261_s10 + $0x134] sm:$0xf]  ;;  %v7857_v53 = vld [vmem:[%s12261_s10 + $0x130] sm:$0xf] }
  0x96   : > { %8322 = vmatprep.subr.bf16.mxu0 %v9365_v6  ;;  %3254 = vperm.xlu0 %9358, %v7846_v40   ;;  %v9398_v51 = vld [vmem:[#allocation5 + $0x30] sm:$0xff]   ;;  %v7860_v54 = vld [vmem:[%s12261_s10 + $0x13c] sm:$0xf]  ;;  %v7859_v55 = vld [vmem:[%s12261_s10 + $0x138] sm:$0xf]  ;;  %s9614_s19 = scalar_lea.vmem %s9613_s16, 8192 }
  0x97   : > { %v9399_v56 = vld [vmem:[#allocation5 + $0x38] sm:$0xff]   ;;  %v7862_v57 = vld [vmem:[%s12261_s10 + $0x144] sm:$0xf]  ;;  %v7861_v58 = vld [vmem:[%s12261_s10 + $0x140] sm:$0xf]  ;;  %p9616_p9 = scmp.lt.s32.totalorder %s9614_s19, %s9608_s25 }
  0x98   : > { %v7864_v59 = vld [vmem:[%s12261_s10 + $0x14c] sm:$0xf]  ;;  %v7863_v60 = vld [vmem:[%s12261_s10 + $0x148] sm:$0xf]  ;;  %v7866_v61 = vld [vmem:[%s12261_s10 + $0x154] sm:$0xf] }
  0x99   : > { %8323 = vmatpush3.bf16.msra.mxu0 %v9365_v6  ;;  %3302 = vperm.xlu1 %9359, %v7850_v42   ;;  %v7865_v62 = vld [vmem:[%s12261_s10 + $0x150] sm:$0xf]  ;;  %v7868_v63 = vld [vmem:[%s12261_s10 + $0x15c] sm:$0xf]  ;;  %v7867_v0 = vld [vmem:[%s12261_s10 + $0x158] sm:$0xf]  ;;  %p9617_p5 = por %p9616_p9, %p9615_p6 }
  0x9a   : > { %8324 = vmatprep.subr.bf16.mxu0 %v9366_v7  ;;  %3290 = vperm.xlu0 %9358, %v7849_v43   ;;  %v7870_v1 = vld [vmem:[%s12261_s10 + $0x164] sm:$0xf]  ;;  %v7869_v2 = vld [vmem:[%s12261_s10 + $0x160] sm:$0xf]  ;;  %v7872_v3 = vld [vmem:[%s12261_s10 + $0x16c] sm:$0xf] }
  0x9b   : > { %v7874_v5 = vld [vmem:[%s12261_s10 + $0x174] sm:$0xf]  ;;  %v7873_v6 = vld [vmem:[%s12261_s10 + $0x170] sm:$0xf]  ;;  %v1859_v36 = vld [vmem:[%s12261_s10 + $0x38] sm:$0xf]  ;;  %p9618_p0 = pnand %p9617_p5, %p9611_p1 }
  0x9c   : > { %v1861_v43 = vld [vmem:[%s12261_s10 + $0x40] sm:$0xf] }
  0x9d   : > { %8325 = vmatpush3.bf16.msra.mxu0 %v9366_v7  ;;  %3326 = vperm.xlu1 %9359, %v7852_v44   ;;  %v7876_v7 = vld [vmem:[%s12261_s10 + $0x17c] sm:$0xf] }
  0x9e   : > { %8326 = vmatprep.subr.bf16.mxu0 %v9367_v8  ;;  %3314 = vperm.xlu0 %9358, %v7851_v45  }
  0xa1   : > { %8327 = vmatpush3.bf16.msra.mxu0 %v9367_v8  ;;  %3350 = vperm.xlu1 %9359, %v7854_v47   ;;  %v7875_v8 = vld [vmem:[%s12261_s10 + $0x178] sm:$0xf]  ;;  %v1863_v47 = vld [vmem:[%s12261_s10 + $0x48] sm:$0xf] }
  0xa2   : > { %8360 = vmatprep.subr.bf16.mxu0 %v9370_v9  ;;  %3338 = vperm.xlu0 %9358, %v7853_v48  }
  0xa4   : > { %8329 = vmatmul.mubr.bf16.vlgmr.msra.gmra.mrb[0].mxu0 %v9369_v10 }
  0xa5   : > { %8361 = vmatpush3.bf16.msra.mxu0 %v9370_v9  ;;  %8332 = vmatprep.mubr.bf16.mxu0 %v9371_v11  ;;  %v1846_v9 = vld [vmem:[%s12261_s10 + $0x4] sm:$0xf] }
  0xa6   : > { %8362 = vmatprep.subr.bf16.mxu0 %v9373_v12  ;;  %3374 = vperm.xlu1 %9359, %v7856_v49  }
  0xa7   : > { %3362 = vperm.xlu0 %9358, %v7855_v50   ;;  %v1866_v50 = vld [vmem:[%s12261_s10 + $0x54] sm:$0xf] }
  0xa9   : > { %8363 = vmatpush3.bf16.msra.mxu0 %v9373_v12  ;;  %v1847_v12 = vld [vmem:[%s12261_s10 + $0x8] sm:$0xf] }
  0xaa   : > { %8364 = vmatprep.subr.bf16.mxu0 %v9376_v13  ;;  %3398 = vperm.xlu1 %9359, %v7858_v52   ;;  %v1865_v52 = vld [vmem:[%s12261_s10 + $0x50] sm:$0xf] }
  0xab   : > { %3386 = vperm.xlu0 %9358, %v7857_v53  }
  0xac   : > { %8333 = vmatmul.mubr.bf16.gmra.mrb[4].mxu0 %v9372_v14 }
  0xad   : > { %8336 = vmatprep.mubr.bf16.mxu0 %v9374_v15  ;;  %8365 = vmatpush3.bf16.msra.mxu0 %v9376_v13  ;;  %v1850_v13 = vld [vmem:[%s12261_s10 + $0x14] sm:$0xf] }
  0xae   : > { %8366 = vmatprep.subr.bf16.mxu0 %v9379_v16  ;;  %3422 = vperm.xlu1 %9359, %v7860_v54   ;;  %v1868_v54 = vld [vmem:[%s12261_s10 + $0x5c] sm:$0xf] }
  0xaf   : > { %3410 = vperm.xlu0 %9358, %v7859_v55   ;;  %v1867_v55 = vld [vmem:[%s12261_s10 + $0x58] sm:$0xf] }
  0xb1   : > { %8367 = vmatpush3.bf16.msra.mxu0 %v9379_v16  ;;  %v1851_v16 = vld [vmem:[%s12261_s10 + $0x18] sm:$0xf] }
  0xb2   : > { %8368 = vmatprep.subr.bf16.mxu0 %v9382_v17  ;;  %3446 = vperm.xlu1 %9359, %v7862_v57  }
  0xb3   : > { %3434 = vperm.xlu0 %9358, %v7861_v58   ;;  %v1870_v58 = vld [vmem:[%s12261_s10 + $0x64] sm:$0xf] }
  0xb4   : > { %8337 = vmatmul.mubr.bf16.gmra.mrb[8].mxu0 %v9375_v18 }
  0xb5   : > { %8340 = vmatprep.mubr.bf16.mxu0 %v9377_v19  ;;  %8369 = vmatpush3.bf16.msra.mxu0 %v9382_v17  ;;  %v1854_v17 = vld [vmem:[%s12261_s10 + $0x24] sm:$0xf] }
  0xb6   : > { %8370 = vmatprep.subr.bf16.mxu0 %v9385_v20  ;;  %3470 = vperm.xlu1 %9359, %v7864_v59  }
  0xb7   : > { %3458 = vperm.xlu0 %9358, %v7863_v60   ;;  %v1869_v60 = vld [vmem:[%s12261_s10 + $0x60] sm:$0xf] }
  0xb9   : > { %8371 = vmatpush3.bf16.msra.mxu0 %v9385_v20  ;;  %v1856_v20 = vld [vmem:[%s12261_s10 + $0x2c] sm:$0xf] }
  0xba   : > { %8372 = vmatprep.subr.bf16.mxu0 %v9388_v21  ;;  %3494 = vperm.xlu1 %9359, %v7866_v61  }
  0xbb   : > { %3482 = vperm.xlu0 %9358, %v7865_v62   ;;  %v1872_v62 = vld [vmem:[%s12261_s10 + $0x6c] sm:$0xf] }
  0xbc   : > { %8341 = vmatmul.mubr.bf16.gmra.mrb[12].mxu0 %v9378_v22 }
  0xbd   : > { %8344 = vmatprep.mubr.bf16.mxu0 %v9380_v23  ;;  %8373 = vmatpush3.bf16.msra.mxu0 %v9388_v21  ;;  %v1855_v21 = vld [vmem:[%s12261_s10 + $0x28] sm:$0xf] }
  0xbe   : > { %8374 = vmatprep.subr.bf16.mxu0 %v9391_v24  ;;  %3518 = vperm.xlu1 %9359, %v7868_v63   ;;  %v1871_v63 = vld [vmem:[%s12261_s10 + $0x68] sm:$0xf] }
  0xbf   : > { %3506 = vperm.xlu0 %9358, %v7867_v0  }
  0xc1   : > { %8375 = vmatpush3.bf16.msra.mxu0 %v9391_v24 }
  0xc2   : > { %8408 = vmatprep.subr.bf16.mxu0 %v9392_v32  ;;  %3542 = vperm.xlu1 %9359, %v7870_v1  }
  0xc3   : > { %3530 = vperm.xlu0 %9358, %v7869_v2   ;;  %v1874_v2 = vld [vmem:[%s12261_s10 + $0x74] sm:$0xf] }
  0xc4   : > { %8345 = vmatmul.mubr.bf16.gmra.mrb[16].mxu0 %v9381_v25 }
  0xc5   : > { %8348 = vmatprep.mubr.bf16.mxu0 %v9383_v26 }
  0xc6   : > { %3566 = vperm.xlu1 %9359, %v7872_v3  }
  0xca   : > { %3590 = vperm.xlu1 %9359, %v7874_v5  }
  0xcc   : > { %8349 = vmatmul.mubr.bf16.gmra.mrb[20].mxu0 %v9384_v27 }
  0xcd   : > { %8352 = vmatprep.mubr.bf16.mxu0 %v9386_v28 }
  0xce   : > { %3614 = vperm.xlu1 %9359, %v7876_v7   ;;  %v1875_v7 = vld [vmem:[%s12261_s10 + $0x78] sm:$0xf] }
  0xd2   : > { %1891 = vperm.xlu1 %9359, %v1846_v9  }
  0xd4   : > { %8353 = vmatmul.mubr.bf16.gmra.mrb[24].mxu0 %v9387_v29 }
  0xd5   : > { %8356 = vmatprep.mubr.bf16.mxu0 %v9389_v30 }
  0xdc   : > { %8357 = vmatmul.mubr.bf16.gmra.mrb[28].mxu0 %v9390_v31 }
  0xdd   : > { %8376 = vmatprep.mubr.bf16.mxu0 %v9957_v4  ;;  %v7871_v4 = vld [vmem:[%s12261_s10 + $0x168] sm:$0xf] }
  0xde   : > { %3554 = vperm.xlu0 %9358, %v7871_v4   ;;  %v1873_v4 = vld [vmem:[%s12261_s10 + $0x70] sm:$0xf] }
  0xe2   : > { %3578 = vperm.xlu0 %9358, %v7873_v6   ;;  %v1876_v6 = vld [vmem:[%s12261_s10 + $0x7c] sm:$0xf] }
  0xe4   : > { %8377 = vmatmul.mubr.bf16.vlgmr.msra.gmra.mrb[32].mxu0 %v9369_v10  ;;  %v1845_v10 = vld [vmem:[%s12261_s10] sm:$0xf] }
  0xe5   : > { %8380 = vmatprep.mubr.bf16.mxu0 %v9371_v11  ;;  %8409 = vmatpush3.bf16.msra.mxu0 %v9392_v32  ;;  %v1848_v11 = vld [vmem:[%s12261_s10 + $0xc] sm:$0xf] }
  0xe6   : > { %8410 = vmatprep.subr.bf16.mxu0 %v9393_v33  ;;  %3602 = vperm.xlu0 %9358, %v7875_v8   ;;  %v9400_v8 = vld [vmem:[#allocation8 + $0x40] sm:$0xff]  }
  0xe7   : > { %1915 = vperm.xlu1 %9359, %v1848_v11  }
  0xe9   : > { %8411 = vmatpush3.bf16.msra.mxu0 %v9393_v33 }
  0xea   : > { %8412 = vmatprep.subr.bf16.mxu0 %v9394_v34  ;;  %1879 = vperm.xlu0 %9358, %v1845_v10  }
  0xeb   : > { %1939 = vperm.xlu1 %9359, %v1850_v13  }
  0xec   : > { %8381 = vmatmul.mubr.bf16.gmra.mrb[36].mxu0 %v9372_v14  ;;  %v1849_v14 = vld [vmem:[%s12261_s10 + $0x10] sm:$0xf] }
  0xed   : > { %8384 = vmatprep.mubr.bf16.mxu0 %v9374_v15  ;;  %8413 = vmatpush3.bf16.msra.mxu0 %v9394_v34  ;;  %v1852_v15 = vld [vmem:[%s12261_s10 + $0x1c] sm:$0xf] }
  0xee   : > { %8414 = vmatprep.subr.bf16.mxu0 %v9395_v35  ;;  %1903 = vperm.xlu0 %9358, %v1847_v12  }
  0xef   : > { %1963 = vperm.xlu1 %9359, %v1852_v15  }
  0xf1   : > { %8415 = vmatpush3.bf16.msra.mxu0 %v9395_v35  ;;  %v1860_v35 = vld [vmem:[%s12261_s10 + $0x3c] sm:$0xf] }
  0xf2   : > { %8416 = vmatprep.subr.bf16.mxu0 %v9396_v41  ;;  %1927 = vperm.xlu0 %9358, %v1849_v14  }
  0xf3   : > { %1987 = vperm.xlu1 %9359, %v1854_v17  }
  0xf4   : > { %8385 = vmatmul.mubr.bf16.gmra.mrb[40].mxu0 %v9375_v18  ;;  %v1853_v18 = vld [vmem:[%s12261_s10 + $0x20] sm:$0xf] }
  0xf5   : > { %8388 = vmatprep.mubr.bf16.mxu0 %v9377_v19  ;;  %8417 = vmatpush3.bf16.msra.mxu0 %v9396_v41  ;;  %v10141_v19 = vld [vmem:[%s12253_s2] ss:$0 sm:$0xff]  ;;  %v1862_v41 = vld [vmem:[%s12261_s10 + $0x44] sm:$0xf] }
  0xf6   : > { %8418 = vmatprep.subr.bf16.mxu0 %v9397_v46  ;;  %1951 = vperm.xlu0 %9358, %v1851_v16  }
  0xf7   : > { %2011 = vperm.xlu1 %9359, %v1856_v20  }
  0xf9   : > { %8419 = vmatpush3.bf16.msra.mxu0 %v9397_v46  ;;  %v1864_v46 = vld [vmem:[%s12261_s10 + $0x4c] sm:$0xf] }
  0xfa   : > { %8420 = vmatprep.subr.bf16.mxu0 %v9398_v51  ;;  %1975 = vperm.xlu0 %9358, %v1853_v18  }
  0xfc   : > { %8389 = vmatmul.mubr.bf16.gmra.mrb[44].mxu0 %v9378_v22 }
  0xfd   : > { %8392 = vmatprep.mubr.bf16.mxu0 %v9380_v23  ;;  %8421 = vmatpush3.bf16.msra.mxu0 %v9398_v51  ;;  %v10152_v23 = vld [vmem:[%s12253_s2 + $0x1] ss:$0 sm:$0xff] }
  0xfe   : > { %8422 = vmatprep.subr.bf16.mxu0 %v9399_v56  ;;  %1999 = vperm.xlu0 %9358, %v1855_v21  }
 0x101   : > { %8423 = vmatpush3.bf16.msra.mxu0 %v9399_v56 }
 0x102   : > { %8456 = vmatprep.subr.bf16.mxu0 %v9400_v8 }
 0x104   : > { %8393 = vmatmul.mubr.bf16.gmra.mrb[48].mxu0 %v9381_v25 }
 0x105   : > { %8396 = vmatprep.mubr.bf16.mxu0 %v9383_v26 }
 0x10c   : > { %8397 = vmatmul.mubr.bf16.gmra.mrb[52].mxu0 %v9384_v27  ;;  %v1858_v27 = vld [vmem:[%s12261_s10 + $0x34] sm:$0xf] }
 0x10d   : > { %8400 = vmatprep.mubr.bf16.mxu0 %v9386_v28  ;;  %v1857_v28 = vld [vmem:[%s12261_s10 + $0x30] sm:$0xf]  ;;  %2035 = vperm.xlu1 %9359, %v1858_v27  }
 0x10e   : > { %2023 = vperm.xlu0 %9358, %v1857_v28  }
 0x111   : > { %2059 = vperm.xlu1 %9359, %v1860_v35  }
 0x112   : > { %2047 = vperm.xlu0 %9358, %v1859_v36  }
 0x114   : > { %8401 = vmatmul.mubr.bf16.gmra.mrb[56].mxu0 %v9387_v29 }
 0x115   : > { %8404 = vmatprep.mubr.bf16.mxu0 %v9389_v30  ;;  %2083 = vperm.xlu1 %9359, %v1862_v41  }
 0x116   : > { %2071 = vperm.xlu0 %9358, %v1861_v43  }
 0x119   : > { %2107 = vperm.xlu1 %9359, %v1864_v46  }
 0x11a   : > { %2095 = vperm.xlu0 %9358, %v1863_v47  }
 0x11c   : > { %8405 = vmatmul.mubr.bf16.gmra.mrb[60].mxu0 %v9390_v31 }
 0x11d   : > { %2131 = vperm.xlu1 %9359, %v1866_v50  }
 0x11e   : > { %2119 = vperm.xlu0 %9358, %v1865_v52  }
 0x121   : > { %2155 = vperm.xlu1 %9359, %v1868_v54  }
 0x122   : > { %2143 = vperm.xlu0 %9358, %v1867_v55  }
 0x125   : > { %2179 = vperm.xlu1 %9359, %v1870_v58  }
 0x126   : > { %2167 = vperm.xlu0 %9358, %v1869_v60  }
 0x129   : > { %2203 = vperm.xlu1 %9359, %v1872_v62  }
 0x12a   : > { %2191 = vperm.xlu0 %9358, %v1871_v63  }
 0x12d   : > { %2227 = vperm.xlu1 %9359, %v1874_v2  }
 0x12e   : > { %2215 = vperm.xlu0 %9358, %v1873_v4  }
 0x131   : > { %2251 = vperm.xlu1 %9359, %v1876_v6  }
 0x132   : > { %2239 = vperm.xlu0 %9358, %v1875_v7  }
 0x177   : > { %v8330_v22 = vpop.f32.mrb[0].mxu0 }
 0x178   : > { %v805_v24 = vmul.f32 %v8330_v22, %v10141_v19  ;;  %v10155_v25 = vpop.f32.mrb[1].mxu0  ;;  %v10283_v22 = vld [vmem:[%s12253_s2 + $0x2] ss:$0 sm:$0xff] }
 0x179   : > { %v8331_v26 = vpop.f32.mrb[2].mxu0 }
 0x17a   : > { %v842_v29 = vadd.f32 %v10152_v23, %v805_v24  ;;  %v806_v30 = vmul.f32 %v8331_v26, %v10141_v19  ;;  %v10165_v31 = vpop.f32.mrb[3].mxu0  ;;  %v10288_v26 = vld [vmem:[%s12253_s2 + $0x3] ss:$0 sm:$0xff] }
 0x17c   : > { %v874_v32 = vmul.f32 0.1, %v842_v29  ;;  %v843_v33 = vadd.f32 %v10152_v23, %v806_v30 }
 0x17e   : > { %v875_v34 = vmul.f32 0.1, %v843_v33  ;;  %v906_v38 = vmax.f32 %v842_v29, %v874_v32 }
 0x17f   : > { %v10174_v37 = vpop.f32.mrb[4].mxu0 }
 0x180   : > { %v907_v39 = vmax.f32 %v843_v33, %v875_v34  ;;  %v10176_v40 = vpop.f32.mrb[5].mxu0 }
 0x181   : > { %v10181_v42 = vpop.f32.mrb[6].mxu0 }
 0x182   : > { %v10186_v44 = vpack.c.bf16 %v907_v39, %v906_v38  ;;  %v10188_v45 = vpop.f32.mrb[7].mxu0 }
 0x184   : > { %12388 = vst [vmem:[#allocation24_spill] sm:$0xff] %v10186_v44 }
 0x187   : > { %v10196_v48 = vpop.f32.mrb[8].mxu0 }
 0x188   : > { %v10198_v49 = vpop.f32.mrb[9].mxu0 }
 0x189   : > { %v10203_v51 = vpop.f32.mrb[10].mxu0 }
 0x18a   : > { %v10208_v53 = vpop.f32.mrb[11].mxu0 }
 0x18f   : > { %v10216_v56 = vpop.f32.mrb[12].mxu0 }
 0x190   : > { %v10218_v57 = vpop.f32.mrb[13].mxu0 }
 0x191   : > { %v10223_v59 = vpop.f32.mrb[14].mxu0 }
 0x192   : > { %v10228_v61 = vpop.f32.mrb[15].mxu0 }
 0x197   : > { %v10236_v0 = vpop.f32.mrb[16].mxu0 }
 0x198   : > { %v10238_v1 = vpop.f32.mrb[17].mxu0 }
 0x199   : > { %v10243_v3 = vpop.f32.mrb[18].mxu0 }
 0x19a   : > { %v10248_v5 = vpop.f32.mrb[19].mxu0 }
 0x19f   : > { %v10256_v9 = vpop.f32.mrb[20].mxu0 }
 0x1a0   : > { %v10258_v10 = vpop.f32.mrb[21].mxu0 }
 0x1a1   : > { %v10260_v11 = vpop.f32.mrb[22].mxu0 }
 0x1a2   : > { %v10262_v12 = vpop.f32.mrb[23].mxu0 }
 0x1a7   : > { %v10264_v13 = vpop.f32.mrb[24].mxu0 }
 0x1a8   : > { %v10266_v14 = vpop.f32.mrb[25].mxu0 }
 0x1a9   : > { %v10268_v15 = vpop.f32.mrb[26].mxu0 }
 0x1aa   : > { %v10270_v16 = vpop.f32.mrb[27].mxu0 }
 0x1af   : > { %v10272_v17 = vpop.f32.mrb[28].mxu0 }
 0x1b0   : > { %v10274_v18 = vpop.f32.mrb[29].mxu0 }
 0x1b1   : > { %v10276_v20 = vpop.f32.mrb[30].mxu0 }
 0x1b2   : > { %v10278_v21 = vpop.f32.mrb[31].mxu0 }
 0x1b7   : > { %v8378_v24 = vpop.f32.mrb[32].mxu0 }
 0x1b8   : > { %v1200_v27 = vmul.f32 %v8378_v24, %v10283_v22  ;;  %v1066_v28 = vpop.f32.mrb[33].mxu0 }
 0x1b9   : > { %v1198_v29 = vmul.f32 %v10283_v22, %v1066_v28  ;;  %v8379_v30 = vpop.f32.mrb[34].mxu0 }
 0x1ba   : > { %v1237_v32 = vadd.f32 %v10288_v26, %v1200_v27  ;;  %v1201_v33 = vmul.f32 %v8379_v30, %v10283_v22  ;;  %v1069_v34 = vpop.f32.mrb[35].mxu0 }
 0x1bb   : > { %v1235_v35 = vadd.f32 %v10288_v26, %v1198_v29  ;;  %v1199_v36 = vmul.f32 %v10283_v22, %v1069_v34 }
 0x1bc   : > { %v1269_v38 = vmul.f32 0.1, %v1237_v32  ;;  %v1238_v39 = vadd.f32 %v10288_v26, %v1201_v33 }
 0x1bd   : > { %v1267_v41 = vmul.f32 0.1, %v1235_v35  ;;  %v1236_v43 = vadd.f32 %v10288_v26, %v1199_v36 }
 0x1be   : > { %v1270_v46 = vmul.f32 0.1, %v1238_v39  ;;  %v1301_v52 = vmax.f32 %v1237_v32, %v1269_v38 }
 0x1bf   : > { %v1268_v47 = vmul.f32 0.1, %v1236_v43  ;;  %v8382_v50 = vpop.f32.mrb[36].mxu0  ;;  %v1299_v60 = vmax.f32 %v1235_v35, %v1267_v41 }
 0x1c0   : > { %v1302_v54 = vmax.f32 %v1238_v39, %v1270_v46  ;;  %v1204_v55 = vmul.f32 %v8382_v50, %v10283_v22  ;;  %v1082_v58 = vpop.f32.mrb[37].mxu0 }
 0x1c1   : > { %v1300_v62 = vmax.f32 %v1236_v43, %v1268_v47  ;;  %v1202_v63 = vmul.f32 %v10283_v22, %v1082_v58  ;;  %v8383_v2 = vpop.f32.mrb[38].mxu0 }
 0x1c2   : > { %v10300_v4 = vpack.c.bf16 %v1302_v54, %v1301_v52  ;;  %v1241_v6 = vadd.f32 %v10288_v26, %v1204_v55  ;;  %v1205_v7 = vmul.f32 %v8383_v2, %v10283_v22  ;;  %v1085_v24 = vpop.f32.mrb[39].mxu0 }
 0x1c3   : > { %v1239_v27 = vadd.f32 %v10288_v26, %v1202_v63  ;;  %v1203_v28 = vmul.f32 %v10283_v22, %v1085_v24  ;;  %v10306_v29 = vpack.c.bf16 %v1300_v62, %v1299_v60 }
 0x1c4   : > { %12389 = vst [vmem:[#allocation25_spill] sm:$0xff] %v10300_v4  ;;  %v1273_v30 = vmul.f32 0.1, %v1241_v6  ;;  %v1242_v32 = vadd.f32 %v10288_v26, %v1205_v7 }
 0x1c5   : > { %12390 = vst [vmem:[#allocation26_spill] sm:$0xff] %v10306_v29  ;;  %v1271_v33 = vmul.f32 0.1, %v1239_v27  ;;  %v1240_v34 = vadd.f32 %v10288_v26, %v1203_v28  ;;  %8424 = vmatprep.mubr.bf16.mxu0 %v10306_v29 }
 0x1c6   : > { %v1274_v35 = vmul.f32 0.1, %v1242_v32  ;;  %8425 = vmatmul.mubr.bf16.vlgmr.msra.gmra.mrb[64].mxu0 %v10300_v4  ;;  %v1305_v39 = vmax.f32 %v1241_v6, %v1273_v30 }
 0x1c7   : > { %v1272_v36 = vmul.f32 0.1, %v1240_v34  ;;  %v8386_v38 = vpop.f32.mrb[40].mxu0  ;;  %8457 = vmatpush3.bf16.msra.mxu0 %v9400_v8  ;;  %v1303_v47 = vmax.f32 %v1239_v27, %v1271_v33 }
 0x1c8   : > { %v1306_v41 = vmax.f32 %v1242_v32, %v1274_v35  ;;  %v1208_v43 = vmul.f32 %v8386_v38, %v10283_v22  ;;  %v1098_v46 = vpop.f32.mrb[41].mxu0 }
 0x1c9   : > { %v1304_v50 = vmax.f32 %v1240_v34, %v1272_v36  ;;  %v1206_v52 = vmul.f32 %v10283_v22, %v1098_v46  ;;  %v8387_v54 = vpop.f32.mrb[42].mxu0 }
 0x1ca   : > { %v1245_v55 = vadd.f32 %v10288_v26, %v1208_v43  ;;  %v1209_v58 = vmul.f32 %v8387_v54, %v10283_v22  ;;  %v1101_v60 = vpop.f32.mrb[43].mxu0  ;;  %v10316_v62 = vpack.c.bf16 %v1306_v41, %v1305_v39 }
 0x1cb   : > { %v1243_v63 = vadd.f32 %v10288_v26, %v1206_v52  ;;  %v1207_v8 = vmul.f32 %v10283_v22, %v1101_v60  ;;  %v10320_v2 = vpack.c.bf16 %v1304_v50, %v1303_v47 }
 0x1cc   : > { %12391 = vst [vmem:[#allocation27_spill] sm:$0xff] %v10316_v62  ;;  %v1277_v6 = vmul.f32 0.1, %v1245_v55  ;;  %v1246_v7 = vadd.f32 %v10288_v26, %v1209_v58 }
 0x1cd   : > { %12392 = vst [vmem:[#allocation28_spill] sm:$0xff] %v10320_v2  ;;  %v1275_v24 = vmul.f32 0.1, %v1243_v63  ;;  %v1244_v27 = vadd.f32 %v10288_v26, %v1207_v8  ;;  %8428 = vmatprep.mubr.bf16.mxu0 %v10320_v2 }
 0x1ce   : > { %v1278_v28 = vmul.f32 0.1, %v1246_v7  ;;  %8429 = vmatmul.mubr.bf16.gmra.mrb[68].mxu0 %v10316_v62  ;;  %v1309_v33 = vmax.f32 %v1245_v55, %v1277_v6 }
 0x1cf   : > { %v1276_v30 = vmul.f32 0.1, %v1244_v27  ;;  %v8390_v32 = vpop.f32.mrb[44].mxu0  ;;  %v1307_v38 = vmax.f32 %v1243_v63, %v1275_v24 }
 0x1d0   : > { %v1310_v34 = vmax.f32 %v1246_v7, %v1278_v28  ;;  %v1212_v35 = vmul.f32 %v8390_v32, %v10283_v22  ;;  %v1114_v36 = vpop.f32.mrb[45].mxu0 }
 0x1d1   : > { %v1308_v39 = vmax.f32 %v1244_v27, %v1276_v30  ;;  %v1210_v41 = vmul.f32 %v10283_v22, %v1114_v36  ;;  %v8391_v43 = vpop.f32.mrb[46].mxu0 }
 0x1d2   : > { %v1249_v46 = vadd.f32 %v10288_v26, %v1212_v35  ;;  %v1213_v47 = vmul.f32 %v8391_v43, %v10283_v22  ;;  %v1117_v50 = vpop.f32.mrb[47].mxu0  ;;  %v10330_v52 = vpack.c.bf16 %v1310_v34, %v1309_v33 }
 0x1d3   : > { %v1247_v54 = vadd.f32 %v10288_v26, %v1210_v41  ;;  %v1211_v55 = vmul.f32 %v10283_v22, %v1117_v50  ;;  %v10334_v58 = vpack.c.bf16 %v1308_v39, %v1307_v38 }
 0x1d4   : > { %12393 = vst [vmem:[#allocation29_spill] sm:$0xff] %v10330_v52  ;;  %v1281_v60 = vmul.f32 0.1, %v1249_v46  ;;  %v1250_v63 = vadd.f32 %v10288_v26, %v1213_v47 }
 0x1d5   : > { %12394 = vst [vmem:[#allocation30_spill] sm:$0xff] %v10334_v58  ;;  %v1279_v8 = vmul.f32 0.1, %v1247_v54  ;;  %v1248_v6 = vadd.f32 %v10288_v26, %v1211_v55  ;;  %8432 = vmatprep.mubr.bf16.mxu0 %v10334_v58 }
 0x1d6   : > { %v1282_v7 = vmul.f32 0.1, %v1250_v63  ;;  %8433 = vmatmul.mubr.bf16.gmra.mrb[72].mxu0 %v10330_v52  ;;  %v1313_v28 = vmax.f32 %v1249_v46, %v1281_v60  ;;  %v803_v52 = vmul.f32 %v10141_v19, %v10155_v25 }
 0x1d7   : > { %v1280_v24 = vmul.f32 0.1, %v1248_v6  ;;  %v8394_v27 = vpop.f32.mrb[48].mxu0  ;;  %v1311_v34 = vmax.f32 %v1247_v54, %v1279_v8 }
 0x1d8   : > { %v1314_v30 = vmax.f32 %v1250_v63, %v1282_v7  ;;  %v1216_v32 = vmul.f32 %v8394_v27, %v10283_v22  ;;  %v1130_v33 = vpop.f32.mrb[49].mxu0  ;;  %v10354_v27 = vpop.permute.xlu1 %3266  ;;  %v10397_v25 = vadd.f32 %v10152_v23, %v803_v52 }
 0x1d9   : > { %v1312_v35 = vmax.f32 %v1248_v6, %v1280_v24  ;;  %v1214_v36 = vmul.f32 %v10283_v22, %v1130_v33  ;;  %v8395_v38 = vpop.f32.mrb[50].mxu0 }
 0x1da   : > { %v1253_v39 = vadd.f32 %v10288_v26, %v1216_v32  ;;  %v1217_v41 = vmul.f32 %v8395_v38, %v10283_v22  ;;  %v1133_v43 = vpop.f32.mrb[51].mxu0  ;;  %v10344_v47 = vpack.c.bf16 %v1314_v30, %v1313_v28 }
 0x1db   : > { %v1251_v50 = vadd.f32 %v10288_v26, %v1214_v36  ;;  %v1215_v46 = vmul.f32 %v10283_v22, %v1133_v43  ;;  %v10348_v55 = vpack.c.bf16 %v1312_v35, %v1311_v34  ;;  %v10357_v34 = vpop.permute.xlu0 %3242 }
 0x1dc   : > { %12395 = vst [vmem:[#allocation31_spill] sm:$0xff] %v10344_v47  ;;  %v1285_v60 = vmul.f32 0.1, %v1253_v39  ;;  %v1254_v54 = vadd.f32 %v10288_v26, %v1217_v41 }
 0x1dd   : > { %12396 = vst [vmem:[#allocation32_spill] sm:$0xff] %v10348_v55  ;;  %v1283_v63 = vmul.f32 0.1, %v1251_v50  ;;  %v1252_v8 = vadd.f32 %v10288_v26, %v1215_v46  ;;  %8436 = vmatprep.mubr.bf16.mxu0 %v10348_v55 }
 0x1de   : > { %v1286_v6 = vmul.f32 0.1, %v1254_v54  ;;  %8437 = vmatmul.mubr.bf16.gmra.mrb[76].mxu0 %v10344_v47  ;;  %v1317_v28 = vmax.f32 %v1253_v39, %v1285_v60 }
 0x1df   : > { %v1284_v7 = vmul.f32 0.1, %v1252_v8  ;;  %v8398_v24 = vpop.f32.mrb[52].mxu0  ;;  %v1315_v35 = vmax.f32 %v1251_v50, %v1283_v63 }
 0x1e0   : > { %v1318_v30 = vmax.f32 %v1254_v54, %v1286_v6  ;;  %v1220_v32 = vmul.f32 %v8398_v24, %v10283_v22  ;;  %v1146_v33 = vpop.f32.mrb[53].mxu0 }
 0x1e1   : > { %v1316_v36 = vmax.f32 %v1252_v8, %v1284_v7  ;;  %v1218_v38 = vmul.f32 %v10283_v22, %v1146_v33  ;;  %v8399_v41 = vpop.f32.mrb[54].mxu0  ;;  %v10371_v7 = vpop.permute.xlu1 %3278 }
 0x1e2   : > { %v1257_v43 = vadd.f32 %v10288_v26, %v1220_v32  ;;  %v1221_v46 = vmul.f32 %v8399_v41, %v10283_v22  ;;  %v1149_v44 = vpop.f32.mrb[55].mxu0  ;;  %v10362_v55 = vpack.c.bf16 %v1318_v30, %v1317_v28  ;;  %v10374_v28 = vpop.permute.xlu0 %3254 }
 0x1e3   : > { %v1255_v39 = vadd.f32 %v10288_v26, %v1218_v38  ;;  %v1219_v60 = vmul.f32 %v10283_v22, %v1149_v44  ;;  %v10366_v54 = vpack.c.bf16 %v1316_v36, %v1315_v35 }
 0x1e4   : > { %12397 = vst [vmem:[#allocation33_spill] sm:$0xff] %v10362_v55  ;;  %v1289_v6 = vmul.f32 0.1, %v1257_v43  ;;  %v1258_v50 = vadd.f32 %v10288_v26, %v1221_v46 }
 0x1e5   : > { %12398 = vst [vmem:[#allocation34_spill] sm:$0xff] %v10366_v54  ;;  %v1287_v63 = vmul.f32 0.1, %v1255_v39  ;;  %v1256_v8 = vadd.f32 %v10288_v26, %v1219_v60  ;;  %8440 = vmatprep.mubr.bf16.mxu0 %v10366_v54 }
 0x1e6   : > { %v1290_v24 = vmul.f32 0.1, %v1258_v50  ;;  %8441 = vmatmul.mubr.bf16.gmra.mrb[80].mxu0 %v10362_v55  ;;  %v1321_v44 = vmax.f32 %v1257_v43, %v1289_v6 }
 0x1e7   : > { %v1288_v30 = vmul.f32 0.1, %v1256_v8  ;;  %v8402_v32 = vpop.f32.mrb[56].mxu0  ;;  %v1319_v38 = vmax.f32 %v1255_v39, %v1287_v63  ;;  %v10388_v39 = vpop.permute.xlu1 %3302 }
 0x1e8   : > { %v1322_v33 = vmax.f32 %v1258_v50, %v1290_v24  ;;  %v1224_v35 = vmul.f32 %v8402_v32, %v10283_v22  ;;  %v1162_v36 = vpop.f32.mrb[57].mxu0  ;;  %v10391_v24 = vpop.permute.xlu0 %3290 }
 0x1e9   : > { %v1320_v41 = vmax.f32 %v1256_v8, %v1288_v30  ;;  %v1222_v46 = vmul.f32 %v10283_v22, %v1162_v36  ;;  %v8403_v60 = vpop.f32.mrb[58].mxu0 }
 0x1ea   : > { %v1261_v54 = vadd.f32 %v10288_v26, %v1224_v35  ;;  %v1225_v47 = vmul.f32 %v8403_v60, %v10283_v22  ;;  %v1165_v58 = vpop.f32.mrb[59].mxu0  ;;  %v10380_v55 = vpack.c.bf16 %v1322_v33, %v1321_v44  ;;  %v807_v60 = vmul.f32 %v10141_v19, %v10176_v40 }
 0x1eb   : > { %v1259_v43 = vadd.f32 %v10288_v26, %v1222_v46  ;;  %v1223_v6 = vmul.f32 %v10283_v22, %v1165_v58  ;;  %v10386_v50 = vpack.c.bf16 %v1320_v41, %v1319_v38  ;;  %v804_v58 = vmul.f32 %v10141_v19, %v10165_v31  ;;  %v10407_v2 = vpop.permute.xlu1 %3326 }
 0x1ec   : > { %12399 = vst [vmem:[#allocation35_spill] sm:$0xff] %v10380_v55  ;;  %v1293_v63 = vmul.f32 0.1, %v1261_v54  ;;  %v1262_v8 = vadd.f32 %v10288_v26, %v1225_v47  ;;  %v809_v47 = vmul.f32 %v10174_v37, %v10141_v19  ;;  %v810_v31 = vmul.f32 %v10181_v42, %v10141_v19 }
 0x1ed   : > { %12400 = vst [vmem:[#allocation36_spill] sm:$0xff] %v10386_v50  ;;  %v1291_v30 = vmul.f32 0.1, %v1259_v43  ;;  %v1260_v32 = vadd.f32 %v10288_v26, %v1223_v6  ;;  %8444 = vmatprep.mubr.bf16.mxu0 %v10386_v50  ;;  %v808_v40 = vmul.f32 %v10141_v19, %v10188_v45  ;;  %v10433_v45 = vmul.f32 0.1, %v10397_v25 }
 0x1ee   : > { %v1294_v44 = vmul.f32 0.1, %v1262_v8  ;;  %8445 = vmatmul.mubr.bf16.gmra.mrb[84].mxu0 %v10380_v55  ;;  %v1325_v36 = vmax.f32 %v1261_v54, %v1293_v63 }
 0x1ef   : > { %v1292_v33 = vmul.f32 0.1, %v1260_v32  ;;  %v8406_v35 = vpop.f32.mrb[60].mxu0  ;;  %v1323_v6 = vmax.f32 %v1259_v43, %v1291_v30 }
 0x1f0   : > { %v1326_v38 = vmax.f32 %v1262_v8, %v1294_v44  ;;  %v1228_v41 = vmul.f32 %v8406_v35, %v10283_v22  ;;  %v1178_v46 = vpop.f32.mrb[61].mxu0  ;;  %v10415_v44 = vpop.permute.xlu0 %3314  ;;  %v10425_v35 = vadd.f32 %v10152_v23, %v804_v58  ;;  %v10443_v58 = vadd.f32 %v10152_v23, %v808_v40 }
 0x1f1   : > { %v1324_v50 = vmax.f32 %v1260_v32, %v1292_v33  ;;  %v1226_v52 = vmul.f32 %v10283_v22, %v1178_v46  ;;  %v8407_v55 = vpop.f32.mrb[62].mxu0 }
 0x1f2   : > { %v1265_v37 = vadd.f32 %v10288_v26, %v1228_v41  ;;  %v1229_v54 = vmul.f32 %v8407_v55, %v10283_v22  ;;  %v1181_v63 = vpop.f32.mrb[63].mxu0  ;;  %v10413_v8 = vpack.c.bf16 %v1326_v38, %v1325_v36  ;;  %v10428_v55 = vadd.f32 %v10152_v23, %v809_v47 }
 0x1f3   : > { %v1263_v43 = vadd.f32 %v10288_v26, %v1226_v52  ;;  %v1227_v30 = vmul.f32 %v10283_v22, %v1181_v63  ;;  %v10421_v32 = vpack.c.bf16 %v1324_v50, %v1323_v6  ;;  %v10436_v22 = vadd.f32 %v10152_v23, %v807_v60 }
 0x1f4   : > { %12401 = vst [vmem:[#allocation37_spill] sm:$0xff] %v10413_v8  ;;  %v1297_v33 = vmul.f32 0.1, %v1265_v37  ;;  %v1266_v42 = vadd.f32 %v10288_v26, %v1229_v54  ;;  %v10439_v50 = vadd.f32 %v10152_v23, %v810_v31  ;;  %v811_v47 = vmul.f32 %v10141_v19, %v10198_v49  ;;  %v10453_v54 = vpop.permute.xlu1 %3350  ;;  %v10455_v63 = vpop.permute.xlu0 %3338 }
 0x1f5   : > { %12402 = vst [vmem:[#allocation38_spill] sm:$0xff] %v10421_v32  ;;  %v1295_v36 = vmul.f32 0.1, %v1263_v43  ;;  %v1264_v38 = vadd.f32 %v10288_v26, %v1227_v30  ;;  %8448 = vmatprep.mubr.bf16.mxu0 %v10421_v32  ;;  %v813_v26 = vmul.f32 %v10196_v48, %v10141_v19  ;;  %v814_v60 = vmul.f32 %v10203_v51, %v10141_v19 }
 0x1f6   : > { %v1298_v41 = vmul.f32 0.1, %v1266_v42  ;;  %8449 = vmatmul.mubr.bf16.gmra.mrb[88].mxu0 %v10413_v8  ;;  %v812_v6 = vmul.f32 %v10141_v19, %v10208_v53  ;;  %v1329_v52 = vmax.f32 %v1265_v37, %v1297_v33  ;;  %v10458_v40 = vmul.f32 0.1, %v10425_v35 }
 0x1f7   : > { %v1296_v46 = vmul.f32 0.1, %v1264_v38  ;;  %v10461_v48 = vmul.f32 0.1, %v10428_v55  ;;  %v1327_v49 = vmax.f32 %v1263_v43, %v1295_v36  ;;  %v10464_v32 = vmul.f32 0.1, %v10436_v22 }
 0x1f8   : > { %v1330_v31 = vmax.f32 %v1266_v42, %v1298_v41  ;;  %v817_v51 = vmul.f32 %v10216_v56, %v10141_v19  ;;  %v10471_v37 = vmul.f32 0.1, %v10439_v50  ;;  %v10474_v33 = vadd.f32 %v10152_v23, %v813_v26 }
 0x1f9   : > { %v1328_v30 = vmax.f32 %v1264_v38, %v1296_v46  ;;  %v10477_v42 = vadd.f32 %v10152_v23, %v811_v47  ;;  %v10482_v43 = vmul.f32 0.1, %v10443_v58  ;;  %v10485_v36 = vadd.f32 %v10152_v23, %v814_v60 }
 0x1fa   : > { %v10468_v53 = vpack.c.bf16 %v1330_v31, %v1329_v52  ;;  %v10488_v56 = vadd.f32 %v10152_v23, %v812_v6  ;;  %v904_v38 = vmax.f32 %v10397_v25, %v10433_v45  ;;  %v905_v26 = vmax.f32 %v10425_v35, %v10458_v40  ;;  %v10509_v45 = vpop.permute.xlu1 %3374  ;;  %v10511_v52 = vpop.permute.xlu0 %3362 }
 0x1fb   : > { %v10479_v41 = vpack.c.bf16 %v1328_v30, %v1327_v49  ;;  %v815_v46 = vmul.f32 %v10141_v19, %v10218_v57  ;;  %v908_v60 = vmax.f32 %v10436_v22, %v10464_v32  ;;  %v10502_v6 = vadd.f32 %v10152_v23, %v817_v51 }
 0x1fc   : > { %12403 = vst [vmem:[#allocation39_spill] sm:$0xff] %v10468_v53  ;;  %v818_v25 = vmul.f32 %v10223_v59, %v10141_v19  ;;  %v816_v35 = vmul.f32 %v10141_v19, %v10228_v61  ;;  %v911_v57 = vmax.f32 %v10439_v50, %v10471_v37  ;;  %v10516_v32 = vmul.f32 0.1, %v10474_v33 }
 0x1fd   : > { %12404 = vst [vmem:[#allocation40_spill] sm:$0xff] %v10479_v41  ;;  %8452 = vmatprep.mubr.bf16.mxu0 %v10479_v41  ;;  %v10519_v22 = vmul.f32 0.1, %v10477_v42  ;;  %v821_v59 = vmul.f32 %v10236_v0, %v10141_v19  ;;  %v909_v61 = vmax.f32 %v10443_v58, %v10482_v43  ;;  %v883_v31 = vmul.f32 0.1, %v10485_v36 }
 0x1fe   : > { %8453 = vmatmul.mubr.bf16.gmra.mrb[92].mxu0 %v10468_v53  ;;  %v881_v40 = vmul.f32 0.1, %v10488_v56  ;;  %v819_v49 = vmul.f32 %v10141_v19, %v10238_v1  ;;  %v852_v50 = vadd.f32 %v10152_v23, %v815_v46  ;;  %v822_v30 = vmul.f32 %v10243_v3, %v10141_v19  ;;  %v10559_v41 = vpop.permute.xlu1 %3398 }
 0x1ff   : > { %v820_v51 = vmul.f32 %v10141_v19, %v10248_v5  ;;  %v825_v0 = vmul.f32 %v10256_v9, %v10141_v19  ;;  %v10537_v58 = vmul.f32 0.1, %v10502_v6  ;;  %v10540_v37 = vadd.f32 %v10152_v23, %v818_v25 }
 0x200   : > { %v853_v43 = vadd.f32 %v10152_v23, %v816_v35  ;;  %v824_v1 = vmul.f32 %v10141_v19, %v10262_v12  ;;  %v914_v3 = vmax.f32 %v10474_v33, %v10516_v32  ;;  %v912_v5 = vmax.f32 %v10477_v42, %v10519_v22  ;;  %v10561_v33 = vpop.permute.xlu0 %3386 }
 0x201   : > { %v10550_v46 = vadd.f32 %v10152_v23, %v821_v59  ;;  %v826_v9 = vmul.f32 %v10260_v11, %v10141_v19  ;;  %v915_v25 = vmax.f32 %v10485_v36, %v883_v31  ;;  %v913_v47 = vmax.f32 %v10488_v56, %v881_v40 }
 0x202   : > { %v856_v35 = vadd.f32 %v10152_v23, %v819_v49  ;;  %v823_v12 = vmul.f32 %v10141_v19, %v10258_v10  ;;  %v884_v42 = vmul.f32 0.1, %v852_v50  ;;  %v859_v32 = vadd.f32 %v10152_v23, %v822_v30 }
 0x203   : > { %v857_v22 = vadd.f32 %v10152_v23, %v820_v51  ;;  %v862_v11 = vadd.f32 %v10152_v23, %v825_v0  ;;  %v918_v36 = vmax.f32 %v10502_v6, %v10537_v58  ;;  %v887_v56 = vmul.f32 0.1, %v10540_v37 }
 0x204   : > { %v885_v59 = vmul.f32 0.1, %v853_v43  ;;  %v861_v31 = vadd.f32 %v10152_v23, %v824_v1  ;;  %v890_v10 = vmul.f32 0.1, %v10550_v46  ;;  %v863_v40 = vadd.f32 %v10152_v23, %v826_v9 }
 0x205   : > { %v830_v49 = vmul.f32 %v10268_v15, %v10141_v19  ;;  %v10574_v30 = vpack.c.bf16 %v905_v26, %v904_v38  ;;  %v888_v51 = vmul.f32 0.1, %v856_v35  ;;  %v860_v0 = vadd.f32 %v10152_v23, %v823_v12  ;;  %v10582_v15 = vpop.permute.xlu1 %3422  ;;  %v10584_v38 = vpop.permute.xlu0 %3410 }
 0x206   : > { %v829_v6 = vmul.f32 %v10264_v13, %v10141_v19  ;;  %v828_v58 = vmul.f32 %v10141_v19, %v10270_v16  ;;  %v916_v53 = vmax.f32 %v852_v50, %v884_v42  ;;  %v891_v1 = vmul.f32 0.1, %v859_v32  ;;  %12406 = vst [vmem:[#allocation42_spill] sm:$0xff] %v10584_v38 }
 0x207   : > { %12405 = vst [vmem:[#allocation41_spill] sm:$0xff] %v10574_v30  ;;  %v889_v8 = vmul.f32 0.1, %v857_v22  ;;  %v894_v62 = vmul.f32 0.1, %v862_v11  ;;  %v919_v9 = vmax.f32 %v10540_v37, %v887_v56  ;;  %v917_v29 = vmax.f32 %v853_v43, %v885_v59 }
 0x208   : > { %v893_v4 = vmul.f32 0.1, %v861_v31  ;;  %v10586_v26 = vpack.c.bf16 %v909_v61, %v908_v60  ;;  %v922_v12 = vmax.f32 %v10550_v46, %v890_v10  ;;  %v895_v13 = vmul.f32 0.1, %v863_v40 }
 0x209   : > { %v827_v16 = vmul.f32 %v10141_v19, %v10266_v14  ;;  %v867_v50 = vadd.f32 %v10152_v23, %v830_v49  ;;  %v892_v42 = vmul.f32 0.1, %v860_v0  ;;  %v866_v30 = vadd.f32 %v10152_v23, %v829_v6 }
 0x20a   : > { %12407 = vst [vmem:[#allocation43_spill] sm:$0xff] %v10586_v26  ;;  %v865_v37 = vadd.f32 %v10152_v23, %v828_v58  ;;  %v12408_v43 = vmax.f32 %v10428_v55, %v10461_v48  ;;  %v920_v60 = vmax.f32 %v856_v35, %v888_v51  ;;  %v923_v61 = vmax.f32 %v859_v32, %v891_v1  ;;  %v9401_v1 = vld [vmem:[#allocation8 + $0x48] sm:$0xff]  }
 0x20b   : > { %v921_v59 = vmax.f32 %v857_v22, %v889_v8  ;;  %v926_v46 = vmax.f32 %v862_v11, %v894_v62  ;;  %v925_v10 = vmax.f32 %v861_v31, %v893_v4  ;;  %v10599_v26 = vpack.c.bf16 %v913_v47, %v912_v5  ;;  %v10610_v4 = vpop.permute.xlu1 %3446  ;;  %v10612_v8 = vpop.permute.xlu0 %3434  ;;  %8458 = vmatprep.subr.bf16.mxu0 %v9401_v1 }
 0x20c   : > { %v10597_v56 = vpack.c.bf16 %v911_v57, %v12408_v43  ;;  %v10601_v14 = vpack.c.bf16 %v915_v25, %v914_v3  ;;  %v10603_v49 = vpack.c.bf16 %v917_v29, %v916_v53  ;;  %v927_v38 = vmax.f32 %v863_v40, %v895_v13  ;;  %v9402_v13 = vld [vmem:[#allocation8 + $0x80] sm:$0xff]   ;;  %8459 = vmatpush3.bf16.msra.mxu0 %v9401_v1 }
 0x20d   : > { %12410 = vst [vmem:[#allocation45_spill] sm:$0xff] %v10599_v26  ;;  %v864_v6 = vadd.f32 %v10152_v23, %v827_v16  ;;  %v899_v58 = vmul.f32 0.1, %v867_v50  ;;  %v834_v55 = vmul.f32 %v10276_v20, %v10141_v19  ;;  %v924_v48 = vmax.f32 %v860_v0, %v892_v42  ;;  %8552 = vmatprep.subr.bf16.mxu1 %v9402_v13 }
 0x20e   : > { %12409 = vst [vmem:[#allocation44_spill] sm:$0xff] %v10597_v56  ;;  %12411 = vst [vmem:[#allocation46_spill] sm:$0xff] %v10601_v14  ;;  %v898_v57 = vmul.f32 0.1, %v866_v30  ;;  %v897_v35 = vmul.f32 0.1, %v865_v37  ;;  %v832_v62 = vmul.f32 %v10141_v19, %v10278_v21  ;;  %v833_v29 = vmul.f32 %v10272_v17, %v10141_v19  ;;  %8553 = vmatpush3.bf16.msra.mxu1 %v9402_v13 }
 0x20f   : > { %12412 = vst [vmem:[#allocation47_spill] sm:$0xff] %v10603_v49  ;;  %v10616_v53 = vpack.c.bf16 %v919_v9, %v918_v36  ;;  %v10618_v47 = vpack.c.bf16 %v921_v59, %v920_v60  ;;  %v10620_v3 = vpack.c.bf16 %v923_v61, %v922_v12  ;;  %v831_v20 = vmul.f32 %v10141_v19, %v10274_v18  ;;  %v10632_v51 = vpop.permute.xlu1 %3470  ;;  %v10634_v0 = vpop.permute.xlu0 %3458  ;;  %v9404_v61 = vld [vmem:[#allocation8 + $0x88] sm:$0xff]  }
 0x210   : > { %v10624_v5 = vpack.c.bf16 %v925_v10, %v924_v48  ;;  %v896_v25 = vmul.f32 0.1, %v864_v6  ;;  %v931_v21 = vmax.f32 %v867_v50, %v899_v58  ;;  %v871_v32 = vadd.f32 %v10152_v23, %v834_v55  ;;  %8554 = vmatprep.subr.bf16.mxu1 %v9404_v61  ;;  %v9406_v58 = vld [vmem:[#allocation8 + $0x90] sm:$0xff]  }
 0x211   : > { %12413 = vst [vmem:[#allocation48_spill] sm:$0xff] %v10616_v53  ;;  %12414 = vst [vmem:[#allocation49_spill] sm:$0xff] %v10618_v47  ;;  %v10627_v22 = vpack.c.bf16 %v927_v38, %v926_v46  ;;  %v869_v11 = vadd.f32 %v10152_v23, %v832_v62  ;;  %v930_v17 = vmax.f32 %v866_v30, %v898_v57  ;;  %v9405_v46 = vld [vmem:[#allocation8 + $0x58] sm:$0xff]   ;;  %v9407_v57 = vld [vmem:[#allocation8 + $0x60] sm:$0xff]  }
 0x212   : > { %12415 = vst [vmem:[#allocation50_spill] sm:$0xff] %v10620_v3  ;;  %12416 = vst [vmem:[#allocation51_spill] sm:$0xff] %v10624_v5  ;;  %v929_v36 = vmax.f32 %v865_v37, %v897_v35  ;;  %v870_v31 = vadd.f32 %v10152_v23, %v833_v29  ;;  %v868_v40 = vadd.f32 %v10152_v23, %v831_v20  ;;  %v903_v18 = vmul.f32 0.1, %v871_v32  ;;  %v9403_v23 = vld [vmem:[#allocation8 + $0x50] sm:$0xff]   ;;  %v9408_v35 = vld [vmem:[#allocation8 + $0x98] sm:$0xff]  }
 0x213   : > { %12417 = vst [vmem:[#allocation52_spill] sm:$0xff] %v10627_v22  ;;  %v928_v19 = vmax.f32 %v864_v6, %v896_v25  ;;  %v10636_v9 = vpack.c.bf16 %v931_v21, %v930_v17  ;;  %v901_v12 = vmul.f32 0.1, %v869_v11  ;;  %v10640_v37 = vpop.permute.xlu1 %3494  ;;  %v10642_v43 = vpop.permute.xlu0 %3482  ;;  %8460 = vmatprep.subr.bf16.mxu0 %v9403_v23  ;;  %8555 = vmatpush3.bf16.msra.mxu1 %v9404_v61  ;;  %v9409_v62 = vld [vmem:[#allocation8 + $0x68] sm:$0xff]   ;;  %v9410_v25 = vld [vmem:[#allocation8 + $0xa0] sm:$0xff]   ;;  %v9411_v21 = vld [vmem:[#allocation8 + $0x70] sm:$0xff]  }
 0x214   : > { %v902_v38 = vmul.f32 0.1, %v870_v31  ;;  %v900_v30 = vmul.f32 0.1, %v868_v40  ;;  %v935_v50 = vmax.f32 %v871_v32, %v903_v18  ;;  %8461 = vmatpush3.bf16.msra.mxu0 %v9403_v23  ;;  %8556 = vmatprep.subr.bf16.mxu1 %v9406_v58  ;;  %v9412_v32 = vld [vmem:[#allocation8 + $0xa8] sm:$0xff]   ;;  %v9415_v18 = vld [vmem:[#allocation8 + $0xb8] sm:$0xff]   ;;  %v1885_v23 = vlaneseq }
 0x215   : > { %12418 = vst [vmem:[#allocation53_spill] sm:$0xff] %v10636_v9  ;;  %v10638_v16 = vpack.c.bf16 %v929_v36, %v928_v19  ;;  %v933_v42 = vmax.f32 %v869_v11, %v901_v12  ;;  %8462 = vmatprep.subr.bf16.mxu0 %v9405_v46  ;;  %v9413_v36 = vld [vmem:[#allocation8 + $0x78] sm:$0xff]  }
 0x216   : > { %v934_v60 = vmax.f32 %v870_v31, %v902_v38  ;;  %v932_v59 = vmax.f32 %v868_v40, %v900_v30  ;;  %v9414_v31 = vld [vmem:[#allocation8 + $0xb0] sm:$0xff]   ;;  %v9691_v30 = vmov 839922192  }
 0x217   : > { %12419 = vst [vmem:[#allocation54_spill] sm:$0xff] %v10638_v16  ;;  %v10648_v55 = vpop.permute.xlu1 %3518  ;;  %v10650_v48 = vpop.permute.xlu0 %3506  ;;  %8557 = vmatpush3.bf16.msra.mxu1 %v9406_v58 }
 0x218   : > { %v10644_v10 = vpack.c.bf16 %v935_v50, %v934_v60  ;;  %v10646_v6 = vpack.c.bf16 %v933_v42, %v932_v59  ;;  %8463 = vmatpush3.bf16.msra.mxu0 %v9405_v46  ;;  %8558 = vmatprep.subr.bf16.mxu1 %v9408_v35  ;;  %v1883_v50 = vunpack.c.l.s4 %v9691_v30  ;;  %v1886_v59 = vshrl.u32 %v1885_v23, 7  ;;  %v10676_v46 = vld [vmem:[#allocation8 + $0xc0] sm:$0xff]  }
 0x219   : > { %8464 = vmatprep.subr.bf16.mxu0 %v9407_v57  ;;  %12422 = vst [vmem:[#allocation57_spill] sm:$0xff] %v10676_v46 }
 0x21a   : > { %12420 = vst [vmem:[#allocation55_spill] sm:$0xff] %v10644_v10  ;;  %12421 = vst [vmem:[#allocation56_spill] sm:$0xff] %v10646_v6  ;;  %v1884_v61 = vunpack.c.0.s8 %v1883_v50 }
 0x21b   : > { %v10652_v29 = vpop.permute.xlu1 %3542  ;;  %v10654_v20 = vpop.permute.xlu0 %3530  ;;  %8559 = vmatpush3.bf16.msra.mxu1 %v9408_v35 }
 0x21c   : > { %8465 = vmatpush3.bf16.msra.mxu0 %v9407_v57  ;;  %8560 = vmatprep.subr.bf16.mxu1 %v9410_v25  ;;  %v10683_v35 = vsub.s32 %v1884_v61, %v1886_v59 }
 0x21d   : > { %8466 = vmatprep.subr.bf16.mxu0 %v9409_v62 }
 0x21e   : > { %v3299_v61 = vrot.slane %v10391_v24, %v10683_v35  ;;  %v3323_v59 = vrot.slane %v10415_v44, %v10683_v35  ;;  %v3407_v24 = vrot.slane %v10559_v41, %v10683_v35  ;;  %v3431_v44 = vrot.slane %v10582_v15, %v10683_v35 }
 0x21f   : > { %8561 = vmatpush3.bf16.msra.mxu1 %v9410_v25  ;;  %v10656_v11 = vpop.permute.xlu1 %3566  ;;  %v10658_v17 = vpop.permute.xlu0 %3554  ;;  %v3287_v25 = vrot.slane %v10371_v7, %v10683_v35  ;;  %v3311_v7 = vrot.slane %v10388_v39, %v10683_v35  ;;  %v3371_v39 = vrot.slane %v10511_v52, %v10683_v35  ;;  %v3455_v15 = vrot.slane %v10610_v4, %v10683_v35 }
 0x220   : > { %8467 = vmatpush3.bf16.msra.mxu0 %v9409_v62  ;;  %8562 = vmatprep.subr.bf16.mxu1 %v9412_v32  ;;  %v3275_v62 = vrot.slane %v10354_v27, %v10683_v35 }
 0x221   : > { %8468 = vmatprep.subr.bf16.mxu0 %v9411_v21 }
 0x223   : > { %8563 = vmatpush3.bf16.msra.mxu1 %v9412_v32  ;;  %v10660_v40 = vpop.permute.xlu1 %3590  ;;  %v10662_v19 = vpop.permute.xlu0 %3578 }
 0x224   : > { %8469 = vmatpush3.bf16.msra.mxu0 %v9411_v21  ;;  %8564 = vmatprep.subr.bf16.mxu1 %v9414_v31 }
 0x225   : > { %8470 = vmatprep.subr.bf16.mxu0 %v9413_v36 }
 0x227   : > { %8565 = vmatpush3.bf16.msra.mxu1 %v9414_v31  ;;  %v10664_v1 = vpop.permute.xlu1 %3614  ;;  %v10666_v12 = vpop.permute.xlu0 %3602  ;;  %v7878_v31 = vcombine.low %v3275_v62, %v3287_v25  ;;  %v3347_v62 = vrot.slane %v10455_v63, %v10683_v35  ;;  %v3383_v25 = vrot.slane %v10509_v45, %v10683_v35  ;;  %v7879_v45 = vcombine.low %v3299_v61, %v3311_v7 }
 0x228   : > { %8471 = vmatpush3.bf16.msra.mxu0 %v9413_v36  ;;  %8566 = vmatprep.subr.bf16.mxu1 %v9415_v18  ;;  %v3251_v36 = vrot.slane %v10357_v34, %v10683_v35  ;;  %v3335_v34 = vrot.slane %v10407_v2, %v10683_v35  ;;  %v3395_v2 = vrot.slane %v10561_v33, %v10683_v35 }
 0x229   : > { %v3713_v23 = vshrl.u32 %v7878_v31, 16  ;;  %v3716_v6 = vshll.u32 %v7878_v31, 16  ;;  %v7882_v41 = vcombine.low %v3371_v39, %v3383_v25  ;;  %v3479_v7 = vrot.slane %v10632_v51, %v10683_v35 }
 0x22a   : > { %v7880_v10 = vcombine.low %v3323_v59, %v3335_v34  ;;  %v7883_v22 = vcombine.low %v3395_v2, %v3407_v24  ;;  %v3467_v31 = vrot.slane %v10634_v0, %v10683_v35  ;;  %v3722_v61 = vshrl.u32 %v7879_v45, 16 }
 0x22b   : > { %8567 = vmatpush3.bf16.msra.mxu1 %v9415_v18  ;;  %v10668_v38 = vpop.permute.xlu1 %1891  ;;  %v10670_v13 = vpop.permute.xlu0 %1879  ;;  %v3263_v18 = vrot.slane %v10374_v28, %v10683_v35  ;;  %v3359_v28 = vrot.slane %v10453_v54, %v10683_v35  ;;  %v12423_v54 = vld [vmem:[#allocation42_spill] sm:$0xff]  ;;  %v3715_v16 = vrot.slane %v3713_v23, 3  ;;  %v3725_v34 = vshll.u32 %v7879_v45, 16  ;;  %v10745_v45 = vld [vmem:[#allocation8] sm:$0xff]  }
 0x22c   : > { %8600 = vmatprep.subr.bf16.mxu1 %v10676_v46  ;;  %v3731_v59 = vshrl.u32 %v7880_v10, 16  ;;  %v3734_v23 = vshll.u32 %v7880_v10, 16  ;;  %v3752_v25 = vshll.u32 %v7882_v41, 16  ;;  %v3758_v24 = vshrl.u32 %v7883_v22, 16  ;;  %12424 = vst [vmem:[#allocation42_spill] sm:$0xff] %v10745_v45  ;;  %8504 = vmatprep.subr.bf16.mxu0 %v10745_v45 }
 0x22d   : > { %v10701_v27 = vcombine.low %v3251_v36, %v3263_v18  ;;  %v3419_v36 = vrot.slane %v12423_v54, %v10683_v35  ;;  %v7881_v9 = vcombine.low %v3347_v62, %v3359_v28  ;;  %v3443_v54 = vrot.slane %v10612_v8, %v10683_v35 }
 0x22e   : > { %v3749_v62 = vshrl.u32 %v7882_v41, 16  ;;  %v3761_v8 = vshll.u32 %v7883_v22, 16  ;;  %v3718_v51 = vrot.slane %v3716_v6, 4  ;;  %v7886_v3 = vcombine.low %v3467_v31, %v3479_v7 }
 0x22f   : > { %v10672_v42 = vpop.permute.xlu1 %1915  ;;  %v10674_v60 = vpop.permute.xlu0 %1903  ;;  %v3705_v52 = vshrl.u32 %v10701_v27, 16  ;;  %v3708_v33 = vshll.u32 %v10701_v27, 16  ;;  %v7884_v5 = vcombine.low %v3419_v36, %v3431_v44  ;;  %v3740_v28 = vshrl.u32 %v7881_v9, 16 }
 0x230   : > { %v3743_v27 = vshll.u32 %v7881_v9, 16  ;;  %v7885_v0 = vcombine.low %v3443_v54, %v3455_v15  ;;  %v3724_v10 = vrot.slane %v3722_v61, 3  ;;  %v3727_v47 = vrot.slane %v3725_v34, 4 }
 0x231   : > { %v3767_v2 = vshrl.u32 %v7884_v5, 16  ;;  %v3770_v44 = vshll.u32 %v7884_v5, 16  ;;  %v3707_v36 = vrot.slane %v3705_v52, 3  ;;  %v3733_v9 = vrot.slane %v3731_v59, 3 }
 0x232   : > { %v3736_v53 = vrot.slane %v3734_v23, 4  ;;  %v3742_v41 = vrot.slane %v3740_v28, 3  ;;  %v3745_v49 = vrot.slane %v3743_v27, 4  ;;  %v3751_v14 = vrot.slane %v3749_v62, 3 }
 0x233   : > { %v10678_v58 = vpop.permute.xlu1 %1939  ;;  %v10680_v57 = vpop.permute.xlu0 %1927  ;;  %v3754_v26 = vrot.slane %v3752_v25, 4  ;;  %v3760_v22 = vrot.slane %v3758_v24, 3  ;;  %v3763_v56 = vrot.slane %v3761_v8, 4  ;;  %v3769_v5 = vrot.slane %v3767_v2, 3 }
 0x234   : > { %v3772_v6 = vrot.slane %v3770_v44, 4  ;;  %v3776_v52 = vshrl.u32 %v7885_v0, 16  ;;  %v3779_v46 = vshll.u32 %v7885_v0, 16  ;;  %v3785_v15 = vshrl.u32 %v7886_v3, 16 }
 0x235   : > { %v3788_v54 = vshll.u32 %v7886_v3, 16  ;;  %v3503_v61 = vrot.slane %v10640_v37, %v10683_v35  ;;  %v3491_v34 = vrot.slane %v10642_v43, %v10683_v35  ;;  %v3527_v59 = vrot.slane %v10648_v55, %v10683_v35 }
 0x236   : > { %v3515_v23 = vrot.slane %v10650_v48, %v10683_v35  ;;  %v10760_v28 = vor.u32 %v3718_v51, %v3715_v16  ;;  %v3710_v27 = vrot.slane %v3708_v33, 4  ;;  %v3728_v3 = vor.u32 %v3727_v47, %v3724_v10 }
 0x237   : > { %v10689_v21 = vpop.permute.xlu1 %1963  ;;  %v10691_v32 = vpop.permute.xlu0 %1951  ;;  %v3737_v62 = vor.u32 %v3736_v53, %v3733_v9  ;;  %v3746_v25 = vor.u32 %v3745_v49, %v3742_v41  ;;  %v3755_v24 = vor.u32 %v3754_v26, %v3751_v14  ;;  %v3764_v8 = vor.u32 %v3763_v56, %v3760_v22 }
 0x238   : > { %v3773_v2 = vor.u32 %v3772_v6, %v3769_v5  ;;  %v3778_v44 = vrot.slane %v3776_v52, 3  ;;  %v3781_v37 = vrot.slane %v3779_v46, 4  ;;  %v3787_v0 = vrot.slane %v3785_v15, 3 }
 0x239   : > { %v3790_v45 = vrot.slane %v3788_v54, 4  ;;  %v7887_v43 = vcombine.low %v3491_v34, %v3503_v61  ;;  %v3551_v55 = vrot.slane %v10652_v29, %v10683_v35  ;;  %v3539_v16 = vrot.slane %v10654_v20, %v10683_v35 }
 0x23a   : > { %v3575_v47 = vrot.slane %v10656_v11, %v10683_v35  ;;  %v3563_v26 = vrot.slane %v10658_v17, %v10683_v35  ;;  %v3599_v56 = vrot.slane %v10660_v40, %v10683_v35  ;;  %v3587_v14 = vrot.slane %v10662_v19, %v10683_v35 }
 0x23b   : > { %v10697_v30 = vpop.permute.xlu1 %1987  ;;  %v10699_v50 = vpop.permute.xlu0 %1975  ;;  %v10778_v48 = vor.u32 %v3710_v27, %v3707_v36  ;;  %v10782_v29 = vsel %vm2828_vm0, %v10760_v28, %v3728_v3  ;;  %v10785_v20 = vsel %vm2828_vm0, %v3728_v3, %v3737_v62  ;;  %v10788_v11 = vsel %vm2828_vm0, %v3737_v62, %v3746_v25 }
 0x23c   : > { %12427 = vst [vmem:[#allocation60_spill] sm:$0xff] %v10782_v29  ;;  %12428 = vst [vmem:[#allocation61_spill] sm:$0xff] %v10785_v20  ;;  %v10791_v17 = vsel %vm2828_vm0, %v3746_v25, %v3755_v24  ;;  %v10794_v40 = vsel %vm2828_vm0, %v3755_v24, %v3764_v8  ;;  %v10797_v19 = vsel %vm2828_vm0, %v3764_v8, %v3773_v2  ;;  %v3794_v51 = vshrl.u32 %v7887_v43, 16 }
 0x23d   : > { %12426 = vst [vmem:[#allocation59_spill] sm:$0xff] %v10778_v48  ;;  %12429 = vst [vmem:[#allocation62_spill] sm:$0xff] %v10788_v11  ;;  %v3782_v46 = vor.u32 %v3781_v37, %v3778_v44  ;;  %v10799_v33 = vor.u32 %v3790_v45, %v3787_v0  ;;  %v7889_v36 = vcombine.low %v3539_v16, %v3551_v55  ;;  %v3797_v10 = vshll.u32 %v7887_v43, 16 }
 0x23e   : > { %12430 = vst [vmem:[#allocation63_spill] sm:$0xff] %v10791_v17  ;;  %12431 = vst [vmem:[#allocation64_spill] sm:$0xff] %v10794_v40  ;;  %v7890_v41 = vcombine.low %v3563_v26, %v3575_v47  ;;  %v7891_v22 = vcombine.low %v3587_v14, %v3599_v56  ;;  %v3623_v5 = vrot.slane %v10664_v1, %v10683_v35  ;;  %v3796_v3 = vrot.slane %v3794_v51, 3 }
 0x23f   : > { %v10727_v18 = vpop.permute.xlu1 %2011  ;;  %v10729_v63 = vpop.permute.xlu0 %1999  ;;  %v3611_v6 = vrot.slane %v10666_v12, %v10683_v35  ;;  %v1900_v52 = vrot.slane %v10668_v38, %v10683_v35  ;;  %v1888_v15 = vrot.slane %v10670_v13, %v10683_v35  ;;  %v1924_v45 = vrot.slane %v10672_v42, %v10683_v35 }
 0x240   : > { %v1912_v54 = vrot.slane %v10674_v60, %v10683_v35  ;;  %v1948_v61 = vrot.slane %v10678_v58, %v10683_v35  ;;  %v1936_v1 = vrot.slane %v10680_v57, %v10683_v35  ;;  %v10822_v38 = vsel %vm2828_vm0, %v3773_v2, %v3782_v46 }
 0x241   : > { %12432 = vst [vmem:[#allocation65_spill] sm:$0xff] %v10822_v38  ;;  %v10826_v13 = vsel %vm2828_vm0, %v3782_v46, %v10799_v33  ;;  %v3815_v60 = vshll.u32 %v7889_v36, 16  ;;  %v3824_v27 = vshll.u32 %v7890_v41, 16  ;;  %v3830_v58 = vshrl.u32 %v7891_v22, 16 }
 0x242   : > { %v3833_v62 = vshll.u32 %v7891_v22, 16  ;;  %v7892_v57 = vcombine.low %v3611_v6, %v3623_v5  ;;  %v7813_v25 = vcombine.low %v1888_v15, %v1900_v52  ;;  %v3799_v24 = vrot.slane %v3797_v10, 4 }
 0x243   : > { %v10741_v39 = vpop.permute.xlu1 %2035  ;;  %v10743_v4 = vpop.permute.xlu0 %2023  ;;  %v7814_v44 = vcombine.low %v1912_v54, %v1924_v45  ;;  %v7815_v37 = vcombine.low %v1936_v1, %v1948_v61  ;;  %v1972_v43 = vrot.slane %v10689_v21, %v10683_v35  ;;  %v3817_v55 = vrot.slane %v3815_v60, 4 }
 0x244   : > { %v3826_v47 = vrot.slane %v3824_v27, 4  ;;  %v3832_v26 = vrot.slane %v3830_v58, 3  ;;  %v3835_v46 = vrot.slane %v3833_v62, 4  ;;  %v3839_v51 = vshrl.u32 %v7892_v57, 16 }
 0x245   : > { %v2343_v10 = vshrl.u32 %v7813_v25, 16  ;;  %v2354_v22 = vshll.u32 %v7814_v44, 16  ;;  %v2360_v5 = vshrl.u32 %v7815_v37, 16  ;;  %v3800_v21 = vor.u32 %v3799_v24, %v3796_v3 }
 0x246   : > { %v2363_v52 = vshll.u32 %v7815_v37, 16  ;;  %v1996_v54 = vrot.slane %v10697_v30, %v10683_v35  ;;  %v1984_v61 = vrot.slane %v10699_v50, %v10683_v35  ;;  %v10840_v1 = vor.u32 %v3835_v46, %v3832_v26 }
 0x247   : > { %v10748_v7 = vpop.permute.xlu1 %2059  ;;  %v10750_v31 = vpop.permute.xlu0 %2047  ;;  %v2345_v60 = vrot.slane %v2343_v10, 4  ;;  %v2356_v58 = vrot.slane %v2354_v22, 5  ;;  %v2362_v3 = vrot.slane %v2360_v5, 4  ;;  %v2020_v30 = vrot.slane %v10727_v18, %v10683_v35 }
 0x248   : > { %12425 = vst [vmem:[#allocation58_spill] sm:$0xff] %v10750_v31  ;;  %v7888_v31 = vcombine.low %v3515_v23, %v3527_v59  ;;  %v3812_v59 = vshrl.u32 %v7889_v36, 16  ;;  %v3821_v23 = vshrl.u32 %v7890_v41, 16  ;;  %v3842_v36 = vshll.u32 %v7892_v57, 16 }
 0x249   : > { %v2351_v41 = vshrl.u32 %v7814_v44, 16  ;;  %v2008_v50 = vrot.slane %v10729_v63, %v10683_v35  ;;  %v7817_v44 = vcombine.low %v1984_v61, %v1996_v54  ;;  %v2044_v37 = vrot.slane %v10741_v39, %v10683_v35 }
 0x24a   : > { %v3803_v9 = vshrl.u32 %v7888_v31, 16  ;;  %v3806_v42 = vshll.u32 %v7888_v31, 16  ;;  %v3814_v0 = vrot.slane %v3812_v59, 3  ;;  %v1960_v31 = vrot.slane %v10691_v32, %v10683_v35 }
 0x24b   : > { %v10774_v49 = vpop.permute.xlu1 %2083  ;;  %v10776_v53 = vpop.permute.xlu0 %2071  ;;  %v3823_v16 = vrot.slane %v3821_v23, 3  ;;  %v3844_v59 = vrot.slane %v3842_v36, 4  ;;  %v2353_v27 = vrot.slane %v2351_v41, 4  ;;  %v7818_v46 = vcombine.low %v2008_v50, %v2020_v30 }
 0x24c   : > { %v3805_v8 = vrot.slane %v3803_v9, 3  ;;  %v3808_v2 = vrot.slane %v3806_v42, 4  ;;  %v2346_v9 = vshll.u32 %v7813_v25, 16  ;;  %v7816_v32 = vcombine.low %v1960_v31, %v1972_v43 }
 0x24d   : > { %v3818_v15 = vor.u32 %v3817_v55, %v3814_v0  ;;  %v3827_v45 = vor.u32 %v3826_v47, %v3823_v16  ;;  %v3841_v42 = vrot.slane %v3839_v51, 3  ;;  %v2365_v25 = vrot.slane %v2363_v52, 5 }
 0x24e   : > { %v3809_v6 = vor.u32 %v3808_v2, %v3805_v8  ;;  %v2348_v23 = vrot.slane %v2346_v9, 5  ;;  %v2369_v24 = vshrl.u32 %v7816_v32, 16  ;;  %v2372_v8 = vshll.u32 %v7816_v32, 16 }
 0x24f   : > { %v10817_v34 = vpop.permute.xlu1 %2107  ;;  %v10819_v12 = vpop.permute.xlu0 %2095  ;;  %v2032_v2 = vrot.slane %v10743_v4, %v10683_v35  ;;  %v10852_v0 = vsel %vm2828_vm0, %v10799_v33, %v3800_v21  ;;  %v10861_v63 = vsel %vm2828_vm0, %v3818_v15, %v3827_v45  ;;  %v10865_v31 = vsel %vm2828_vm0, %v3827_v45, %v10840_v1  ;;  %v12439_v33 = vld [vmem:[#allocation58_spill] sm:$0xff] }
 0x250   : > { %12433 = vst [vmem:[#allocation66_spill] sm:$0xff] %v10852_v0  ;;  %v10855_v43 = vsel %vm2828_vm0, %v3800_v21, %v3809_v6  ;;  %v10858_v18 = vsel %vm2828_vm0, %v3809_v6, %v3818_v15  ;;  %12436 = vst [vmem:[#allocation69_spill] sm:$0xff] %v10861_v63  ;;  %v10867_v39 = vor.u32 %v3844_v59, %v3841_v42  ;;  %v2371_v51 = vrot.slane %v2369_v24, 4 }
 0x251   : > { %12434 = vst [vmem:[#allocation67_spill] sm:$0xff] %v10855_v43  ;;  %12435 = vst [vmem:[#allocation68_spill] sm:$0xff] %v10858_v18  ;;  %v2068_v4 = vrot.slane %v10748_v7, %v10683_v35  ;;  %v2056_v55 = vrot.slane %v12439_v33, %v10683_v35  ;;  %v10873_v16 = vor.u32 %v2348_v23, %v2345_v60  ;;  %v2374_v36 = vrot.slane %v2372_v8, 5 }
 0x252   : > { %12437 = vst [vmem:[#allocation70_spill] sm:$0xff] %v10865_v31  ;;  %12438 = vst [vmem:[#allocation71_spill] sm:$0xff] %v10867_v39  ;;  %v10875_v47 = vor.u32 %v2356_v58, %v2353_v27  ;;  %v10877_v26 = vor.u32 %v2365_v25, %v2362_v3  ;;  %v2378_v10 = vshrl.u32 %v7817_v44, 16  ;;  %v7819_v9 = vcombine.low %v2032_v2, %v2044_v37 }
 0x253   : > { %v10832_v56 = vpop.permute.xlu1 %2131  ;;  %v10834_v14 = vpop.permute.xlu0 %2119  ;;  %12440 = vst [vmem:[#allocation58_spill] sm:$0xff] %v10873_v16  ;;  %v2092_v5 = vrot.slane %v10774_v49, %v10683_v35  ;;  %v2080_v7 = vrot.slane %v10776_v53, %v10683_v35  ;;  %v2116_v21 = vrot.slane %v10817_v34, %v10683_v35  ;;  %v2104_v6 = vrot.slane %v10819_v12, %v10683_v35 }
 0x254   : > { %v2381_v52 = vshll.u32 %v7817_v44, 16  ;;  %v7820_v32 = vcombine.low %v2056_v55, %v2068_v4  ;;  %v2140_v15 = vrot.slane %v10832_v56, %v10683_v35  ;;  %v2128_v45 = vrot.slane %v10834_v14, %v10683_v35 }
 0x255   : > { %v2387_v54 = vshrl.u32 %v7818_v46, 16  ;;  %v2390_v61 = vshll.u32 %v7818_v46, 16  ;;  %v2396_v42 = vshrl.u32 %v7819_v9, 16  ;;  %v2399_v59 = vshll.u32 %v7819_v9, 16 }
 0x256   : > { %v10898_v60 = vsel %vm2341_vm1, %v10873_v16, %v10875_v47  ;;  %v2380_v56 = vrot.slane %v2378_v10, 4  ;;  %v7821_v23 = vcombine.low %v2080_v7, %v2092_v5  ;;  %v7822_v14 = vcombine.low %v2104_v6, %v2116_v21 }
 0x257   : > { %v2156_v62 = vpop.permute.xlu1 %2155  ;;  %v2144_v57 = vpop.permute.xlu0 %2143  ;;  %12441 = vst [vmem:[#allocation72_spill] sm:$0xff] %v10898_v60  ;;  %v2383_v27 = vrot.slane %v2381_v52, 5  ;;  %v2405_v58 = vshrl.u32 %v7820_v32, 16  ;;  %v2408_v3 = vshll.u32 %v7820_v32, 16  ;;  %v2389_v24 = vrot.slane %v2387_v54, 4 }
 0x258   : > { %v2164_v49 = vrot.slane %v2156_v62, %v10683_v35  ;;  %v2152_v53 = vrot.slane %v2144_v57, %v10683_v35  ;;  %v7823_v62 = vcombine.low %v2128_v45, %v2140_v15  ;;  %v2392_v44 = vrot.slane %v2390_v61, 5 }
 0x259   : > { %v2398_v37 = vrot.slane %v2396_v42, 4  ;;  %v2401_v2 = vrot.slane %v2399_v59, 5  ;;  %v2414_v33 = vshrl.u32 %v7821_v23, 16  ;;  %v2417_v55 = vshll.u32 %v7821_v23, 16 }
 0x25a   : > { %v7824_v30 = vcombine.low %v2152_v53, %v2164_v49  ;;  %v2423_v46 = vshrl.u32 %v7822_v14, 16  ;;  %v2426_v10 = vshll.u32 %v7822_v14, 16  ;;  %v2407_v9 = vrot.slane %v2405_v58, 4 }
 0x25b   : > { %v2180_v41 = vpop.permute.xlu1 %2179  ;;  %v2168_v22 = vpop.permute.xlu0 %2167  ;;  %v2435_v5 = vshll.u32 %v7823_v62, 16  ;;  %v2375_v7 = vor.u32 %v2374_v36, %v2371_v51  ;;  %v2384_v32 = vor.u32 %v2383_v27, %v2380_v56  ;;  %v2393_v15 = vor.u32 %v2392_v44, %v2389_v24  ;;  %v10905_v51 = vld [vmem:[%s12255_s4] ss:$0 sm:$0xff] }
 0x25c   : > { %v2188_v34 = vrot.slane %v2180_v41, %v10683_v35  ;;  %v2176_v12 = vrot.slane %v2168_v22, %v10683_v35  ;;  %v2410_v41 = vrot.slane %v2408_v3, 5  ;;  %v2432_v22 = vshrl.u32 %v7823_v62, 16 }
 0x25d   : > { %v2441_v21 = vshrl.u32 %v7824_v30, 16  ;;  %v2444_v6 = vshll.u32 %v7824_v30, 16  ;;  %v2416_v61 = vrot.slane %v2414_v33, 4  ;;  %v2419_v49 = vrot.slane %v2417_v55, 5 }
 0x25e   : > { %v7825_v4 = vcombine.low %v2176_v12, %v2188_v34  ;;  %v2425_v53 = vrot.slane %v2423_v46, 4  ;;  %v2428_v42 = vrot.slane %v2426_v10, 5  ;;  %v2402_v59 = vor.u32 %v2401_v2, %v2398_v37 }
 0x25f   : > { %v2204_v25 = vpop.permute.xlu1 %2203  ;;  %v2192_v57 = vpop.permute.xlu0 %2191  ;;  %v2411_v34 = vor.u32 %v2410_v41, %v2407_v9  ;;  %v2434_v12 = vrot.slane %v2432_v22, 4  ;;  %v2437_v23 = vrot.slane %v2435_v5, 5  ;;  %v2443_v14 = vrot.slane %v2441_v21, 4 }
 0x260   : > { %v2212_v50 = vrot.slane %v2204_v25, %v10683_v35  ;;  %v2200_v8 = vrot.slane %v2192_v57, %v10683_v35  ;;  %v2450_v45 = vshrl.u32 %v7825_v4, 16  ;;  %v2453_v54 = vshll.u32 %v7825_v4, 16 }
 0x261   : > { %v2446_v58 = vrot.slane %v2444_v6, 5  ;;  %v10910_v36 = vsel %vm2341_vm1, %v10875_v47, %v10877_v26  ;;  %v10914_v56 = vsel %vm2341_vm1, %v10877_v26, %v2375_v7  ;;  %v10917_v30 = vsel %vm2341_vm1, %v2375_v7, %v2384_v32  ;;  %v10925_v47 = vld [vmem:[%s12255_s4 + $0x1] ss:$0 sm:$0xff]  ;;  %v10927_v26 = vld [vmem:[#allocation2] sm:$0xf0] }
 0x262   : > { %v7826_v52 = vcombine.low %v2200_v8, %v2212_v50  ;;  %12442 = vst [vmem:[#allocation73_spill] sm:$0xff] %v10914_v56  ;;  %v2452_v27 = vrot.slane %v2450_v45, 4  ;;  %v2455_v25 = vrot.slane %v2453_v54, 5  ;;  %12443 = vst [vmem:[#allocation74_spill] sm:$0xff] %v10917_v30  ;;  %v10920_v50 = vsel %vm2341_vm1, %v2384_v32, %v2393_v15 }
 0x263   : > { %v2228_v57 = vpop.permute.xlu1 %2227  ;;  %v2216_v24 = vpop.permute.xlu0 %2215  ;;  %12444 = vst [vmem:[#allocation75_spill] sm:$0xff] %v10920_v50  ;;  %v2420_v8 = vor.u32 %v2419_v49, %v2416_v61  ;;  %v2429_v44 = vor.u32 %v2428_v42, %v2425_v53  ;;  %v10930_v2 = vsel %vm2341_vm1, %v2393_v15, %v2402_v59  ;;  %v10933_v4 = vsel %vm2341_vm1, %v2402_v59, %v2411_v34 }
 0x264   : > { %v2459_v3 = vshrl.u32 %v7826_v52, 16  ;;  %v2462_v62 = vshll.u32 %v7826_v52, 16  ;;  %12445 = vst [vmem:[#allocation76_spill] sm:$0xff] %v10930_v2  ;;  %12446 = vst [vmem:[#allocation77_spill] sm:$0xff] %v10933_v4  ;;  %v2438_v33 = vor.u32 %v2437_v23, %v2434_v12  ;;  %v2447_v10 = vor.u32 %v2446_v58, %v2443_v14 }
 0x265   : > { %v2456_v7 = vor.u32 %v2455_v25, %v2452_v27  ;;  %v3864_v32 = vmul.bf16 %v10778_v48, %v10927_v26  ;;  %v10942_v15 = vsel %vm2341_vm1, %v2411_v34, %v2420_v8  ;;  %v10945_v45 = vsel %vm2341_vm1, %v2420_v8, %v2429_v44 }
 0x266   : > { %v2461_v9 = vrot.slane %v2459_v3, 4  ;;  %v2464_v41 = vrot.slane %v2462_v62, 5  ;;  %12447 = vst [vmem:[#allocation78_spill] sm:$0xff] %v10942_v15  ;;  %12448 = vst [vmem:[#allocation79_spill] sm:$0xff] %v10945_v45  ;;  %v2236_v42 = vrot.slane %v2228_v57, %v10683_v35  ;;  %v2224_v59 = vrot.slane %v2216_v24, %v10683_v35 }
 0x267   : > { %v2252_v12 = vpop.permute.xlu1 %2251  ;;  %v2240_v23 = vpop.permute.xlu0 %2239  ;;  %v10953_v14 = vsel %vm2341_vm1, %v2429_v44, %v2438_v33  ;;  %v10959_v62 = vsel %vm2341_vm1, %v2438_v33, %v2447_v10  ;;  %v10962_v27 = vsel %vm2341_vm1, %v2447_v10, %v2456_v7  ;;  %v3899_v57 = vshrl.u32 %v3864_v32, 16 }
 0x268   : > { %12449 = vst [vmem:[#allocation80_spill] sm:$0xff] %v10953_v14  ;;  %v10955_v34 = vor.u32 %v2464_v41, %v2461_v9  ;;  %12451 = vst [vmem:[#allocation82_spill] sm:$0xff] %v10959_v62  ;;  %v2260_v24 = vrot.slane %v2252_v12, %v10683_v35  ;;  %v10966_v41 = vcombine.low %v2224_v59, %v2236_v42 }
 0x269   : > { %12452 = vst [vmem:[#allocation83_spill] sm:$0xff] %v10962_v27 }
 0x26a   : > { %12450 = vst [vmem:[#allocation81_spill] sm:$0xff] %v10955_v34  ;;  %v10971_v10 = vsel %vm2341_vm1, %v2456_v7, %v10955_v34 }
 0x26b   : > { %12453 = vst [vmem:[#allocation84_spill] sm:$0xff] %v10971_v10  ;;  %v12456_v10 = vrot.slane %v10927_v26, 4 }
 0x299   : > { %v8426_v37 = vpop.f32.mrb[64].mxu0 }
 0x29a   : > { %v1595_v55 = vmul.f32 %v8426_v37, %v10905_v51  ;;  %v1461_v46 = vpop.f32.mrb[65].mxu0  ;;  %v2248_v37 = vrot.slane %v2240_v23, %v10683_v35 }
 0x29b   : > { %v1593_v22 = vmul.f32 %v10905_v51, %v1461_v46  ;;  %v8427_v5 = vpop.f32.mrb[66].mxu0 }
 0x29c   : > { %v1632_v21 = vadd.f32 %v10925_v47, %v1595_v55  ;;  %v1596_v6 = vmul.f32 %v8427_v5, %v10905_v51  ;;  %v1464_v52 = vpop.f32.mrb[67].mxu0  ;;  %v3902_v55 = vshll.u32 %v3864_v32, 16 }
 0x29d   : > { %v1630_v54 = vadd.f32 %v10925_v47, %v1593_v22  ;;  %v1594_v61 = vmul.f32 %v10905_v51, %v1464_v52 }
 0x29e   : > { %v1664_v49 = vmul.f32 0.1, %v1632_v21  ;;  %v1633_v53 = vadd.f32 %v10925_v47, %v1596_v6  ;;  %v10982_v59 = vrot.slane %v3902_v55, 5  ;;  %v10994_v55 = vsel %vm2828_vm0, %v10778_v48, %v10760_v28 }
 0x29f   : > { %v1662_v58 = vmul.f32 0.1, %v1630_v54  ;;  %v1631_v3 = vadd.f32 %v10925_v47, %v1594_v61  ;;  %12454 = vst [vmem:[#allocation85_spill] sm:$0xff] %v10994_v55 }
 0x2a0   : > { %v1665_v25 = vmul.f32 0.1, %v1633_v53  ;;  %v1696_v46 = vmax.f32 %v1632_v21, %v1664_v49  ;;  %v10978_v49 = vrot.slane %v3899_v57, 4 }
 0x2a1   : > { %v1663_v8 = vmul.f32 0.1, %v1631_v3  ;;  %v8430_v44 = vpop.f32.mrb[68].mxu0  ;;  %v1694_v5 = vmax.f32 %v1630_v54, %v1662_v58 }
 0x2a2   : > { %v1697_v9 = vmax.f32 %v1633_v53, %v1665_v25  ;;  %v1599_v22 = vmul.f32 %v8430_v44, %v10905_v51  ;;  %v1477_v33 = vpop.f32.mrb[69].mxu0 }
 0x2a3   : > { %v1695_v6 = vmax.f32 %v1631_v3, %v1663_v8  ;;  %v1597_v52 = vmul.f32 %v10905_v51, %v1477_v33  ;;  %v8431_v61 = vpop.f32.mrb[70].mxu0  ;;  %v1828_v3 = vld [vmem:[#allocation2] sm:$0xf8]  ;;  %v10986_v8 = vcombine.low %v2248_v37, %v2260_v24 }
 0x2a4   : > { %v10974_v12 = vpack.c.bf16 %v1697_v9, %v1696_v46  ;;  %v1636_v35 = vadd.f32 %v10925_v47, %v1599_v22  ;;  %v1600_v21 = vmul.f32 %v8431_v61, %v10905_v51  ;;  %v1480_v32 = vpop.f32.mrb[71].mxu0 }
 0x2a5   : > { %v1730_v53 = vpack.c.bf16 %v1695_v6, %v1694_v5  ;;  %v1634_v42 = vadd.f32 %v10925_v47, %v1597_v52  ;;  %v1598_v7 = vmul.f32 %v10905_v51, %v1480_v32  ;;  %v11002_v6 = vmul.bf16 %v10873_v16, %v1828_v3 }
 0x2a6   : > { %v1764_v54 = vrot.slane %v10974_v12, 4  ;;  %v1668_v23 = vmul.f32 0.1, %v1636_v35  ;;  %v1637_v58 = vadd.f32 %v10925_v47, %v1600_v21  ;;  %v11012_v3 = vsel %vm2828_vm0, %v10840_v1, %v10867_v39 }
 0x2a7   : > { %v1763_v25 = vrot.slane %v1730_v53, 4  ;;  %v1666_v44 = vmul.f32 0.1, %v1634_v42  ;;  %v1635_v57 = vadd.f32 %v10925_v47, %v1598_v7  ;;  %12455 = vst [vmem:[#allocation86_spill] sm:$0xff] %v11012_v3 }
 0x2a8   : > { %v1669_v9 = vmul.f32 0.1, %v1637_v58  ;;  %v1700_v52 = vmax.f32 %v1636_v35, %v1668_v23 }
 0x2a9   : > { %v10997_v33 = vsel %vm1762_vm2, %v1763_v25, %v1764_v54  ;;  %1811 = vst [vmem:[#allocation2 + $0x8] sm:$0xf0] %v1763_v25  ;;  %v1667_v5 = vmul.f32 0.1, %v1635_v57  ;;  %v8434_v24 = vpop.f32.mrb[72].mxu0  ;;  %v1698_v32 = vmax.f32 %v1634_v42, %v1666_v44 }
 0x2aa   : > { %1812 = vst [vmem:[#allocation2 + $0x10] sm:$0xff] %v10997_v33  ;;  %v1701_v61 = vmax.f32 %v1637_v58, %v1669_v9  ;;  %v1603_v12 = vmul.f32 %v8434_v24, %v10905_v51  ;;  %v1493_v28 = vpop.f32.mrb[73].mxu0  ;;  %v3866_v21 = vmul.bf16 %v10782_v29, %v10997_v33 }
 0x2ab   : > { %v1699_v53 = vmax.f32 %v1635_v57, %v1667_v5  ;;  %v1601_v7 = vmul.f32 %v10905_v51, %v1493_v28  ;;  %v8435_v25 = vpop.f32.mrb[74].mxu0 }
 0x2ac   : > { %v11014_v46 = vpack.c.bf16 %v1701_v61, %v1700_v52  ;;  %v1640_v35 = vadd.f32 %v10925_v47, %v1603_v12  ;;  %v1604_v23 = vmul.f32 %v8435_v25, %v10905_v51  ;;  %v1496_v58 = vpop.f32.mrb[75].mxu0  ;;  %v3916_v9 = vshrl.u32 %v3866_v21, 16 }
 0x2ad   : > { %v1732_v24 = vpack.c.bf16 %v1699_v53, %v1698_v32  ;;  %v1638_v42 = vadd.f32 %v10925_v47, %v1601_v7  ;;  %v1602_v44 = vmul.f32 %v10905_v51, %v1496_v58  ;;  %v3919_v57 = vshll.u32 %v3866_v21, 16 }
 0x2ae   : > { %v1768_v5 = vrot.slane %v11014_v46, 4  ;;  %v1672_v28 = vmul.f32 0.1, %v1640_v35  ;;  %v1641_v1 = vadd.f32 %v10925_v47, %v1604_v23  ;;  %v3918_v37 = vrot.slane %v3916_v9, 4 }
 0x2af   : > { %v1766_v52 = vrot.slane %v1732_v24, 4  ;;  %v1670_v61 = vmul.f32 0.1, %v1638_v42  ;;  %v1639_v12 = vadd.f32 %v10925_v47, %v1602_v44  ;;  %v3921_v22 = vrot.slane %v3919_v57, 5 }
 0x2b0   : > { %v1704_v25 = vmax.f32 %v1640_v35, %v1672_v28  ;;  %v1673_v48 = vmul.f32 0.1, %v1641_v1  ;;  %v11023_v29 = vld [vmem:[#allocation2 + $0x8] sm:$0xff]  ;;  %v2573_v32 = vrot.slane %v10997_v33, 4 }
 0x2b1   : > { %v11028_v21 = vsel %vm1762_vm2, %v1764_v54, %v1766_v52  ;;  %v11031_v46 = vsel %vm1762_vm2, %v1766_v52, %v1768_v5  ;;  %v1702_v7 = vmax.f32 %v1638_v42, %v1670_v61  ;;  %v1671_v23 = vmul.f32 0.1, %v1639_v12  ;;  %v8438_v58 = vpop.f32.mrb[76].mxu0 }
 0x2b2   : > { %1813 = vst [vmem:[#allocation2 + $0x18] sm:$0xff] %v11028_v21  ;;  %1814 = vst [vmem:[#allocation2 + $0x20] sm:$0xff] %v11031_v46  ;;  %v1705_v35 = vmax.f32 %v1641_v1, %v1673_v48  ;;  %v1607_v9 = vmul.f32 %v8438_v58, %v10905_v51  ;;  %v1509_v24 = vpop.f32.mrb[77].mxu0  ;;  %v2571_v44 = vrot.slane %v11023_v29, 4  ;;  %v3865_v54 = vmul.bf16 %v10994_v55, %v11023_v29  ;;  %v9421_v55 = vld [vmem:[#allocation8 + $0x8] sm:$0xff]  }
 0x2b3   : > { %v1703_v57 = vmax.f32 %v1639_v12, %v1671_v23  ;;  %v1605_v28 = vmul.f32 %v10905_v51, %v1509_v24  ;;  %v8439_v52 = vpop.f32.mrb[78].mxu0  ;;  %v11040_v42 = vor.u32 %v3921_v22, %v3918_v37  ;;  %v2575_v61 = vrot.slane %v11028_v21, 4 }
 0x2b4   : > { %v11043_v53 = vpack.c.bf16 %v1705_v35, %v1704_v25  ;;  %v1644_v48 = vadd.f32 %v10925_v47, %v1607_v9  ;;  %v1608_v1 = vmul.f32 %v8439_v52, %v10905_v51  ;;  %v1512_v58 = vpop.f32.mrb[79].mxu0  ;;  %v2572_v27 = vsel %vm1762_vm2, %v12456_v10, %v2571_v44 }
 0x2b5   : > { %v1734_v12 = vpack.c.bf16 %v1703_v57, %v1702_v7  ;;  %v1642_v23 = vadd.f32 %v10925_v47, %v1605_v28  ;;  %v1606_v22 = vmul.f32 %v10905_v51, %v1512_v58  ;;  %8472 = vmatprep.mubr.bf16.mxu0 %v2572_v27  ;;  %v2574_v37 = vsel %vm1762_vm2, %v2571_v44, %v2573_v32  ;;  %v12457_v7 = vld [vmem:[#allocation42_spill] sm:$0xff] }
 0x2b6   : > { %v1676_v35 = vmul.f32 0.1, %v1644_v48  ;;  %v1645_v9 = vadd.f32 %v10925_v47, %v1608_v1  ;;  %8473 = vmatmul.mubr.bf16.vlgmr.msra.gmra.mrb[96].mxu0 %v2574_v37  ;;  %v3907_v24 = vshrl.u32 %v3865_v54, 16  ;;  %v3910_v34 = vshll.u32 %v3865_v54, 16  ;;  %v9423_v44 = vld [vmem:[#allocation8 + $0x10] sm:$0xff]  }
 0x2b7   : > { %v1770_v52 = vrot.slane %v1734_v12, 4  ;;  %v1674_v26 = vmul.f32 0.1, %v1642_v23  ;;  %v1643_v10 = vadd.f32 %v10925_v47, %v1606_v22  ;;  %8505 = vmatpush3.bf16.msra.mxu0 %v12457_v7  ;;  %v2576_v27 = vsel %vm1762_vm2, %v2573_v32, %v2575_v61 }
 0x2b8   : > { %v1708_v57 = vmax.f32 %v1644_v48, %v1676_v35  ;;  %v1677_v28 = vmul.f32 0.1, %v1645_v9  ;;  %v3909_v58 = vrot.slane %v3907_v24, 4  ;;  %8506 = vmatprep.subr.bf16.mxu0 %v9421_v55  ;;  %v12458_v1 = vrot.slane %v11043_v53, 4  ;;  %8476 = vmatprep.mubr.bf16.mxu0 %v2576_v27 }
 0x2b9   : > { %v11059_v25 = vsel %vm1762_vm2, %v1768_v5, %v1770_v52  ;;  %v1706_v37 = vmax.f32 %v1642_v23, %v1674_v26  ;;  %v1675_v22 = vmul.f32 0.1, %v1643_v10  ;;  %v8442_v54 = vpop.f32.mrb[80].mxu0  ;;  %v3912_v24 = vrot.slane %v3910_v34, 5 }
 0x2ba   : > { %v11064_v12 = vsel %vm1762_vm2, %v1770_v52, %v12458_v1  ;;  %1815 = vst [vmem:[#allocation2 + $0x28] sm:$0xff] %v11059_v25  ;;  %v1709_v48 = vmax.f32 %v1645_v9, %v1677_v28  ;;  %v1611_v32 = vmul.f32 %v8442_v54, %v10905_v51  ;;  %v1525_v35 = vpop.f32.mrb[81].mxu0  ;;  %v12319_v5 = vrot.slane %v11031_v46, 4 }
 0x2bb   : > { %1816 = vst [vmem:[#allocation2 + $0x30] sm:$0xff] %v11064_v12  ;;  %v1707_v7 = vmax.f32 %v1643_v10, %v1675_v22  ;;  %v1609_v62 = vmul.f32 %v10905_v51, %v1525_v35  ;;  %v8443_v52 = vpop.f32.mrb[82].mxu0  ;;  %v3867_v23 = vmul.bf16 %v10785_v20, %v11028_v21  ;;  %v11075_v26 = vmul.bf16 %v10788_v11, %v11031_v46  ;;  %v9424_v10 = vld [vmem:[#allocation8 + $0x18] sm:$0xff]  }
 0x2bc   : > { %8507 = vmatpush3.bf16.msra.mxu0 %v9421_v55  ;;  %v11077_v27 = vpack.c.bf16 %v1709_v48, %v1708_v57  ;;  %v1648_v9 = vadd.f32 %v10925_v47, %v1611_v32  ;;  %v3913_v28 = vor.u32 %v3912_v24, %v3909_v58  ;;  %v1612_v34 = vmul.f32 %v8443_v52, %v10905_v51  ;;  %v1528_v1 = vpop.f32.mrb[83].mxu0 }
 0x2bd   : > { %8508 = vmatprep.subr.bf16.mxu0 %v9423_v44  ;;  %v1736_v22 = vpack.c.bf16 %v1707_v7, %v1706_v37  ;;  %v1646_v54 = vadd.f32 %v10925_v47, %v1609_v62  ;;  %v1610_v35 = vmul.f32 %v10905_v51, %v1528_v1  ;;  %v2578_v11 = vsel %vm1762_vm2, %v2575_v61, %v12319_v5  ;;  %v9417_v37 = vld [vmem:[#allocation8 + $0xc8] sm:$0xff]  }
 0x2be   : > { %v12320_v55 = vrot.slane %v11077_v27, 4  ;;  %v1680_v57 = vmul.f32 0.1, %v1648_v9  ;;  %v12459_v58 = vor.u32 %v10982_v59, %v10978_v49  ;;  %v1649_v32 = vadd.f32 %v10925_v47, %v1612_v34  ;;  %8477 = vmatmul.mubr.bf16.gmra.mrb[100].mxu0 %v2578_v11  ;;  %v9426_v59 = vld [vmem:[#allocation8 + $0x20] sm:$0xff]  }
 0x2bf   : > { %v1774_v24 = vrot.slane %v1736_v22, 4  ;;  %v1678_v62 = vmul.f32 0.1, %v1646_v54  ;;  %v3923_v7 = vsel %vm2341_vm1, %v3913_v28, %v11040_v42  ;;  %v1647_v61 = vadd.f32 %v10925_v47, %v1610_v35 }
 0x2c0   : > { %v3914_v48 = vsel %vm2341_vm1, %v12459_v58, %v3913_v28  ;;  %8509 = vmatpush3.bf16.msra.mxu0 %v9423_v44  ;;  %v1712_v52 = vmax.f32 %v1648_v9, %v1680_v57  ;;  %v1681_v1 = vmul.f32 0.1, %v1649_v32  ;;  %v3925_v5 = vshrl.u32 %v3867_v23, 16  ;;  %v12461_v44 = vld [vmem:[#allocation57_spill] sm:$0xff] }
 0x2c1   : > { %8568 = vmatprep.mubr.bf16.mxu1 %v3914_v48  ;;  %v3928_v49 = vshll.u32 %v3867_v23, 16  ;;  %8510 = vmatprep.subr.bf16.mxu0 %v9424_v10  ;;  %v12460_v34 = vrot.slane %v11043_v53, 4  ;;  %v11103_v22 = vsel %vm1762_vm2, %v1774_v24, %v12320_v55  ;;  %v1710_v28 = vmax.f32 %v1646_v54, %v1678_v62  ;;  %v8446_v9 = vpop.f32.mrb[84].mxu0 }
 0x2c2   : > { %8569 = vmatmul.mubr.bf16.vlgmr.msra.gmra.mrb[0].mxu1 %v3923_v7  ;;  %v1679_v35 = vmul.f32 0.1, %v1647_v61  ;;  %1818 = vst [vmem:[#allocation2 + $0x40] sm:$0xff] %v11103_v22  ;;  %v1713_v23 = vmax.f32 %v1649_v32, %v1681_v1  ;;  %v1615_v53 = vmul.f32 %v8446_v9, %v10905_v51  ;;  %v1541_v57 = vpop.f32.mrb[85].mxu0  ;;  %v3927_v58 = vrot.slane %v3925_v5, 4  ;;  %v9418_v7 = vld [vmem:[#allocation8 + $0xd0] sm:$0xff]  }
 0x2c3   : > { %v11098_v11 = vsel %vm1762_vm2, %v12460_v34, %v1774_v24  ;;  %8601 = vmatpush3.bf16.msra.mxu1 %v12461_v44  ;;  %v3930_v48 = vrot.slane %v3928_v49, 5  ;;  %v1613_v24 = vmul.f32 %v10905_v51, %v1541_v57  ;;  %v8447_v54 = vpop.f32.mrb[86].mxu0  ;;  %v3934_v62 = vshrl.u32 %v11075_v26, 16  ;;  %v9427_v49 = vld [vmem:[#allocation8 + $0x28] sm:$0xff]  }
 0x2c4   : > { %1817 = vst [vmem:[#allocation2 + $0x38] sm:$0xff] %v11098_v11  ;;  %8602 = vmatprep.subr.bf16.mxu1 %v9417_v37  ;;  %v1711_v34 = vmax.f32 %v1647_v61, %v1679_v35  ;;  %v3937_v44 = vshll.u32 %v11075_v26, 16  ;;  %8511 = vmatpush3.bf16.msra.mxu0 %v9424_v10  ;;  %v11112_v55 = vpack.c.bf16 %v1713_v23, %v1712_v52  ;;  %v1544_v5 = vpop.f32.mrb[87].mxu0  ;;  %v2583_v15 = vrot.slane %v11098_v11, 4 }
 0x2c5   : > { %v1652_v32 = vadd.f32 %v10925_v47, %v1615_v53  ;;  %v1616_v1 = vmul.f32 %v8447_v54, %v10905_v51  ;;  %v3931_v9 = vor.u32 %v3930_v48, %v3927_v58  ;;  %8512 = vmatprep.subr.bf16.mxu0 %v9426_v59  ;;  %v1650_v61 = vadd.f32 %v10925_v47, %v1613_v24  ;;  %v9419_v53 = vld [vmem:[#allocation8 + $0xd8] sm:$0xff]  }
 0x2c6   : > { %v1738_v20 = vpack.c.bf16 %v1711_v34, %v1710_v28  ;;  %v1614_v35 = vmul.f32 %v10905_v51, %v1544_v5  ;;  %v3936_v57 = vrot.slane %v3934_v62, 4  ;;  %v12324_v26 = vrot.slane %v11112_v55, 4 }
 0x2c7   : > { %8603 = vmatpush3.bf16.msra.mxu1 %v9417_v37  ;;  %v1684_v10 = vmul.f32 0.1, %v1652_v32  ;;  %v1653_v52 = vadd.f32 %v10925_v47, %v1616_v1  ;;  %v3932_v23 = vsel %vm2341_vm1, %v11040_v42, %v3931_v9  ;;  %v1682_v48 = vmul.f32 0.1, %v1650_v61 }
 0x2c8   : > { %8604 = vmatprep.subr.bf16.mxu1 %v9418_v7  ;;  %v1778_v58 = vrot.slane %v1738_v20, 4  ;;  %8572 = vmatprep.mubr.bf16.mxu1 %v3932_v23  ;;  %v1651_v28 = vadd.f32 %v10925_v47, %v1614_v35  ;;  %v3939_v34 = vrot.slane %v3937_v44, 5  ;;  %v2579_v37 = vrot.slane %v11059_v25, 4 }
 0x2c9   : > { %8513 = vmatpush3.bf16.msra.mxu0 %v9426_v59  ;;  %v1716_v24 = vmax.f32 %v1652_v32, %v1684_v10  ;;  %v1685_v54 = vmul.f32 0.1, %v1653_v52  ;;  %v12323_v62 = vrot.slane %v11064_v12, 4  ;;  %v12462_v1 = vrot.slane %v11077_v27, 4  ;;  %v8450_v59 = vpop.f32.mrb[88].mxu0 }
 0x2ca   : > { %8514 = vmatprep.subr.bf16.mxu0 %v9427_v49  ;;  %v11133_v20 = vsel %vm1762_vm2, %v1778_v58, %v12324_v26  ;;  %v1714_v5 = vmax.f32 %v1650_v61, %v1682_v48  ;;  %v1683_v44 = vmul.f32 0.1, %v1651_v28  ;;  %v11137_v35 = vor.u32 %v3939_v34, %v3936_v57  ;;  %v9429_v61 = vld [vmem:[#allocation8 + $0x30] sm:$0xff]   ;;  %v9422_v34 = vld [vmem:[#allocation8 + $0xe0] sm:$0xff]   ;;  %v9430_v26 = vld [vmem:[#allocation8 + $0x38] sm:$0xff]  }
 0x2cb   : > { %v11128_v42 = vsel %vm1762_vm2, %v12462_v1, %v1778_v58  ;;  %8605 = vmatpush3.bf16.msra.mxu1 %v9418_v7  ;;  %1820 = vst [vmem:[#allocation2 + $0x50] sm:$0xff] %v11133_v20  ;;  %v1717_v32 = vmax.f32 %v1653_v52, %v1685_v54  ;;  %v12463_v27 = vrot.slane %v11031_v46, 4  ;;  %v2582_v23 = vsel %vm1762_vm2, %v2579_v37, %v12323_v62  ;;  %v1557_v58 = vpop.f32.mrb[89].mxu0 }
 0x2cc   : > { %1819 = vst [vmem:[#allocation2 + $0x48] sm:$0xff] %v11128_v42  ;;  %8606 = vmatprep.subr.bf16.mxu1 %v9419_v53  ;;  %v1715_v48 = vmax.f32 %v1651_v28, %v1683_v44  ;;  %v1619_v7 = vmul.f32 %v8450_v59, %v10905_v51  ;;  %v1617_v1 = vmul.f32 %v10905_v51, %v1557_v58  ;;  %v8451_v52 = vpop.f32.mrb[90].mxu0 }
 0x2cd   : > { %v2580_v10 = vsel %vm1762_vm2, %v12463_v27, %v2579_v37  ;;  %v3869_v57 = vmul.bf16 %v10791_v17, %v11059_v25  ;;  %v11149_v54 = vpack.c.bf16 %v1717_v32, %v1716_v24  ;;  %v3941_v27 = vsel %vm2341_vm1, %v3931_v9, %v11137_v35  ;;  %v1560_v62 = vpop.f32.mrb[91].mxu0  ;;  %8515 = vmatpush3.bf16.msra.mxu0 %v9427_v49 }
 0x2ce   : > { %8480 = vmatprep.mubr.bf16.mxu0 %v2580_v10  ;;  %v1620_v37 = vmul.f32 %v8451_v52, %v10905_v51  ;;  %v3870_v28 = vmul.bf16 %v10794_v40, %v11064_v12  ;;  %v1740_v44 = vpack.c.bf16 %v1715_v48, %v1714_v5  ;;  %8573 = vmatmul.mubr.bf16.gmra.mrb[4].mxu1 %v3941_v27  ;;  %v9425_v52 = vld [vmem:[#allocation8 + $0xe8] sm:$0xff]   ;;  %v12464_v24 = vrot.slane %v11112_v55, 4 }
 0x2cf   : > { %8481 = vmatmul.mubr.bf16.gmra.mrb[104].mxu0 %v2582_v23  ;;  %v1656_v59 = vadd.f32 %v10925_v47, %v1619_v7  ;;  %v1654_v10 = vadd.f32 %v10925_v47, %v1617_v1  ;;  %v3943_v58 = vshrl.u32 %v3869_v57, 16  ;;  %v3946_v9 = vshll.u32 %v3869_v57, 16  ;;  %8607 = vmatpush3.bf16.msra.mxu1 %v9419_v53 }
 0x2d0   : > { %v1657_v32 = vadd.f32 %v10925_v47, %v1620_v37  ;;  %v1618_v23 = vmul.f32 %v10905_v51, %v1560_v62  ;;  %8516 = vmatprep.subr.bf16.mxu0 %v9429_v61  ;;  %v1782_v40 = vrot.slane %v1740_v44, 4  ;;  %8608 = vmatprep.subr.bf16.mxu1 %v9422_v34  ;;  %v3952_v17 = vshrl.u32 %v3870_v28, 16 }
 0x2d1   : > { %v1688_v5 = vmul.f32 0.1, %v1656_v59  ;;  %v1686_v48 = vmul.f32 0.1, %v1654_v10  ;;  %v3945_v27 = vrot.slane %v3943_v58, 4  ;;  %v3948_v1 = vrot.slane %v3946_v9, 5  ;;  %8517 = vmatpush3.bf16.msra.mxu0 %v9429_v61 }
 0x2d2   : > { %v1689_v7 = vmul.f32 0.1, %v1657_v32  ;;  %v1655_v49 = vadd.f32 %v10925_v47, %v1618_v23  ;;  %v11165_v57 = vsel %vm1762_vm2, %v12464_v24, %v1782_v40  ;;  %v12465_v53 = vrot.slane %v11149_v54, 4  ;;  %v8454_v14 = vpop.f32.mrb[92].mxu0  ;;  %8518 = vmatprep.subr.bf16.mxu0 %v9430_v26  ;;  %v9428_v61 = vld [vmem:[#allocation8 + $0xf0] sm:$0xff]  }
 0x2d3   : > { %v1720_v37 = vmax.f32 %v1656_v59, %v1688_v5  ;;  %v1718_v44 = vmax.f32 %v1654_v10, %v1686_v48  ;;  %1821 = vst [vmem:[#allocation2 + $0x58] sm:$0xff] %v11165_v57  ;;  %v3949_v9 = vor.u32 %v3948_v1, %v3945_v27  ;;  %v3954_v55 = vrot.slane %v3952_v17, 4  ;;  %v1573_v45 = vpop.f32.mrb[93].mxu0  ;;  %8609 = vmatpush3.bf16.msra.mxu1 %v9422_v34 }
 0x2d4   : > { %v11170_v62 = vsel %vm1762_vm2, %v1782_v40, %v12465_v53  ;;  %v1721_v58 = vmax.f32 %v1657_v32, %v1689_v7  ;;  %v1687_v23 = vmul.f32 0.1, %v1655_v49  ;;  %v3955_v24 = vshll.u32 %v3870_v28, 16  ;;  %v8455_v10 = vpop.f32.mrb[94].mxu0  ;;  %8610 = vmatprep.subr.bf16.mxu1 %v9425_v52 }
 0x2d5   : > { %1822 = vst [vmem:[#allocation2 + $0x60] sm:$0xff] %v11170_v62  ;;  %v2585_v40 = vrot.slane %v11103_v22, 4  ;;  %v1623_v59 = vmul.f32 %v8454_v14, %v10905_v51  ;;  %v3950_v32 = vsel %vm2341_vm1, %v11137_v35, %v3949_v9  ;;  %v1621_v17 = vmul.f32 %v10905_v51, %v1573_v45  ;;  %v1576_v34 = vpop.f32.mrb[95].mxu0  ;;  %8519 = vmatpush3.bf16.msra.mxu0 %v9430_v26 }
 0x2d6   : > { %v11177_v5 = vpack.c.bf16 %v1721_v58, %v1720_v37  ;;  %v1719_v48 = vmax.f32 %v1655_v49, %v1687_v23  ;;  %8576 = vmatprep.mubr.bf16.mxu1 %v3950_v32  ;;  %v3957_v28 = vrot.slane %v3955_v24, 5  ;;  %v12466_v27 = vrot.slane %v11064_v12, 4  ;;  %v9431_v32 = vld [vmem:[#allocation8 + $0xf8] sm:$0xff]  }
 0x2d7   : > { %v2586_v14 = vsel %vm1762_vm2, %v2583_v15, %v2585_v40  ;;  %v1660_v1 = vadd.f32 %v10925_v47, %v1623_v59  ;;  %v1658_v35 = vadd.f32 %v10925_v47, %v1621_v17  ;;  %v1624_v45 = vmul.f32 %v8455_v10, %v10905_v51  ;;  %8611 = vmatpush3.bf16.msra.mxu1 %v9425_v52 }
 0x2d8   : > { %v2584_v7 = vsel %vm1762_vm2, %v12466_v27, %v2583_v15  ;;  %v1788_v53 = vrot.slane %v11177_v5, 4  ;;  %v1742_v37 = vpack.c.bf16 %v1719_v48, %v1718_v44  ;;  %v3958_v49 = vor.u32 %v3957_v28, %v3954_v55  ;;  %8612 = vmatprep.subr.bf16.mxu1 %v9428_v61 }
 0x2d9   : > { %8484 = vmatprep.mubr.bf16.mxu0 %v2584_v7  ;;  %v1692_v58 = vmul.f32 0.1, %v1660_v1  ;;  %v3871_v23 = vmul.bf16 %v10797_v19, %v11098_v11  ;;  %v1622_v15 = vmul.f32 %v10905_v51, %v1576_v34  ;;  %v1690_v26 = vmul.f32 0.1, %v1658_v35 }
 0x2da   : > { %8485 = vmatmul.mubr.bf16.gmra.mrb[108].mxu0 %v2586_v14  ;;  %v1786_v24 = vrot.slane %v1742_v37, 4  ;;  %v1661_v59 = vadd.f32 %v10925_v47, %v1624_v45  ;;  %v3872_v44 = vmul.bf16 %v10822_v38, %v11103_v22  ;;  %v3959_v10 = vsel %vm2341_vm1, %v3949_v9, %v3958_v49 }
 0x2db   : > { %v1724_v52 = vmax.f32 %v1660_v1, %v1692_v58  ;;  %v3961_v55 = vshrl.u32 %v3871_v23, 16  ;;  %v3964_v48 = vshll.u32 %v3871_v23, 16  ;;  %v12467_v17 = vrot.slane %v11149_v54, 4  ;;  %8577 = vmatmul.mubr.bf16.gmra.mrb[8].mxu1 %v3959_v10  ;;  %v11214_v10 = vld [vmem:[#allocation8 + $0x100] sm:$0xff]  }
 0x2dc   : > { %v11205_v51 = vsel %vm1762_vm2, %v1786_v24, %v1788_v53  ;;  %v1722_v34 = vmax.f32 %v1658_v35, %v1690_v26  ;;  %v1693_v27 = vmul.f32 0.1, %v1661_v59  ;;  %v1659_v14 = vadd.f32 %v10925_v47, %v1622_v15  ;;  %8613 = vmatpush3.bf16.msra.mxu1 %v9428_v61 }
 0x2dd   : > { %v11200_v28 = vsel %vm1762_vm2, %v12467_v17, %v1786_v24  ;;  %1824 = vst [vmem:[#allocation2 + $0x70] sm:$0xff] %v11205_v51  ;;  %v3963_v9 = vrot.slane %v3961_v55, 4  ;;  %v3966_v7 = vrot.slane %v3964_v48, 5  ;;  %v3970_v54 = vshrl.u32 %v3872_v44, 16  ;;  %8614 = vmatprep.subr.bf16.mxu1 %v9431_v32 }
 0x2de   : > { %1823 = vst [vmem:[#allocation2 + $0x68] sm:$0xff] %v11200_v28  ;;  %v1725_v1 = vmax.f32 %v1661_v59, %v1693_v27  ;;  %v3973_v37 = vshll.u32 %v3872_v44, 16  ;;  %v2587_v45 = vrot.slane %v11128_v42, 4  ;;  %v2589_v58 = vrot.slane %v11133_v20, 4 }
 0x2df   : > { %v3967_v23 = vor.u32 %v3966_v7, %v3963_v9  ;;  %v1691_v35 = vmul.f32 0.1, %v1659_v14  ;;  %v3972_v24 = vrot.slane %v3970_v54, 4  ;;  %v3873_v26 = vmul.bf16 %v10826_v13, %v11128_v42 }
 0x2e0   : > { %v1745_v55 = vpack.c.bf16 %v1725_v1, %v1724_v52  ;;  %v3975_v48 = vrot.slane %v3973_v37, 5  ;;  %v2588_v47 = vsel %vm1762_vm2, %v2585_v40, %v2587_v45  ;;  %v2590_v61 = vsel %vm1762_vm2, %v2587_v45, %v2589_v58  ;;  %8615 = vmatpush3.bf16.msra.mxu1 %v9431_v32 }
 0x2e1   : > { %v3968_v15 = vsel %vm2341_vm1, %v3958_v49, %v3967_v23  ;;  %v1723_v59 = vmax.f32 %v1659_v14, %v1691_v35  ;;  %8488 = vmatprep.mubr.bf16.mxu0 %v2588_v47  ;;  %v3979_v44 = vshrl.u32 %v3873_v26, 16  ;;  %v3982_v17 = vshll.u32 %v3873_v26, 16  ;;  %8648 = vmatprep.subr.bf16.mxu1 %v11214_v10 }
 0x2e2   : > { %v1792_v27 = vrot.slane %v1745_v55, 4  ;;  %8580 = vmatprep.mubr.bf16.mxu1 %v3968_v15  ;;  %v3976_v9 = vor.u32 %v3975_v48, %v3972_v24  ;;  %8489 = vmatmul.mubr.bf16.gmra.mrb[112].mxu0 %v2590_v61  ;;  %v3874_v7 = vmul.bf16 %v10852_v0, %v11133_v20  ;;  %v11222_v52 = vrot.slane %v11165_v57, 4  ;;  %v11302_v0 = vld [vmem:[#allocation2 + $0x20] sm:$0xff] }
 0x2e3   : > { %v1744_v40 = vpack.c.bf16 %v1723_v59, %v1722_v34  ;;  %v3981_v54 = vrot.slane %v3979_v44, 4  ;;  %v3984_v1 = vrot.slane %v3982_v17, 5  ;;  %v2833_v49 = vshll.u32 %v11002_v6, 16 }
 0x2e4   : > { %1827 = vst [vmem:[#allocation2 + $0x88] sm:$0xf] %v1792_v27  ;;  %v3977_v32 = vsel %vm2341_vm1, %v3967_v23, %v3976_v9  ;;  %v3988_v14 = vshrl.u32 %v3874_v7, 16  ;;  %v3991_v37 = vshll.u32 %v3874_v7, 16  ;;  %v2592_v45 = vsel %vm1762_vm2, %v2589_v58, %v11222_v52 }
 0x2e5   : > { %v1790_v35 = vrot.slane %v1744_v40, 4  ;;  %8581 = vmatmul.mubr.bf16.gmra.mrb[12].mxu1 %v3977_v32  ;;  %v3985_v24 = vor.u32 %v3984_v1, %v3981_v54  ;;  %8492 = vmatprep.mubr.bf16.mxu0 %v2592_v45  ;;  %v2593_v34 = vrot.slane %v11170_v62, 4  ;;  %v3875_v26 = vmul.bf16 %v10855_v43, %v11165_v57 }
 0x2e6   : > { %v3990_v55 = vrot.slane %v3988_v14, 4  ;;  %v3993_v48 = vrot.slane %v3991_v37, 5  ;;  %v3876_v47 = vmul.bf16 %v10858_v18, %v11170_v62  ;;  %v2595_v23 = vrot.slane %v11200_v28, 4 }
 0x2e7   : > { %v11238_v58 = vsel %vm1762_vm2, %v1788_v53, %v1790_v35  ;;  %v11241_v61 = vsel %vm1762_vm2, %v1790_v35, %v1792_v27  ;;  %v3986_v15 = vsel %vm2341_vm1, %v3976_v9, %v3985_v24  ;;  %v3997_v59 = vshrl.u32 %v3875_v26, 16 }
 0x2e8   : > { %1825 = vst [vmem:[#allocation2 + $0x78] sm:$0xff] %v11238_v58  ;;  %1826 = vst [vmem:[#allocation2 + $0x80] sm:$0xff] %v11241_v61  ;;  %8584 = vmatprep.mubr.bf16.mxu1 %v3986_v15  ;;  %v3994_v44 = vor.u32 %v3993_v48, %v3990_v55  ;;  %v4000_v17 = vshll.u32 %v3875_v26, 16  ;;  %v4006_v7 = vshrl.u32 %v3876_v47, 16  ;;  %v4009_v40 = vshll.u32 %v3876_v47, 16 }
 0x2e9   : > { %v11248_v5 = vsel %vm1762_vm2, %v11222_v52, %v2593_v34  ;;  %v3999_v53 = vrot.slane %v3997_v59, 4  ;;  %v11251_v27 = vsel %vm1762_vm2, %v2593_v34, %v2595_v23  ;;  %v3877_v9 = vmul.bf16 %v10861_v63, %v11200_v28 }
 0x2ea   : > { %8493 = vmatmul.mubr.bf16.gmra.mrb[116].mxu0 %v11248_v5  ;;  %v4002_v54 = vrot.slane %v4000_v17, 5  ;;  %v4008_v1 = vrot.slane %v4006_v7, 4  ;;  %v4011_v32 = vrot.slane %v4009_v40, 5  ;;  %v2597_v14 = vrot.slane %v11205_v51, 4 }
 0x2eb   : > { %v3995_v37 = vsel %vm2341_vm1, %v3985_v24, %v3994_v44  ;;  %8496 = vmatprep.mubr.bf16.mxu0 %v11251_v27  ;;  %v4015_v45 = vshrl.u32 %v3877_v9, 16  ;;  %v4018_v35 = vshll.u32 %v3877_v9, 16  ;;  %v3878_v34 = vmul.bf16 %v10865_v31, %v11205_v51 }
 0x2ec   : > { %v4003_v26 = vor.u32 %v4002_v54, %v3999_v53  ;;  %v4012_v55 = vor.u32 %v4011_v32, %v4008_v1  ;;  %v11262_v48 = vrot.slane %v11238_v58, 4  ;;  %v2503_v47 = vmul.bf16 %v10898_v60, %v11023_v29  ;;  %v4307_v32 = vld [vmem:[#allocation2 + $0x8] sm:$0xf8] }
 0x2ed   : > { %8585 = vmatmul.mubr.bf16.gmra.mrb[16].mxu1 %v3995_v37  ;;  %v4017_v15 = vrot.slane %v4015_v45, 4  ;;  %v4020_v59 = vrot.slane %v4018_v35, 5  ;;  %v4024_v17 = vshrl.u32 %v3878_v34, 16  ;;  %v4027_v24 = vshll.u32 %v3878_v34, 16 }
 0x2ee   : > { %v4004_v7 = vsel %vm2341_vm1, %v3994_v44, %v4003_v26  ;;  %v12468_v40 = vshrl.u32 %v11002_v6, 16  ;;  %v2835_v38 = vrot.slane %v2833_v49, 4  ;;  %v2838_v31 = vshrl.u32 %v2503_v47, 16 }
 0x2ef   : > { %8588 = vmatprep.mubr.bf16.mxu1 %v4004_v7  ;;  %v11270_v53 = vsel %vm1762_vm2, %v2595_v23, %v2597_v14  ;;  %v11272_v54 = vor.u32 %v4020_v59, %v4017_v15  ;;  %v11274_v1 = vld [vmem:[#allocation2 + $0x80] sm:$0xf]  ;;  %v2841_v29 = vshll.u32 %v2503_v47, 16  ;;  %v2504_v37 = vmul.bf16 %v10910_v36, %v10997_v33  ;;  %v11286_v59 = vld [vmem:[#allocation2 + $0x10] sm:$0xff] }
 0x2f0   : > { %v2832_v9 = vrot.slane %v12468_v40, 3  ;;  %v4013_v44 = vsel %vm2341_vm1, %v4003_v26, %v4012_v55  ;;  %v11281_v6 = vsel %vm1762_vm2, %v2597_v14, %v11262_v48  ;;  %v2840_v49 = vrot.slane %v2838_v31, 3  ;;  %v3206_v45 = vld [vmem:[#allocation2 + $0x80] sm:$0x1f] }
 0x2f1   : > { %v3879_v23 = vmul.bf16 %v11012_v3, %v11238_v58  ;;  %v4026_v35 = vrot.slane %v4024_v17, 4  ;;  %v4029_v34 = vrot.slane %v4027_v24, 5  ;;  %v2843_v15 = vrot.slane %v2841_v29, 4 }
 0x2f2   : > { %v3880_v47 = vmul.bf16 %v10867_v39, %v3206_v45  ;;  %8497 = vmatmul.mubr.bf16.gmra.mrb[120].mxu0 %v11270_v53  ;;  %v2601_v33 = vrot.slane %v11274_v1, 4  ;;  %v4324_v14 = vmul.bf16 %v4307_v32, %v10873_v16  ;;  %v4022_v31 = vsel %vm2341_vm1, %v4012_v55, %v11272_v54 }
 0x2f3   : > { %v4033_v26 = vshrl.u32 %v3879_v23, 16  ;;  %v4036_v7 = vshll.u32 %v3879_v23, 16  ;;  %8500 = vmatprep.mubr.bf16.mxu0 %v11281_v6  ;;  %v2844_v17 = vor.u32 %v2843_v15, %v2840_v49  ;;  %v4325_v39 = vmul.bf16 %v11286_v59, %v10898_v60 }
 0x2f4   : > { %v4042_v24 = vshrl.u32 %v3880_v47, 16  ;;  %v4045_v40 = vshll.u32 %v3880_v47, 16  ;;  %v4359_v3 = vshrl.u32 %v4324_v14, 16  ;;  %v2847_v32 = vshrl.u32 %v2504_v37, 16  ;;  %v11300_v47 = vld [vmem:[#allocation2 + $0x18] sm:$0xff] }
 0x2f5   : > { %v4035_v29 = vrot.slane %v4033_v26, 4  ;;  %v4038_v45 = vrot.slane %v4036_v7, 5  ;;  %8589 = vmatmul.mubr.bf16.gmra.mrb[20].mxu1 %v4013_v44  ;;  %v2602_v55 = vsel %vm1762_vm2, %v11262_v48, %v2601_v33  ;;  %v2836_v49 = vor.u32 %v2835_v38, %v2832_v9 }
 0x2f6   : > { %v4044_v23 = vrot.slane %v4042_v24, 4  ;;  %v4047_v18 = vrot.slane %v4045_v40, 5  ;;  %8592 = vmatprep.mubr.bf16.mxu1 %v4022_v31  ;;  %v4362_v15 = vshll.u32 %v4324_v14, 16  ;;  %v4367_v7 = vshrl.u32 %v4325_v39, 16 }
 0x2f7   : > { %v4039_v26 = vor.u32 %v4038_v45, %v4035_v29  ;;  %v4370_v60 = vshll.u32 %v4325_v39, 16  ;;  %v2850_v43 = vshll.u32 %v2504_v37, 16  ;;  %v4030_v44 = vor.u32 %v4029_v34, %v4026_v35 }
 0x2f8   : > { %v2845_v24 = vsel %vm2828_vm0, %v2836_v49, %v2844_v17  ;;  %v4361_v40 = vrot.slane %v4359_v3, 3  ;;  %v2505_v31 = vmul.bf16 %v10914_v56, %v11028_v21  ;;  %v4048_v16 = vor.u32 %v4047_v18, %v4044_v23 }
 0x2f9   : > { %v2849_v63 = vrot.slane %v2847_v32, 3  ;;  %v2852_v33 = vrot.slane %v2850_v43, 4  ;;  %v4326_v38 = vmul.bf16 %v11300_v47, %v10910_v36  ;;  %v4364_v9 = vrot.slane %v4362_v15, 4  ;;  %v11317_v15 = vld [vmem:[#allocation2 + $0x28] sm:$0xff] }
 0x2fa   : > { %8501 = vmatmul.mubr.bf16.gmra.mrb[124].mxu0 %v2602_v55  ;;  %v2856_v14 = vshrl.u32 %v2505_v31, 16  ;;  %v2859_v39 = vshll.u32 %v2505_v31, 16  ;;  %v4327_v37 = vmul.bf16 %v11302_v0, %v10914_v56  ;;  %v4040_v35 = vsel %vm2341_vm1, %v4030_v44, %v4039_v26 }
 0x2fb   : > { %8520 = vmatprep.mubr.bf16.mxu0 %v2845_v24  ;;  %v4369_v3 = vrot.slane %v4367_v7, 3  ;;  %v4372_v34 = vrot.slane %v4370_v60, 4  ;;  %v2506_v18 = vmul.bf16 %v10917_v30, %v11031_v46  ;;  %v4031_v21 = vsel %vm2341_vm1, %v11272_v54, %v4030_v44  ;;  %v11319_v46 = vld [vmem:[#allocation2 + $0x30] sm:$0xff] }
 0x2fc   : > { %v2858_v29 = vrot.slane %v2856_v14, 3  ;;  %v2861_v45 = vrot.slane %v2859_v39, 4  ;;  %v2853_v23 = vor.u32 %v2852_v33, %v2849_v63  ;;  %v4376_v32 = vshrl.u32 %v4326_v38, 16 }
 0x2fd   : > { %8593 = vmatmul.mubr.bf16.gmra.mrb[24].mxu1 %v4031_v21  ;;  %v4379_v55 = vshll.u32 %v4326_v38, 16  ;;  %v4385_v49 = vshrl.u32 %v4327_v37, 16  ;;  %v4388_v60 = vshll.u32 %v4327_v37, 16  ;;  %v2865_v24 = vshrl.u32 %v2506_v18, 16 }
 0x2fe   : > { %8596 = vmatprep.mubr.bf16.mxu1 %v4040_v35  ;;  %v2862_v7 = vor.u32 %v2861_v45, %v2858_v29  ;;  %v2868_v31 = vshll.u32 %v2506_v18, 16  ;;  %v4049_v43 = vsel %vm2341_vm1, %v4039_v26, %v4048_v16  ;;  %v4365_v56 = vor.u32 %v4364_v9, %v4361_v40 }
 0x2ff   : > { %v4373_v54 = vor.u32 %v4372_v34, %v4369_v3  ;;  %v2507_v44 = vmul.bf16 %v10920_v50, %v11059_v25  ;;  %v2854_v63 = vsel %vm2828_vm0, %v2844_v17, %v2853_v23  ;;  %v2867_v33 = vrot.slane %v2865_v24, 3 }
 0x300   : > { %v2870_v38 = vrot.slane %v2868_v31, 4  ;;  %v4328_v14 = vmul.bf16 %v11317_v15, %v10917_v30  ;;  %v4378_v39 = vrot.slane %v4376_v32, 3  ;;  %v4329_v18 = vmul.bf16 %v11319_v46, %v10920_v50  ;;  %v9434_v50 = vld [vmem:[#allocation8 + $0x110] sm:$0xff]  }
 0x301   : > { %v2874_v37 = vshrl.u32 %v2507_v44, 16  ;;  %v2877_v35 = vshll.u32 %v2507_v44, 16  ;;  %v2863_v16 = vsel %vm2828_vm0, %v2853_v23, %v2862_v7  ;;  %v4381_v26 = vrot.slane %v4379_v55, 4  ;;  %v11339_v55 = vld [vmem:[#allocation2 + $0x38] sm:$0xff] }
 0x302   : > { %8521 = vmatmul.mubr.bf16.vlgmr.msra.gmra.mrb[96].mxu0 %v2854_v63  ;;  %v4387_v40 = vrot.slane %v4385_v49, 3  ;;  %v4390_v9 = vrot.slane %v4388_v60, 4  ;;  %v12469_v25 = vshrl.u32 %v10966_v41, 16  ;;  %v2871_v3 = vor.u32 %v2870_v38, %v2867_v33 }
 0x303   : > { %8524 = vmatprep.mubr.bf16.mxu0 %v2863_v16  ;;  %v2876_v34 = vrot.slane %v2874_v37, 3  ;;  %v2879_v21 = vrot.slane %v2877_v35, 4  ;;  %v12470_v29 = vshll.u32 %v10966_v41, 16  ;;  %v12471_v32 = vshrl.u32 %v10986_v8, 16 }
 0x304   : > { %v2470_v17 = vrot.slane %v12469_v25, 4  ;;  %v4374_v31 = vsel %vm2828_vm0, %v4365_v56, %v4373_v54  ;;  %v4394_v23 = vshrl.u32 %v4328_v14, 16  ;;  %v4397_v49 = vshll.u32 %v4328_v14, 16 }
 0x305   : > { %v2473_v45 = vrot.slane %v12470_v29, 5  ;;  %v11336_v24 = vrot.slane %v12471_v32, 4  ;;  %8597 = vmatmul.mubr.bf16.gmra.mrb[28].mxu1 %v4049_v43  ;;  %v4403_v60 = vshrl.u32 %v4329_v18, 16  ;;  %v2508_v44 = vmul.bf16 %v10930_v2, %v11064_v12  ;;  %v11348_v32 = vld [vmem:[#allocation2 + $0x40] sm:$0xff]  ;;  %v12472_v12 = vld [vmem:[#allocation78_spill] sm:$0xff] }
 0x306   : > { %v2509_v63 = vmul.bf16 %v10933_v4, %v11098_v11  ;;  %8616 = vmatprep.mubr.bf16.mxu1 %v4374_v31  ;;  %v4382_v41 = vor.u32 %v4381_v26, %v4378_v39  ;;  %v4391_v33 = vor.u32 %v4390_v9, %v4387_v40  ;;  %v2880_v38 = vor.u32 %v2879_v21, %v2876_v34 }
 0x307   : > { %v4406_v37 = vshll.u32 %v4329_v18, 16  ;;  %v2872_v35 = vsel %vm2828_vm0, %v2862_v7, %v2871_v3  ;;  %v2883_v56 = vshrl.u32 %v2508_v44, 16  ;;  %v2886_v16 = vshll.u32 %v2508_v44, 16  ;;  %v9433_v44 = vld [vmem:[#allocation8 + $0x108] sm:$0xff]  }
 0x308   : > { %v4330_v43 = vmul.bf16 %v11339_v55, %v10930_v2  ;;  %v4396_v14 = vrot.slane %v4394_v23, 3  ;;  %v2892_v25 = vshrl.u32 %v2509_v63, 16  ;;  %v2895_v29 = vshll.u32 %v2509_v63, 16 }
 0x309   : > { %v2510_v11 = vmul.bf16 %v12472_v12, %v11103_v22  ;;  %v4399_v31 = vrot.slane %v4397_v49, 4  ;;  %v4405_v39 = vrot.slane %v4403_v60, 3  ;;  %v2885_v26 = vrot.slane %v2883_v56, 3 }
 0x30a   : > { %v2888_v40 = vrot.slane %v2886_v16, 4  ;;  %8525 = vmatmul.mubr.bf16.gmra.mrb[100].mxu0 %v2872_v35  ;;  %v2881_v7 = vsel %vm2828_vm0, %v2871_v3, %v2880_v38  ;;  %v4408_v18 = vrot.slane %v4406_v37, 4  ;;  %v2894_v9 = vrot.slane %v2892_v25, 3  ;;  %v12474_v35 = vld [vmem:[#allocation79_spill] sm:$0xff] }
 0x30b   : > { %v2897_v34 = vrot.slane %v2895_v29, 4  ;;  %v12473_v21 = vshll.u32 %v10986_v8, 16  ;;  %8528 = vmatprep.mubr.bf16.mxu0 %v2881_v7  ;;  %v4412_v63 = vshrl.u32 %v4330_v43, 16  ;;  %v4415_v2 = vshll.u32 %v4330_v43, 16 }
 0x30c   : > { %v4331_v22 = vmul.bf16 %v11348_v32, %v10933_v4  ;;  %v4383_v49 = vsel %vm2828_vm0, %v4373_v54, %v4382_v41  ;;  %v2901_v60 = vshrl.u32 %v2510_v11, 16  ;;  %v2904_v56 = vshll.u32 %v2510_v11, 16  ;;  %v11362_v4 = vld [vmem:[#allocation2 + $0x50] sm:$0xff] }
 0x30d   : > { %v2482_v23 = vrot.slane %v12473_v21, 5  ;;  %v2511_v3 = vmul.bf16 %v12474_v35, %v11128_v42  ;;  %v2474_v37 = vor.u32 %v2473_v45, %v2470_v17  ;;  %8617 = vmatmul.mubr.bf16.vlgmr.msra.gmra.mrb[0].mxu1 %v4383_v49  ;;  %v4392_v16 = vsel %vm2828_vm0, %v4382_v41, %v4391_v33 }
 0x30e   : > { %v4400_v8 = vor.u32 %v4399_v31, %v4396_v14  ;;  %v2889_v25 = vor.u32 %v2888_v40, %v2885_v26  ;;  %8620 = vmatprep.mubr.bf16.mxu1 %v4392_v16  ;;  %8649 = vmatpush3.bf16.msra.mxu1 %v11214_v10  ;;  %v4409_v43 = vor.u32 %v4408_v18, %v4405_v39  ;;  %v4414_v54 = vrot.slane %v4412_v63, 3  ;;  %v12475_v14 = vld [vmem:[#allocation80_spill] sm:$0xff]  ;;  %v9435_v63 = vld [vmem:[#allocation8 + $0x118] sm:$0xff]  }
 0x30f   : > { %v2898_v29 = vor.u32 %v2897_v34, %v2894_v9  ;;  %v2910_v7 = vshrl.u32 %v2511_v3, 16  ;;  %v2913_v21 = vshll.u32 %v2511_v3, 16  ;;  %8650 = vmatprep.subr.bf16.mxu1 %v9433_v44  ;;  %v4417_v11 = vrot.slane %v4415_v2, 4 }
 0x310   : > { %v4421_v30 = vshrl.u32 %v4331_v22, 16  ;;  %v4424_v17 = vshll.u32 %v4331_v22, 16  ;;  %v2903_v45 = vrot.slane %v2901_v60, 3  ;;  %v2906_v49 = vrot.slane %v2904_v56, 4 }
 0x311   : > { %v4332_v41 = vmul.bf16 %v12472_v12, %v11128_v42  ;;  %v2512_v10 = vmul.bf16 %v12475_v14, %v11133_v20  ;;  %v2890_v31 = vsel %vm2828_vm0, %v2880_v38, %v2889_v25  ;;  %v2912_v39 = vrot.slane %v2910_v7, 3 }
 0x312   : > { %v2915_v26 = vrot.slane %v2913_v21, 4  ;;  %v4333_v40 = vmul.bf16 %v11362_v4, %v12474_v35  ;;  %v11372_v2 = vor.u32 %v2482_v23, %v11336_v24  ;;  %v4401_v18 = vsel %vm2828_vm0, %v4391_v33, %v4400_v8  ;;  %8651 = vmatpush3.bf16.msra.mxu1 %v9433_v44  ;;  %8529 = vmatmul.mubr.bf16.gmra.mrb[104].mxu0 %v2890_v31  ;;  %v12477_v24 = vld [vmem:[#allocation82_spill] sm:$0xff] }
 0x313   : > { %v2899_v9 = vsel %vm2828_vm0, %v2889_v25, %v2898_v29  ;;  %v2919_v42 = vshrl.u32 %v2512_v10, 16  ;;  %v4410_v34 = vsel %vm2828_vm0, %v4400_v8, %v4409_v43  ;;  %v4418_v20 = vor.u32 %v4417_v11, %v4414_v54  ;;  %8652 = vmatprep.subr.bf16.mxu1 %v9434_v50 }
 0x314   : > { %12476 = vst [vmem:[#allocation42_spill] sm:$0xff] %v11372_v2  ;;  %8532 = vmatprep.mubr.bf16.mxu0 %v2899_v9  ;;  %v4423_v38 = vrot.slane %v4421_v30, 3  ;;  %v2922_v22 = vshll.u32 %v2512_v10, 16  ;;  %v4426_v60 = vrot.slane %v4424_v17, 4  ;;  %v2907_v56 = vor.u32 %v2906_v49, %v2903_v45  ;;  %v12478_v30 = vld [vmem:[#allocation81_spill] sm:$0xff]  ;;  %v9436_v45 = vld [vmem:[#allocation8 + $0x120] sm:$0xff]  }
 0x315   : > { %v4430_v3 = vshrl.u32 %v4332_v41, 16  ;;  %v2513_v23 = vmul.bf16 %v12477_v24, %v11165_v57  ;;  %8621 = vmatmul.mubr.bf16.gmra.mrb[4].mxu1 %v4401_v18  ;;  %v2916_v33 = vor.u32 %v2915_v26, %v2912_v39  ;;  %v4433_v44 = vshll.u32 %v4332_v41, 16  ;;  %v12481_v39 = vld [vmem:[#allocation83_spill] sm:$0xff] }
 0x316   : > { %v4439_v16 = vshrl.u32 %v4333_v40, 16  ;;  %v4442_v25 = vshll.u32 %v4333_v40, 16  ;;  %8624 = vmatprep.mubr.bf16.mxu1 %v4410_v34  ;;  %8653 = vmatpush3.bf16.msra.mxu1 %v9434_v50  ;;  %v2921_v8 = vrot.slane %v2919_v42, 3  ;;  %v2924_v7 = vrot.slane %v2922_v22, 4 }
 0x317   : > { %v2928_v21 = vshrl.u32 %v2513_v23, 16  ;;  %v2931_v54 = vshll.u32 %v2513_v23, 16  ;;  %v11381_v11 = vsel %vm2341_vm1, %v12478_v30, %v2474_v37  ;;  %8654 = vmatprep.subr.bf16.mxu1 %v9435_v63  ;;  %v4334_v17 = vmul.bf16 %v12475_v14, %v11165_v57 }
 0x318   : > { %12479 = vst [vmem:[#allocation57_spill] sm:$0xff] %v11381_v11  ;;  %v4335_v49 = vmul.bf16 %v12477_v24, %v11170_v62  ;;  %v11389_v41 = vsel %vm2341_vm1, %v2474_v37, %v11372_v2  ;;  %v4419_v50 = vsel %vm2828_vm0, %v4409_v43, %v4418_v20  ;;  %v2514_v26 = vmul.bf16 %v12481_v39, %v11170_v62 }
 0x319   : > { %12480 = vst [vmem:[#allocation78_spill] sm:$0xff] %v11389_v41  ;;  %v2930_v10 = vrot.slane %v2928_v21, 3  ;;  %v2933_v31 = vrot.slane %v2931_v54, 4  ;;  %v4427_v40 = vor.u32 %v4426_v60, %v4423_v38  ;;  %v2908_v18 = vsel %vm2828_vm0, %v2898_v29, %v2907_v56  ;;  %v12482_v54 = vld [vmem:[#allocation84_spill] sm:$0xff]  ;;  %v9437_v38 = vld [vmem:[#allocation8 + $0x128] sm:$0xff]  }
 0x31a   : > { %v4432_v9 = vrot.slane %v4430_v3, 3  ;;  %v4435_v57 = vrot.slane %v4433_v44, 4  ;;  %8533 = vmatmul.mubr.bf16.gmra.mrb[108].mxu0 %v2908_v18  ;;  %v2917_v42 = vsel %vm2828_vm0, %v2907_v56, %v2916_v33  ;;  %v4441_v34 = vrot.slane %v4439_v16, 3  ;;  %8655 = vmatpush3.bf16.msra.mxu1 %v9435_v63 }
 0x31b   : > { %v4444_v22 = vrot.slane %v4442_v25, 4  ;;  %v2925_v37 = vor.u32 %v2924_v7, %v2921_v8  ;;  %8536 = vmatprep.mubr.bf16.mxu0 %v2917_v42  ;;  %v4448_v23 = vshrl.u32 %v4334_v17, 16  ;;  %v4451_v43 = vshll.u32 %v4334_v17, 16  ;;  %8656 = vmatprep.subr.bf16.mxu1 %v9436_v45 }
 0x31c   : > { %v4457_v21 = vshrl.u32 %v4335_v49, 16  ;;  %v2515_v62 = vmul.bf16 %v12482_v54, %v11200_v28  ;;  %v11398_v60 = vor.u32 %v2933_v31, %v2930_v10  ;;  %v4460_v29 = vshll.u32 %v4335_v49, 16 }
 0x31d   : > { %v2937_v3 = vshrl.u32 %v2514_v26, 16  ;;  %v2940_v44 = vshll.u32 %v2514_v26, 16  ;;  %v11402_v56 = vmul.bf16 %v11372_v2, %v11274_v1  ;;  %8625 = vmatmul.mubr.bf16.gmra.mrb[8].mxu1 %v4419_v50  ;;  %v4428_v63 = vsel %vm2828_vm0, %v4418_v20, %v4427_v40  ;;  %v9438_v50 = vld [vmem:[#allocation8 + $0x130] sm:$0xff]  }
 0x31e   : > { %v4436_v16 = vor.u32 %v4435_v57, %v4432_v9  ;;  %v4336_v25 = vmul.bf16 %v12481_v39, %v11200_v28  ;;  %8628 = vmatprep.mubr.bf16.mxu1 %v4428_v63  ;;  %v4445_v8 = vor.u32 %v4444_v22, %v4441_v34  ;;  %8657 = vmatpush3.bf16.msra.mxu1 %v9436_v45  ;;  %v2946_v7 = vshrl.u32 %v2515_v62, 16 }
 0x31f   : > { %v2949_v30 = vshll.u32 %v2515_v62, 16  ;;  %v4337_v17 = vmul.bf16 %v12482_v54, %v11205_v51  ;;  %v2926_v49 = vsel %vm2828_vm0, %v2916_v33, %v2925_v37  ;;  %v4450_v10 = vrot.slane %v4448_v23, 3  ;;  %8658 = vmatprep.subr.bf16.mxu1 %v9437_v38 }
 0x320   : > { %v4453_v1 = vrot.slane %v4451_v43, 4  ;;  %v4459_v31 = vrot.slane %v4457_v21, 3  ;;  %v2935_v20 = vsel %vm2828_vm0, %v2925_v37, %v11398_v60  ;;  %v4462_v26 = vrot.slane %v4460_v29, 4  ;;  %v9439_v29 = vld [vmem:[#allocation8 + $0x138] sm:$0xff]  }
 0x321   : > { %v2939_v28 = vrot.slane %v2937_v3, 3  ;;  %v2942_v18 = vrot.slane %v2940_v44, 4  ;;  %v4466_v9 = vshrl.u32 %v4336_v25, 16  ;;  %v4469_v45 = vshll.u32 %v4336_v25, 16 }
 0x322   : > { %v2516_v57 = vmul.bf16 %v11381_v11, %v11205_v51  ;;  %v2517_v42 = vmul.bf16 %v11389_v41, %v11238_v58  ;;  %8537 = vmatmul.mubr.bf16.gmra.mrb[112].mxu0 %v2926_v49  ;;  %v2948_v33 = vrot.slane %v2946_v7, 3  ;;  %v2951_v34 = vrot.slane %v2949_v30, 4  ;;  %8659 = vmatpush3.bf16.msra.mxu1 %v9437_v38 }
 0x323   : > { %v4475_v22 = vshrl.u32 %v4337_v17, 16  ;;  %v4338_v23 = vmul.bf16 %v11381_v11, %v11238_v58  ;;  %v4437_v37 = vsel %vm2828_vm0, %v4427_v40, %v4436_v16  ;;  %8540 = vmatprep.mubr.bf16.mxu0 %v2935_v20  ;;  %v4478_v43 = vshll.u32 %v4337_v17, 16  ;;  %8660 = vmatprep.subr.bf16.mxu1 %v9438_v50 }
 0x324   : > { %v2955_v21 = vshrl.u32 %v2516_v57, 16  ;;  %v2958_v62 = vshll.u32 %v2516_v57, 16  ;;  %v4446_v51 = vsel %vm2828_vm0, %v4436_v16, %v4445_v8  ;;  %v4454_v3 = vor.u32 %v4453_v1, %v4450_v10  ;;  %v11424_v10 = vld [vmem:[#allocation8 + $0x140] sm:$0xff]  }
 0x325   : > { %v11420_v44 = vor.u32 %v4462_v26, %v4459_v31  ;;  %v2943_v63 = vor.u32 %v2942_v18, %v2939_v28  ;;  %8629 = vmatmul.mubr.bf16.gmra.mrb[12].mxu1 %v4437_v37  ;;  %v4468_v25 = vrot.slane %v4466_v9, 3  ;;  %v4471_v38 = vrot.slane %v4469_v45, 4 }
 0x326   : > { %v2964_v7 = vshrl.u32 %v2517_v42, 16  ;;  %v2967_v30 = vshll.u32 %v2517_v42, 16  ;;  %8632 = vmatprep.mubr.bf16.mxu1 %v4446_v51  ;;  %v2952_v58 = vor.u32 %v2951_v34, %v2948_v33  ;;  %v4477_v40 = vrot.slane %v4475_v22, 3  ;;  %8661 = vmatpush3.bf16.msra.mxu1 %v9438_v50  ;;  %v11434_v33 = vld [vmem:[#allocation2 + $0x88] sm:$0xf] }
 0x327   : > { %v4484_v49 = vshrl.u32 %v4338_v23, 16  ;;  %v4487_v17 = vshll.u32 %v4338_v23, 16  ;;  %v4480_v20 = vrot.slane %v4478_v43, 4  ;;  %v2957_v57 = vrot.slane %v2955_v21, 3  ;;  %8662 = vmatprep.subr.bf16.mxu1 %v9439_v29 }
 0x328   : > { %v2960_v11 = vrot.slane %v2958_v62, 4  ;;  %v4339_v16 = vmul.bf16 %v11389_v41, %v11241_v61  ;;  %v4455_v1 = vsel %vm2828_vm0, %v4445_v8, %v4454_v3  ;;  %v2973_v31 = vshrl.u32 %v11402_v56, 16  ;;  %v12488_v41 = vld [vmem:[#allocation64_spill] sm:$0xff] }
 0x329   : > { %v4464_v26 = vsel %vm2828_vm0, %v4454_v3, %v11420_v44  ;;  %v2944_v28 = vsel %vm2828_vm0, %v11398_v60, %v2943_v63  ;;  %v2966_v50 = vrot.slane %v2964_v7, 3  ;;  %v2969_v18 = vrot.slane %v2967_v30, 4 }
 0x32a   : > { %8541 = vmatmul.mubr.bf16.gmra.mrb[116].mxu0 %v2944_v28  ;;  %v2953_v9 = vsel %vm2828_vm0, %v2943_v63, %v2952_v58  ;;  %v4486_v45 = vrot.slane %v4484_v49, 3  ;;  %v4489_v61 = vrot.slane %v4487_v17, 4  ;;  %v2976_v42 = vshll.u32 %v11402_v56, 16  ;;  %8663 = vmatpush3.bf16.msra.mxu1 %v9439_v29  ;;  %v12483_v28 = vld [vmem:[#allocation85_spill] sm:$0xff] }
 0x32b   : > { %8544 = vmatprep.mubr.bf16.mxu0 %v2953_v9  ;;  %v4472_v8 = vor.u32 %v4471_v38, %v4468_v25  ;;  %v4481_v34 = vor.u32 %v4480_v20, %v4477_v40  ;;  %v2961_v22 = vor.u32 %v2960_v11, %v2957_v57  ;;  %v4493_v23 = vshrl.u32 %v4339_v16, 16  ;;  %8696 = vmatprep.subr.bf16.mxu1 %v11424_v10 }
 0x32c   : > { %v4496_v60 = vshll.u32 %v4339_v16, 16  ;;  %v2975_v37 = vrot.slane %v2973_v31, 3  ;;  %v12357_v43 = vrot.slane %v11286_v59, 4  ;;  %v4805_v21 = vrot.slane %v11300_v47, 4 }
 0x32d   : > { %8633 = vmatmul.mubr.bf16.gmra.mrb[16].mxu1 %v4455_v1  ;;  %v2970_v62 = vor.u32 %v2969_v18, %v2966_v50  ;;  %v4340_v56 = vmul.bf16 %v11434_v33, %v11372_v2  ;;  %v4807_v29 = vrot.slane %v11302_v0, 4  ;;  %v4809_v51 = vrot.slane %v11317_v15, 4 }
 0x32e   : > { %8636 = vmatprep.mubr.bf16.mxu1 %v4464_v26  ;;  %v4490_v11 = vor.u32 %v4489_v61, %v4486_v45  ;;  %v2978_v3 = vrot.slane %v2976_v42, 4  ;;  %v11446_v63 = vsel %vm1762_vm2, %v12357_v43, %v4805_v21  ;;  %v4811_v25 = vrot.slane %v11319_v46, 4 }
 0x32f   : > { %v11450_v38 = vsel %vm1762_vm2, %v4805_v21, %v4807_v29  ;;  %v11453_v7 = vsel %vm1762_vm2, %v4807_v29, %v4809_v51  ;;  %v4813_v30 = vrot.slane %v11339_v55, 4  ;;  %v12356_v40 = vrot.slane %v11348_v32, 4  ;;  %v12485_v29 = vld [vmem:[#allocation61_spill] sm:$0xff] }
 0x330   : > { %v2962_v49 = vsel %vm2828_vm0, %v2952_v58, %v2961_v22  ;;  %v4495_v17 = vrot.slane %v4493_v23, 3  ;;  %v11459_v20 = vsel %vm1762_vm2, %v4809_v51, %v4811_v25  ;;  %v4498_v57 = vrot.slane %v4496_v60, 4  ;;  %v12484_v60 = vld [vmem:[#allocation60_spill] sm:$0xff] }
 0x331   : > { %v4502_v16 = vshrl.u32 %v4340_v56, 16  ;;  %v11462_v1 = vsel %vm1762_vm2, %v4811_v25, %v4813_v30  ;;  %v11467_v31 = vsel %vm1762_vm2, %v4813_v30, %v12356_v40  ;;  %v4473_v26 = vsel %vm2828_vm0, %v11420_v44, %v4472_v8  ;;  %v12486_v25 = vld [vmem:[#allocation62_spill] sm:$0xff] }
 0x332   : > { %8545 = vmatmul.mubr.bf16.gmra.mrb[120].mxu0 %v2962_v49  ;;  %v2971_v58 = vsel %vm2828_vm0, %v2961_v22, %v2970_v62  ;;  %v5094_v50 = vmul.bf16 %v11286_v59, %v12483_v28  ;;  %v4482_v18 = vsel %vm2828_vm0, %v4472_v8, %v4481_v34  ;;  %v4491_v9 = vsel %vm2828_vm0, %v4481_v34, %v4490_v11  ;;  %v12487_v8 = vld [vmem:[#allocation63_spill] sm:$0xff] }
 0x333   : > { %8548 = vmatprep.mubr.bf16.mxu0 %v2971_v58  ;;  %v2979_v45 = vor.u32 %v2978_v3, %v2975_v37  ;;  %v4505_v61 = vshll.u32 %v4340_v56, 16  ;;  %v5095_v21 = vmul.bf16 %v11300_v47, %v12484_v60  ;;  %v5096_v44 = vmul.bf16 %v11302_v0, %v12485_v29 }
 0x334   : > { %v5136_v42 = vshrl.u32 %v5094_v50, 16  ;;  %v5139_v23 = vshll.u32 %v5094_v50, 16  ;;  %v4499_v22 = vor.u32 %v4498_v57, %v4495_v17  ;;  %v4504_v51 = vrot.slane %v4502_v16, 3 }
 0x335   : > { %8637 = vmatmul.mubr.bf16.gmra.mrb[20].mxu1 %v4473_v26  ;;  %v5097_v30 = vmul.bf16 %v11317_v15, %v12486_v25  ;;  %v5098_v49 = vmul.bf16 %v11319_v46, %v12487_v8  ;;  %v5145_v56 = vshrl.u32 %v5095_v21, 16  ;;  %v5148_v3 = vshll.u32 %v5095_v21, 16 }
 0x336   : > { %8640 = vmatprep.mubr.bf16.mxu1 %v4482_v18  ;;  %v5138_v34 = vrot.slane %v5136_v42, 4  ;;  %v5141_v37 = vrot.slane %v5139_v23, 5  ;;  %v4507_v58 = vrot.slane %v4505_v61, 4  ;;  %v5154_v50 = vshrl.u32 %v5096_v44, 16 }
 0x337   : > { %v5157_v47 = vshll.u32 %v5096_v44, 16  ;;  %v5163_v40 = vshrl.u32 %v5097_v30, 16  ;;  %v2980_v0 = vsel %vm2828_vm0, %v2970_v62, %v2979_v45  ;;  %v5147_v26 = vrot.slane %v5145_v56, 4 }
 0x338   : > { %v5150_v17 = vrot.slane %v5148_v3, 5  ;;  %v5166_v57 = vshll.u32 %v5097_v30, 16  ;;  %v5156_v16 = vrot.slane %v5154_v50, 4  ;;  %v5172_v2 = vshrl.u32 %v5098_v49, 16 }
 0x339   : > { %v5159_v43 = vrot.slane %v5157_v47, 5  ;;  %v5165_v15 = vrot.slane %v5163_v40, 4  ;;  %v11485_v46 = vor.u32 %v5141_v37, %v5138_v34  ;;  %v5175_v23 = vshll.u32 %v5098_v49, 16 }
 0x33a   : > { %8549 = vmatmul.mubr.bf16.gmra.mrb[124].mxu0 %v2980_v0  ;;  %v5151_v18 = vor.u32 %v5150_v17, %v5147_v26  ;;  %v5168_v42 = vrot.slane %v5166_v57, 5  ;;  %v5174_v61 = vrot.slane %v5172_v2, 4  ;;  %v5099_v44 = vmul.bf16 %v11339_v55, %v12488_v41  ;;  %v11499_v55 = vld [vmem:[#allocation2 + $0x8] sm:$0xf0] }
 0x33b   : > { %v5160_v21 = vor.u32 %v5159_v43, %v5156_v16  ;;  %v5100_v62 = vmul.bf16 %v11348_v32, %v10797_v19  ;;  %v4500_v45 = vsel %vm2828_vm0, %v4490_v11, %v4499_v22  ;;  %v5177_v34 = vrot.slane %v5175_v23, 5 }
 0x33c   : > { %v11494_v40 = vsel %vm2341_vm1, %v11485_v46, %v5151_v18  ;;  %v5169_v30 = vor.u32 %v5168_v42, %v5165_v15  ;;  %v5181_v43 = vshrl.u32 %v5099_v44, 16  ;;  %v5184_v2 = vshll.u32 %v5099_v44, 16  ;;  %v9445_v44 = vld [vmem:[#allocation8 + $0x168] sm:$0xff]  }
 0x33d   : > { %8641 = vmatmul.mubr.bf16.gmra.mrb[24].mxu1 %v4491_v9  ;;  %v11497_v37 = vsel %vm2341_vm1, %v5151_v18, %v5160_v21  ;;  %v5190_v49 = vshrl.u32 %v5100_v62, 16  ;;  %v5178_v11 = vor.u32 %v5177_v34, %v5174_v61  ;;  %v5193_v3 = vshll.u32 %v5100_v62, 16  ;;  %v9442_v61 = vld [vmem:[#allocation8 + $0x150] sm:$0xff]   ;;  %v11543_v34 = vld [vmem:[#allocation2 + $0x20] sm:$0xff] }
 0x33e   : > { %8644 = vmatprep.mubr.bf16.mxu1 %v4500_v45  ;;  %v11502_v56 = vsel %vm2341_vm1, %v5160_v21, %v5169_v30  ;;  %v5183_v50 = vrot.slane %v5181_v43, 4  ;;  %v5186_v47 = vrot.slane %v5184_v2, 5  ;;  %v4508_v26 = vor.u32 %v4507_v58, %v4504_v51  ;;  %v9441_v21 = vld [vmem:[#allocation8 + $0x148] sm:$0xff]   ;;  %v11546_v43 = vld [vmem:[#allocation2 + $0x28] sm:$0xff] }
 0x33f   : > { %v5192_v0 = vrot.slane %v5190_v49, 4  ;;  %v11505_v9 = vsel %vm2341_vm1, %v5169_v30, %v5178_v11  ;;  %v5195_v17 = vrot.slane %v5193_v3, 5  ;;  %v4802_v57 = vrot.slane %v11499_v55, 4  ;;  %v11541_v30 = vld [vmem:[#allocation2 + $0x18] sm:$0xff]  ;;  %v11556_v3 = vld [vmem:[#allocation2 + $0x40] sm:$0xff] }
 0x340   : > { %v5187_v16 = vor.u32 %v5186_v47, %v5183_v50  ;;  %v4509_v42 = vsel %vm2828_vm0, %v4499_v22, %v4508_v26  ;;  %v12489_v51 = vrot.slane %v11286_v59, 4  ;;  %v9443_v22 = vld [vmem:[#allocation8 + $0x158] sm:$0xff]   ;;  %v9444_v59 = vld [vmem:[#allocation8 + $0x160] sm:$0xff]   ;;  %v12491_v62 = vrot.slane %v11348_v32, 4  ;;  %v11558_v50 = vld [vmem:[#allocation2 + $0x48] sm:$0xff] }
 0x341   : > { %v11508_v15 = vor.u32 %v5195_v17, %v5192_v0  ;;  %v11548_v32 = vld [vmem:[#allocation2 + $0x30] sm:$0xff]  ;;  %v11553_v49 = vld [vmem:[#allocation2 + $0x38] sm:$0xff]  ;;  %v6034_v47 = vrot.slane %v11543_v34, 4  ;;  %v11564_v26 = vld [vmem:[#allocation2 + $0x60] sm:$0xff]  ;;  %v6036_v17 = vrot.slane %v11546_v43, 4 }
 0x342   : > { %v11511_v18 = vsel %vm2341_vm1, %v5178_v11, %v5187_v16  ;;  %v4804_v58 = vsel %vm1762_vm2, %v4802_v57, %v12489_v51  ;;  %v12360_v11 = vrot.slane %v11541_v30, 4  ;;  %v11562_v0 = vld [vmem:[#allocation2 + $0x58] sm:$0xff]  ;;  %v12492_v57 = vld [vmem:[#allocation59_spill] sm:$0xff] }
 0x343   : > { %v11516_v23 = vsel %vm2341_vm1, %v5187_v16, %v11508_v15  ;;  %v5093_v16 = vmul.bf16 %v11499_v55, %v12492_v57  ;;  %v6042_v55 = vrot.slane %v11556_v3, 4 }
 0x344   : > { %v11575_v51 = vsel %vm1762_vm2, %v12360_v11, %v6034_v47 }
 0x345   : > { %8645 = vmatmul.mubr.bf16.gmra.mrb[28].mxu1 %v4509_v42  ;;  %v11570_v42 = vld [vmem:[#allocation2 + $0x68] sm:$0xff]  ;;  %12493 = vst [vmem:[#allocation80_spill] sm:$0xff] %v11575_v51 }
 0x346   : > { %8664 = vmatprep.mubr.bf16.mxu1 %v4804_v58  ;;  %v11578_v58 = vld [vmem:[#allocation2 + $0x70] sm:$0xff] }
 0x347   : > { %v6054_v11 = vrot.slane %v11578_v58, 4 }
 0x34d   : > { %8665 = vmatmul.mubr.bf16.vlgmr.msra.gmra.mrb[0].mxu1 %v11446_v63  ;;  %v11528_v63 = vld [vmem:[#allocation2 + $0x48] sm:$0xff] }
 0x34e   : > { %8668 = vmatprep.mubr.bf16.mxu1 %v11450_v38  ;;  %8697 = vmatpush3.bf16.msra.mxu1 %v11424_v10  ;;  %v9446_v10 = vld [vmem:[#allocation8 + $0x170] sm:$0xff]   ;;  %v4817_v38 = vrot.slane %v11528_v63, 4 }
 0x34f   : > { %8698 = vmatprep.subr.bf16.mxu1 %v9441_v21 }
 0x350   : > { %v4818_v45 = vsel %vm1762_vm2, %v12491_v62, %v4817_v38  ;;  %v6050_v62 = vrot.slane %v11564_v26, 4 }
 0x352   : > { %8699 = vmatpush3.bf16.msra.mxu1 %v9441_v21  ;;  %v11580_v21 = vld [vmem:[#allocation2 + $0x78] sm:$0xff] }
 0x353   : > { %8700 = vmatprep.subr.bf16.mxu1 %v9442_v61 }
 0x355   : > { %8669 = vmatmul.mubr.bf16.gmra.mrb[4].mxu1 %v11453_v7  ;;  %v11532_v7 = vrot.slane %v11362_v4, 4 }
 0x356   : > { %8672 = vmatprep.mubr.bf16.mxu1 %v11459_v20  ;;  %8701 = vmatpush3.bf16.msra.mxu1 %v9442_v61  ;;  %v9447_v20 = vld [vmem:[#allocation8 + $0x178] sm:$0xff]   ;;  %v11583_v61 = vsel %vm1762_vm2, %v6034_v47, %v6036_v17  ;;  %v5128_v47 = vshrl.u32 %v5093_v16, 16 }
 0x357   : > { %8702 = vmatprep.subr.bf16.mxu1 %v9443_v22  ;;  %12490 = vst [vmem:[#allocation79_spill] sm:$0xff] %v11532_v7  ;;  %v4822_v2 = vsel %vm1762_vm2, %v11532_v7, %v11222_v52  ;;  %v6038_v52 = vrot.slane %v11548_v32, 4  ;;  %12494 = vst [vmem:[#allocation82_spill] sm:$0xff] %v11583_v61 }
 0x35a   : > { %8703 = vmatpush3.bf16.msra.mxu1 %v9443_v22  ;;  %v11586_v22 = vsel %vm1762_vm2, %v6036_v17, %v6038_v52  ;;  %v11608_v17 = vld [vmem:[#allocation2 + $0x90] sm:$0xf] }
 0x35b   : > { %8704 = vmatprep.subr.bf16.mxu1 %v9444_v59  ;;  %12495 = vst [vmem:[#allocation81_spill] sm:$0xff] %v11586_v22  ;;  %12499 = vst [vmem:[#allocation61_spill] sm:$0xff] %v11608_v17 }
 0x35d   : > { %8673 = vmatmul.mubr.bf16.gmra.mrb[8].mxu1 %v11462_v1  ;;  %v4820_v1 = vsel %vm1762_vm2, %v4817_v38, %v11532_v7  ;;  %v6062_v7 = vrot.slane %v11608_v17, 4 }
 0x35e   : > { %8676 = vmatprep.mubr.bf16.mxu1 %v11467_v31  ;;  %8705 = vmatpush3.bf16.msra.mxu1 %v9444_v59  ;;  %v11539_v31 = vld [vmem:[#allocation8 + $0x180] sm:$0xff]   ;;  %v12361_v59 = vrot.slane %v11558_v50, 4 }
 0x35f   : > { %8706 = vmatprep.subr.bf16.mxu1 %v9445_v44 }
 0x362   : > { %8707 = vmatpush3.bf16.msra.mxu1 %v9445_v44  ;;  %v11590_v44 = vld [vmem:[#allocation2 + $0x80] sm:$0xff] }
 0x363   : > { %8708 = vmatprep.subr.bf16.mxu1 %v9446_v10 }
 0x365   : > { %8677 = vmatmul.mubr.bf16.gmra.mrb[12].mxu1 %v4818_v45 }
 0x366   : > { %8680 = vmatprep.mubr.bf16.mxu1 %v4820_v1  ;;  %8709 = vmatpush3.bf16.msra.mxu1 %v9446_v10  ;;  %v11592_v10 = vld [vmem:[#allocation2 + $0x88] sm:$0xff]  ;;  %v11605_v1 = vsel %vm1762_vm2, %v6042_v55, %v12361_v59 }
 0x367   : > { %8710 = vmatprep.subr.bf16.mxu1 %v9447_v20  ;;  %12498 = vst [vmem:[#allocation60_spill] sm:$0xff] %v11605_v1  ;;  %v6060_v59 = vrot.slane %v11592_v10, 4  ;;  %v11624_v1 = vld [vmem:[#allocation2 + $0x80] sm:$0xff] }
 0x369   : > { %v11643_v22 = vsel %vm1762_vm2, %v6060_v59, %v6062_v7 }
 0x36a   : > { %8711 = vmatpush3.bf16.msra.mxu1 %v9447_v20  ;;  %v12364_v20 = vrot.slane %v11562_v0, 4  ;;  %12506 = vst [vmem:[#allocation90_spill] sm:$0xff] %v11643_v22 }
 0x36b   : > { %8744 = vmatprep.subr.bf16.mxu1 %v11539_v31 }
 0x36d   : > { %8681 = vmatmul.mubr.bf16.gmra.mrb[16].mxu1 %v4822_v2  ;;  %v6052_v2 = vrot.slane %v11570_v42, 4 }
 0x36e   : > { %8684 = vmatprep.mubr.bf16.mxu1 %v11248_v5  ;;  %v6040_v5 = vrot.slane %v11553_v49, 4 }
 0x36f   : > { %v11618_v57 = vsel %vm1762_vm2, %v6050_v62, %v6052_v2 }
 0x370   : > { %v11595_v38 = vsel %vm1762_vm2, %v6038_v52, %v6040_v5  ;;  %v11600_v45 = vsel %vm1762_vm2, %v6040_v5, %v6042_v55  ;;  %v11613_v52 = vsel %vm1762_vm2, %v12364_v20, %v6050_v62  ;;  %v6056_v5 = vrot.slane %v11580_v21, 4  ;;  %12501 = vst [vmem:[#allocation63_spill] sm:$0xff] %v11618_v57 }
 0x371   : > { %12496 = vst [vmem:[#allocation83_spill] sm:$0xff] %v11595_v38  ;;  %12497 = vst [vmem:[#allocation85_spill] sm:$0xff] %v11600_v45  ;;  %v6058_v55 = vrot.slane %v11590_v44, 4  ;;  %v4831_v20 = vrot.slane %v11624_v1, 4  ;;  %v6323_v62 = vmul.bf16 %v11541_v30, %v12483_v28  ;;  %v5131_v57 = vshll.u32 %v5093_v16, 16 }
 0x372   : > { %12500 = vst [vmem:[#allocation62_spill] sm:$0xff] %v11613_v52  ;;  %v11628_v52 = vsel %vm1762_vm2, %v6052_v2, %v6054_v11  ;;  %v11631_v45 = vsel %vm1762_vm2, %v6054_v11, %v6056_v5  ;;  %v4833_v2 = vrot.slane %v11434_v33, 4  ;;  %v5130_v28 = vrot.slane %v5128_v47, 4 }
 0x373   : > { %12502 = vst [vmem:[#allocation64_spill] sm:$0xff] %v11628_v52  ;;  %12503 = vst [vmem:[#allocation87_spill] sm:$0xff] %v11631_v45  ;;  %v11637_v38 = vsel %vm1762_vm2, %v6056_v5, %v6058_v55  ;;  %v6365_v52 = vshrl.u32 %v6323_v62, 16  ;;  %v6368_v11 = vshll.u32 %v6323_v62, 16  ;;  %v6324_v45 = vmul.bf16 %v11543_v34, %v12484_v60 }
 0x374   : > { %12504 = vst [vmem:[#allocation88_spill] sm:$0xff] %v11637_v38  ;;  %v6326_v16 = vmul.bf16 %v11548_v32, %v12486_v25  ;;  %v6327_v5 = vmul.bf16 %v11553_v49, %v12487_v8  ;;  %v5133_v33 = vrot.slane %v5131_v57, 5  ;;  %v4832_v8 = vsel %vm1762_vm2, %v11262_v48, %v4831_v20 }
 0x375   : > { %8685 = vmatmul.mubr.bf16.gmra.mrb[20].mxu1 %v11251_v27  ;;  %v11640_v27 = vsel %vm1762_vm2, %v6058_v55, %v6060_v59  ;;  %v6367_v55 = vrot.slane %v6365_v52, 4  ;;  %v6370_v7 = vrot.slane %v6368_v11, 5  ;;  %v6374_v59 = vshrl.u32 %v6324_v45, 16 }
 0x376   : > { %8688 = vmatprep.mubr.bf16.mxu1 %v11270_v53  ;;  %12505 = vst [vmem:[#allocation89_spill] sm:$0xff] %v11640_v27  ;;  %v6325_v53 = vmul.bf16 %v11546_v43, %v12485_v29  ;;  %v6377_v22 = vshll.u32 %v6324_v45, 16  ;;  %v6392_v38 = vshrl.u32 %v6326_v16, 16  ;;  %v6395_v51 = vshll.u32 %v6326_v16, 16 }
 0x377   : > { %v11654_v61 = vor.u32 %v6370_v7, %v6367_v55  ;;  %v6376_v60 = vrot.slane %v6374_v59, 4  ;;  %v6401_v25 = vshrl.u32 %v6327_v5, 16  ;;  %v6404_v57 = vshll.u32 %v6327_v5, 16 }
 0x378   : > { %v6383_v27 = vshrl.u32 %v6325_v53, 16  ;;  %v6386_v62 = vshll.u32 %v6325_v53, 16  ;;  %v6379_v47 = vrot.slane %v6377_v22, 5  ;;  %v6394_v54 = vrot.slane %v6392_v38, 4 }
 0x379   : > { %v6397_v45 = vrot.slane %v6395_v51, 5  ;;  %v6403_v53 = vrot.slane %v6401_v25, 4  ;;  %v6328_v55 = vmul.bf16 %v11556_v3, %v12488_v41  ;;  %v6329_v22 = vmul.bf16 %v11558_v50, %v10797_v19 }
 0x37a   : > { %v6385_v29 = vrot.slane %v6383_v27, 4  ;;  %v6388_v17 = vrot.slane %v6386_v62, 5  ;;  %v6380_v52 = vor.u32 %v6379_v47, %v6376_v60  ;;  %v5134_v27 = vor.u32 %v5133_v33, %v5130_v28 }
 0x37b   : > { %v6406_v16 = vrot.slane %v6404_v57, 5  ;;  %v6410_v51 = vshrl.u32 %v6328_v55, 16  ;;  %v6413_v5 = vshll.u32 %v6328_v55, 16  ;;  %v6422_v59 = vshll.u32 %v6329_v22, 16 }
 0x37c   : > { %v6389_v11 = vor.u32 %v6388_v17, %v6385_v29  ;;  %v11665_v38 = vsel %vm2341_vm1, %v11654_v61, %v6380_v52  ;;  %v6419_v17 = vshrl.u32 %v6329_v22, 16  ;;  %v4834_v33 = vsel %vm1762_vm2, %v4831_v20, %v4833_v2 }
 0x37d   : > { %8689 = vmatmul.mubr.bf16.gmra.mrb[24].mxu1 %v11281_v6  ;;  %v6398_v6 = vor.u32 %v6397_v45, %v6394_v54  ;;  %v6407_v41 = vor.u32 %v6406_v16, %v6403_v53  ;;  %v6412_v62 = vrot.slane %v6410_v51, 4  ;;  %v6415_v19 = vrot.slane %v6413_v5, 5  ;;  %v12508_v45 = vld [vmem:[#allocation67_spill] sm:$0xff]  ;;  %v12510_v53 = vld [vmem:[#allocation68_spill] sm:$0xff] }
 0x37e   : > { %8692 = vmatprep.mubr.bf16.mxu1 %v4832_v8  ;;  %v11668_v48 = vsel %vm2341_vm1, %v6380_v52, %v6389_v11  ;;  %v6421_v28 = vrot.slane %v6419_v17, 4  ;;  %v6424_v54 = vrot.slane %v6422_v59, 5  ;;  %v6331_v47 = vmul.bf16 %v11562_v0, %v10826_v13  ;;  %v12507_v8 = vld [vmem:[#allocation66_spill] sm:$0xff] }
 0x37f   : > { %v11671_v7 = vsel %vm2341_vm1, %v6389_v11, %v6398_v6  ;;  %v11675_v60 = vsel %vm2341_vm1, %v6398_v6, %v6407_v41  ;;  %v5143_v29 = vsel %vm2341_vm1, %v5134_v27, %v11485_v46  ;;  %v6416_v25 = vor.u32 %v6415_v19, %v6412_v62 }
 0x380   : > { %v6332_v52 = vmul.bf16 %v11564_v26, %v12507_v8  ;;  %v6333_v57 = vmul.bf16 %v11570_v42, %v12508_v45  ;;  %v11685_v11 = vor.u32 %v6424_v54, %v6421_v28  ;;  %v6437_v20 = vshrl.u32 %v6331_v47, 16 }
 0x381   : > { %v6440_v2 = vshll.u32 %v6331_v47, 16  ;;  %v6334_v55 = vmul.bf16 %v11578_v58, %v12510_v53  ;;  %v11690_v22 = vsel %vm2341_vm1, %v6407_v41, %v6416_v25 }
 0x382   : > { %12509 = vst [vmem:[#allocation66_spill] sm:$0xff] %v11685_v11  ;;  %12511 = vst [vmem:[#allocation67_spill] sm:$0xff] %v11690_v22  ;;  %v6446_v46 = vshrl.u32 %v6332_v52, 16  ;;  %v6449_v27 = vshll.u32 %v6332_v52, 16  ;;  %v11694_v6 = vsel %vm2341_vm1, %v6416_v25, %v11685_v11  ;;  %v6439_v16 = vrot.slane %v6437_v20, 4  ;;  %v12515_v22 = vld [vmem:[#allocation70_spill] sm:$0xff] }
 0x383   : > { %12512 = vst [vmem:[#allocation68_spill] sm:$0xff] %v11694_v6  ;;  %v6442_v51 = vrot.slane %v6440_v2, 5  ;;  %v6455_v5 = vshrl.u32 %v6333_v57, 16  ;;  %v6458_v62 = vshll.u32 %v6333_v57, 16  ;;  %v6467_v54 = vshll.u32 %v6334_v55, 16  ;;  %v9449_v11 = vld [vmem:[#allocation8 + $0x188] sm:$0xff]  }
 0x384   : > { %v6448_v17 = vrot.slane %v6446_v46, 4  ;;  %v6451_v59 = vrot.slane %v6449_v27, 5  ;;  %v6336_v25 = vmul.bf16 %v11590_v44, %v12515_v22  ;;  %v12516_v6 = vld [vmem:[#allocation86_spill] sm:$0xff] }
 0x385   : > { %8693 = vmatmul.mubr.bf16.gmra.mrb[28].mxu1 %v4834_v33  ;;  %v11696_v19 = vor.u32 %v6442_v51, %v6439_v16  ;;  %v6457_v28 = vrot.slane %v6455_v5, 4  ;;  %v6464_v33 = vshrl.u32 %v6334_v55, 16  ;;  %v6460_v41 = vrot.slane %v6458_v62, 5 }
 0x386   : > { %8712 = vmatprep.mubr.bf16.mxu1 %v5143_v29  ;;  %v6452_v47 = vor.u32 %v6451_v59, %v6448_v17  ;;  %v12514_v29 = vld [vmem:[#allocation69_spill] sm:$0xff]  ;;  %v6469_v2 = vrot.slane %v6467_v54, 5  ;;  %v6337_v46 = vmul.bf16 %v11592_v10, %v12516_v6  ;;  %v6482_v5 = vshrl.u32 %v6336_v25, 16 }
 0x387   : > { %12513 = vst [vmem:[#allocation91_spill] sm:$0xff] %v11696_v19  ;;  %v6335_v52 = vmul.bf16 %v11580_v21, %v12514_v29  ;;  %v6466_v20 = vrot.slane %v6464_v33, 4  ;;  %v6461_v27 = vor.u32 %v6460_v41, %v6457_v28  ;;  %v6485_v17 = vshll.u32 %v6336_v25, 16  ;;  %v9450_v28 = vld [vmem:[#allocation8 + $0x190] sm:$0xff]  }
 0x388   : > { %v11706_v57 = vsel %vm2341_vm1, %v11696_v19, %v6452_v47  ;;  %v6491_v59 = vshrl.u32 %v6337_v46, 16  ;;  %v6494_v19 = vshll.u32 %v6337_v46, 16 }
 0x389   : > { %12517 = vst [vmem:[#allocation69_spill] sm:$0xff] %v11706_v57  ;;  %v6473_v55 = vshrl.u32 %v6335_v52, 16  ;;  %v6476_v16 = vshll.u32 %v6335_v52, 16  ;;  %v6470_v51 = vor.u32 %v6469_v2, %v6466_v20  ;;  %v11712_v62 = vsel %vm2341_vm1, %v6452_v47, %v6461_v27  ;;  %v9451_v47 = vld [vmem:[#allocation8 + $0x198] sm:$0xff]  }
 0x38a   : > { %v6487_v52 = vrot.slane %v6485_v17, 5  ;;  %v6493_v20 = vrot.slane %v6491_v59, 4  ;;  %v6496_v2 = vrot.slane %v6494_v19, 5  ;;  %v9452_v19 = vld [vmem:[#allocation8 + $0x1a0] sm:$0xff]  }
 0x38b   : > { %v6475_v33 = vrot.slane %v6473_v55, 4  ;;  %v6478_v54 = vrot.slane %v6476_v16, 5  ;;  %v11715_v41 = vsel %vm2341_vm1, %v6461_v27, %v6470_v51  ;;  %v12518_v55 = vld [vmem:[#allocation65_spill] sm:$0xff] }
 0x38c   : > { %v5101_v27 = vmul.bf16 %v11528_v63, %v12518_v55  ;;  %v9453_v63 = vld [vmem:[#allocation8 + $0x1a8] sm:$0xff]  }
 0x38d   : > { %8713 = vmatmul.mubr.bf16.vlgmr.msra.gmra.mrb[0].mxu1 %v11494_v40  ;;  %v6484_v40 = vrot.slane %v6482_v5, 4  ;;  %v6479_v25 = vor.u32 %v6478_v54, %v6475_v33  ;;  %v9490_v54 = vld [vmem:[#allocation2 + $0x58] sm:$0xff] }
 0x38e   : > { %8716 = vmatprep.mubr.bf16.mxu1 %v11497_v37  ;;  %8745 = vmatpush3.bf16.msra.mxu1 %v11539_v31  ;;  %v11720_v31 = vor.u32 %v6496_v2, %v6493_v20  ;;  %v5202_v5 = vshll.u32 %v5101_v27, 16 }
 0x38f   : > { %8746 = vmatprep.subr.bf16.mxu1 %v9449_v11  ;;  %v6488_v57 = vor.u32 %v6487_v52, %v6484_v40  ;;  %v11718_v37 = vsel %vm2341_vm1, %v6470_v51, %v6479_v25  ;;  %v5199_v51 = vshrl.u32 %v5101_v27, 16  ;;  %v9454_v40 = vld [vmem:[#allocation8 + $0x1b0] sm:$0xff]  }
 0x391   : > { %v11723_v46 = vsel %vm2341_vm1, %v6479_v25, %v6488_v57  ;;  %v11729_v16 = vsel %vm2341_vm1, %v6488_v57, %v11720_v31  ;;  %v5201_v33 = vrot.slane %v5199_v51, 4  ;;  %v5204_v57 = vrot.slane %v5202_v5, 5 }
 0x392   : > { %8747 = vmatpush3.bf16.msra.mxu1 %v9449_v11  ;;  %v5102_v11 = vmul.bf16 %v11362_v4, %v10826_v13 }
 0x393   : > { %8748 = vmatprep.subr.bf16.mxu1 %v9450_v28  ;;  %v5205_v52 = vor.u32 %v5204_v57, %v5201_v33 }
 0x394   : > { %v5208_v17 = vshrl.u32 %v5102_v11, 16  ;;  %v5211_v59 = vshll.u32 %v5102_v11, 16 }
 0x395   : > { %8717 = vmatmul.mubr.bf16.gmra.mrb[4].mxu1 %v11502_v56  ;;  %v5103_v56 = vmul.bf16 %v9490_v54, %v12507_v8  ;;  %v9455_v8 = vld [vmem:[#allocation8 + $0x1b8] sm:$0xff]  }
 0x396   : > { %8720 = vmatprep.mubr.bf16.mxu1 %v11505_v9  ;;  %8749 = vmatpush3.bf16.msra.mxu1 %v9450_v28  ;;  %v5210_v13 = vrot.slane %v5208_v17, 4  ;;  %v5213_v4 = vrot.slane %v5211_v59, 5  ;;  %v9491_v9 = vld [vmem:[#allocation2 + $0x60] sm:$0xff]  ;;  %v9493_v59 = vld [vmem:[#allocation2 + $0x70] sm:$0xff] }
 0x397   : > { %8750 = vmatprep.subr.bf16.mxu1 %v9451_v47  ;;  %v5104_v28 = vmul.bf16 %v9491_v9, %v12508_v45  ;;  %v5217_v20 = vshrl.u32 %v5103_v56, 16  ;;  %v5220_v25 = vshll.u32 %v5103_v56, 16  ;;  %v9492_v45 = vld [vmem:[#allocation2 + $0x68] sm:$0xff]  ;;  %v5106_v33 = vmul.bf16 %v9493_v59, %v12514_v29  ;;  %v5536_v59 = vld [vmem:[#allocation2 + $0x10] sm:$0xf8] }
 0x398   : > { %v5214_v2 = vor.u32 %v5213_v4, %v5210_v13 }
 0x399   : > { %v5229_v27 = vshll.u32 %v5104_v28, 16  ;;  %v5219_v11 = vrot.slane %v5217_v20, 4  ;;  %v5222_v51 = vrot.slane %v5220_v25, 5  ;;  %v5244_v13 = vshrl.u32 %v5106_v33, 16 }
 0x39a   : > { %8751 = vmatpush3.bf16.msra.mxu1 %v9451_v47  ;;  %v5226_v47 = vshrl.u32 %v5104_v28, 16  ;;  %v5247_v4 = vshll.u32 %v5106_v33, 16 }
 0x39b   : > { %8752 = vmatprep.subr.bf16.mxu1 %v9452_v19  ;;  %v5231_v17 = vrot.slane %v5229_v27, 5  ;;  %v5223_v57 = vor.u32 %v5222_v51, %v5219_v11  ;;  %v5246_v20 = vrot.slane %v5244_v13, 4 }
 0x39c   : > { %v5228_v5 = vrot.slane %v5226_v47, 4  ;;  %v5249_v25 = vrot.slane %v5247_v4, 5  ;;  %v5108_v47 = vmul.bf16 %v11624_v1, %v12516_v6  ;;  %v12520_v6 = vld [vmem:[#allocation72_spill] sm:$0xff] }
 0x39d   : > { %8721 = vmatmul.mubr.bf16.gmra.mrb[8].mxu1 %v11511_v18  ;;  %v5206_v18 = vsel %vm2341_vm1, %v11508_v15, %v5205_v52 }
 0x39e   : > { %8724 = vmatprep.mubr.bf16.mxu1 %v11516_v23  ;;  %8753 = vmatpush3.bf16.msra.mxu1 %v9452_v19  ;;  %v5105_v23 = vmul.bf16 %v9492_v45, %v12510_v53  ;;  %v5215_v19 = vsel %vm2341_vm1, %v5205_v52, %v5214_v2  ;;  %v5232_v56 = vor.u32 %v5231_v17, %v5228_v5  ;;  %v9494_v52 = vld [vmem:[#allocation2 + $0x78] sm:$0xff]  ;;  %v5262_v51 = vshrl.u32 %v5108_v47, 16  ;;  %v5092_v45 = vld [vmem:[#allocation2 + $0x88] sm:$0x1f]  ;;  %v12519_v5 = vld [vmem:[#allocation71_spill] sm:$0xff] }
 0x39f   : > { %8754 = vmatprep.subr.bf16.mxu1 %v9453_v63  ;;  %v5224_v53 = vsel %vm2341_vm1, %v5214_v2, %v5223_v57  ;;  %v5107_v29 = vmul.bf16 %v9494_v52, %v12515_v22  ;;  %v5250_v11 = vor.u32 %v5249_v25, %v5246_v20  ;;  %v5265_v2 = vshll.u32 %v5108_v47, 16 }
 0x3a0   : > { %v5235_v15 = vshrl.u32 %v5105_v23, 16  ;;  %v5238_v54 = vshll.u32 %v5105_v23, 16  ;;  %v5109_v17 = vmul.bf16 %v5092_v45, %v12519_v5 }
 0x3a1   : > { %v5267_v1 = vrot.slane %v5265_v2, 5  ;;  %v12522_v2 = vld [vmem:[#allocation73_spill] sm:$0xff] }
 0x3a2   : > { %8755 = vmatpush3.bf16.msra.mxu1 %v9453_v63  ;;  %v11744_v63 = vld [vmem:[#allocation8 + $0x1c0] sm:$0xff]   ;;  %v5237_v9 = vrot.slane %v5235_v15, 4  ;;  %v5240_v28 = vrot.slane %v5238_v54, 5  ;;  %v5554_v15 = vmul.bf16 %v11541_v30, %v12520_v6  ;;  %v12521_v54 = vld [vmem:[#allocation58_spill] sm:$0xff]  ;;  %v5556_v45 = vmul.bf16 %v11546_v43, %v12522_v2 }
 0x3a3   : > { %8756 = vmatprep.subr.bf16.mxu1 %v9454_v40  ;;  %v5553_v13 = vmul.bf16 %v5536_v59, %v12521_v54 }
 0x3a4   : > { %v5241_v27 = vor.u32 %v5240_v28, %v5237_v9  ;;  %v5274_v9 = vshll.u32 %v5109_v17, 16  ;;  %v5596_v28 = vshrl.u32 %v5554_v15, 16  ;;  %v5599_v52 = vshll.u32 %v5554_v15, 16  ;;  %v12523_v15 = vld [vmem:[#allocation74_spill] sm:$0xff] }
 0x3a5   : > { %8725 = vmatmul.mubr.bf16.gmra.mrb[12].mxu1 %v5206_v18  ;;  %v5256_v18 = vshll.u32 %v5107_v29, 16  ;;  %v5557_v54 = vmul.bf16 %v11548_v32, %v12523_v15 }
 0x3a6   : > { %8728 = vmatprep.mubr.bf16.mxu1 %v5215_v19  ;;  %8757 = vmatpush3.bf16.msra.mxu1 %v9454_v40  ;;  %v5233_v40 = vsel %vm2341_vm1, %v5223_v57, %v5232_v56  ;;  %v5242_v23 = vsel %vm2341_vm1, %v5232_v56, %v5241_v27  ;;  %v5251_v33 = vsel %vm2341_vm1, %v5241_v27, %v5250_v11  ;;  %v5264_v57 = vrot.slane %v5262_v51, 4 }
 0x3a7   : > { %8758 = vmatprep.subr.bf16.mxu1 %v9455_v8  ;;  %v5258_v22 = vrot.slane %v5256_v18, 5  ;;  %v5276_v47 = vrot.slane %v5274_v9, 5  ;;  %v5555_v27 = vmul.bf16 %v11543_v34, %v10910_v36  ;;  %v5598_v18 = vrot.slane %v5596_v28, 3 }
 0x3a8   : > { %v5268_v56 = vor.u32 %v5267_v1, %v5264_v57  ;;  %v5601_v51 = vrot.slane %v5599_v52, 4  ;;  %v5617_v57 = vshll.u32 %v5556_v45, 16  ;;  %v5623_v52 = vshrl.u32 %v5557_v54, 16 }
 0x3a9   : > { %v5608_v59 = vshll.u32 %v5555_v27, 16 }
 0x3aa   : > { %8759 = vmatpush3.bf16.msra.mxu1 %v9455_v8  ;;  %v5253_v8 = vshrl.u32 %v5107_v29, 16  ;;  %v5588_v29 = vshrl.u32 %v5553_v13, 16 }
 0x3ab   : > { %8792 = vmatprep.subr.bf16.mxu1 %v11744_v63  ;;  %v5610_v6 = vrot.slane %v5608_v59, 4 }
 0x3ac   : > { %v5255_v19 = vrot.slane %v5253_v8, 4 }
 0x3ad   : > { %8729 = vmatmul.mubr.bf16.gmra.mrb[16].mxu1 %v5224_v53  ;;  %v5271_v53 = vshrl.u32 %v5109_v17, 16  ;;  %v5605_v17 = vshrl.u32 %v5555_v27, 16  ;;  %v5625_v27 = vrot.slane %v5623_v52, 3 }
 0x3ae   : > { %8732 = vmatprep.mubr.bf16.mxu1 %v5233_v40  ;;  %v5259_v4 = vor.u32 %v5258_v22, %v5255_v19  ;;  %v5591_v40 = vshll.u32 %v5553_v13, 16 }
 0x3af   : > { %v5273_v25 = vrot.slane %v5271_v53, 4  ;;  %v5607_v34 = vrot.slane %v5605_v17, 3  ;;  %v12524_v53 = vld [vmem:[#allocation75_spill] sm:$0xff] }
 0x3b0   : > { %v5260_v20 = vsel %vm2341_vm1, %v5250_v11, %v5259_v4  ;;  %v5269_v8 = vsel %vm2341_vm1, %v5259_v4, %v5268_v56  ;;  %v5593_v19 = vrot.slane %v5591_v40, 4  ;;  %v5602_v11 = vor.u32 %v5601_v51, %v5598_v18 }
 0x3b1   : > { %v5277_v22 = vor.u32 %v5276_v47, %v5273_v25  ;;  %v5619_v4 = vrot.slane %v5617_v57, 4  ;;  %v5558_v9 = vmul.bf16 %v11553_v49, %v12524_v53  ;;  %v5611_v28 = vor.u32 %v5610_v6, %v5607_v34  ;;  %v9457_v25 = vld [vmem:[#allocation8 + $0x1c8] sm:$0xff]   ;;  %v11778_v6 = vld [vmem:[#allocation2 + $0x50] sm:$0xff] }
 0x3b3   : > { %v5278_v36 = vsel %vm2341_vm1, %v5268_v56, %v5277_v22  ;;  %v5635_v56 = vshll.u32 %v5558_v9, 16  ;;  %v5612_v47 = vsel %vm2828_vm0, %v5602_v11, %v5611_v28 }
 0x3b5   : > { %8733 = vmatmul.mubr.bf16.gmra.mrb[20].mxu1 %v5242_v23  ;;  %v5590_v23 = vrot.slane %v5588_v29, 3  ;;  %v5626_v29 = vshll.u32 %v5557_v54, 16  ;;  %v5637_v49 = vrot.slane %v5635_v56, 4 }
 0x3b6   : > { %8736 = vmatprep.mubr.bf16.mxu1 %v5251_v33  ;;  %v5614_v33 = vshrl.u32 %v5556_v45, 16  ;;  %v12526_v45 = vld [vmem:[#allocation77_spill] sm:$0xff] }
 0x3b7   : > { %v5594_v1 = vor.u32 %v5593_v19, %v5590_v23  ;;  %v5628_v32 = vrot.slane %v5626_v29, 4  ;;  %v5560_v23 = vmul.bf16 %v11558_v50, %v12526_v45  ;;  %v9458_v19 = vld [vmem:[#allocation8 + $0x1d0] sm:$0xff]   ;;  %v5564_v45 = vmul.bf16 %v11570_v42, %v12477_v24 }
 0x3b8   : > { %v5616_v13 = vrot.slane %v5614_v33, 3 }
 0x3b9   : > { %v5603_v43 = vsel %vm2828_vm0, %v5594_v1, %v5602_v11  ;;  %v5629_v22 = vor.u32 %v5628_v32, %v5625_v27  ;;  %v5650_v33 = vshrl.u32 %v5560_v23, 16  ;;  %v5653_v57 = vshll.u32 %v5560_v23, 16 }
 0x3ba   : > { %v5620_v40 = vor.u32 %v5619_v4, %v5616_v13  ;;  %v5562_v4 = vmul.bf16 %v11562_v0, %v12474_v35 }
 0x3bb   : > { %v5655_v13 = vrot.slane %v5653_v57, 4  ;;  %v5689_v57 = vshll.u32 %v5564_v45, 16 }
 0x3bc   : > { %v5621_v51 = vsel %vm2828_vm0, %v5611_v28, %v5620_v40  ;;  %v5630_v1 = vsel %vm2828_vm0, %v5620_v40, %v5629_v22  ;;  %v9460_v28 = vld [vmem:[#allocation8 + $0x1e0] sm:$0xff]   ;;  %v5668_v56 = vshrl.u32 %v5562_v4, 16 }
 0x3bd   : > { %8737 = vmatmul.mubr.bf16.gmra.mrb[24].mxu1 %v5260_v20  ;;  %v5632_v20 = vshrl.u32 %v5558_v9, 16 }
 0x3be   : > { %8740 = vmatprep.mubr.bf16.mxu1 %v5269_v8  ;;  %v12525_v8 = vld [vmem:[#allocation76_spill] sm:$0xff] }
 0x3bf   : > { %v5559_v18 = vmul.bf16 %v11556_v3, %v12525_v8  ;;  %v5634_v2 = vrot.slane %v5632_v20, 3  ;;  %v9459_v3 = vld [vmem:[#allocation8 + $0x1d8] sm:$0xff]   ;;  %v5563_v8 = vmul.bf16 %v11564_v26, %v12475_v14 }
 0x3c1   : > { %v5641_v17 = vshrl.u32 %v5559_v18, 16  ;;  %v5644_v59 = vshll.u32 %v5559_v18, 16  ;;  %v5638_v11 = vor.u32 %v5637_v49, %v5634_v2  ;;  %v5670_v2 = vrot.slane %v5668_v56, 3 }
 0x3c2   : > { %v5677_v26 = vshrl.u32 %v5563_v8, 16 }
 0x3c3   : > { %v5646_v34 = vrot.slane %v5644_v59, 4  ;;  %v5639_v15 = vsel %vm2828_vm0, %v5629_v22, %v5638_v11  ;;  %v9462_v22 = vld [vmem:[#allocation8 + $0x1f0] sm:$0xff]   ;;  %v5680_v59 = vshll.u32 %v5563_v8, 16 }
 0x3c4   : > { %v5679_v42 = vrot.slane %v5677_v26, 3  ;;  %v12529_v26 = vld [vmem:[#allocation78_spill] sm:$0xff] }
 0x3c5   : > { %8741 = vmatmul.mubr.bf16.gmra.mrb[28].mxu1 %v5278_v36  ;;  %v5643_v36 = vrot.slane %v5641_v17, 3 }
 0x3c6   : > { %8760 = vmatprep.mubr.bf16.mxu1 %v5603_v43  ;;  %v5652_v43 = vrot.slane %v5650_v33, 3  ;;  %v5686_v33 = vshrl.u32 %v5564_v45, 16 }
 0x3c8   : > { %v5656_v20 = vor.u32 %v5655_v13, %v5652_v43  ;;  %v5691_v43 = vrot.slane %v5689_v57, 4  ;;  %v12527_v13 = vld [vmem:[#allocation84_spill] sm:$0xff] }
 0x3cd   : > { %8761 = vmatmul.mubr.bf16.vlgmr.msra.gmra.mrb[0].mxu1 %v5612_v47  ;;  %v9461_v47 = vld [vmem:[#allocation8 + $0x1e8] sm:$0xff]  }
 0x3ce   : > { %8764 = vmatprep.mubr.bf16.mxu1 %v5621_v51  ;;  %8793 = vmatpush3.bf16.msra.mxu1 %v11744_v63  ;;  %v5561_v63 = vmul.bf16 %v11778_v6, %v12472_v12  ;;  %v5647_v12 = vor.u32 %v5646_v34, %v5643_v36  ;;  %v5565_v36 = vmul.bf16 %v11578_v58, %v12481_v39 }
 0x3cf   : > { %8794 = vmatprep.subr.bf16.mxu1 %v9457_v25 }
 0x3d0   : > { %v5659_v29 = vshrl.u32 %v5561_v63, 16  ;;  %v5662_v40 = vshll.u32 %v5561_v63, 16  ;;  %v5648_v35 = vsel %vm2828_vm0, %v5638_v11, %v5647_v12  ;;  %v5657_v18 = vsel %vm2828_vm0, %v5647_v12, %v5656_v20 }
 0x3d2   : > { %8795 = vmatpush3.bf16.msra.mxu1 %v9457_v25  ;;  %v5671_v25 = vshll.u32 %v5562_v4, 16  ;;  %v5661_v27 = vrot.slane %v5659_v29, 3  ;;  %v5664_v32 = vrot.slane %v5662_v40, 4  ;;  %v5566_v4 = vmul.bf16 %v11580_v21, %v12527_v13  ;;  %v11819_v29 = vld [vmem:[#allocation8 + $0x200] sm:$0xff]  }
 0x3d3   : > { %8796 = vmatprep.subr.bf16.mxu1 %v9458_v19  ;;  %v5695_v40 = vshrl.u32 %v5565_v36, 16 }
 0x3d4   : > { %v5673_v49 = vrot.slane %v5671_v25, 4  ;;  %v5665_v14 = vor.u32 %v5664_v32, %v5661_v27  ;;  %v5704_v25 = vshrl.u32 %v5566_v4, 16  ;;  %v12528_v32 = vld [vmem:[#allocation57_spill] sm:$0xff] }
 0x3d5   : > { %8765 = vmatmul.mubr.bf16.gmra.mrb[4].mxu1 %v5630_v1  ;;  %v11783_v54 = vpop.f32.mrb[96].mxu0  ;;  %v5682_v1 = vrot.slane %v5680_v59, 4  ;;  %v5567_v8 = vmul.bf16 %v11590_v44, %v12528_v32  ;;  %v5568_v59 = vmul.bf16 %v11592_v10, %v12529_v26  ;;  %v12530_v10 = vld [vmem:[#allocation42_spill] sm:$0xff] }
 0x3d6   : > { %8768 = vmatprep.mubr.bf16.mxu1 %v5639_v15  ;;  %v11787_v53 = vpop.f32.mrb[97].mxu0  ;;  %8797 = vmatpush3.bf16.msra.mxu1 %v9458_v19  ;;  %v5674_v11 = vor.u32 %v5673_v49, %v5670_v2  ;;  %v5666_v24 = vsel %vm2828_vm0, %v5656_v20, %v5665_v14  ;;  %v5688_v15 = vrot.slane %v5686_v33, 3  ;;  %v5698_v20 = vshll.u32 %v5565_v36, 16 }
 0x3d7   : > { %v11789_v9 = vpop.f32.mrb[98].mxu0  ;;  %8798 = vmatprep.subr.bf16.mxu1 %v9459_v3  ;;  %v5683_v58 = vor.u32 %v5682_v1, %v5679_v42  ;;  %v5706_v49 = vrot.slane %v5704_v25, 3  ;;  %v5713_v57 = vshrl.u32 %v5567_v8, 16  ;;  %v5716_v44 = vshll.u32 %v5567_v8, 16 }
 0x3d8   : > { %v11791_v52 = vpop.f32.mrb[99].mxu0  ;;  %v5675_v34 = vsel %vm2828_vm0, %v5665_v14, %v5674_v11  ;;  %v5692_v56 = vor.u32 %v5691_v43, %v5688_v15  ;;  %v5700_v27 = vrot.slane %v5698_v20, 4  ;;  %v5725_v42 = vshll.u32 %v5568_v59, 16 }
 0x3d9   : > { %v5684_v21 = vsel %vm2828_vm0, %v5674_v11, %v5683_v58  ;;  %v5715_v36 = vrot.slane %v5713_v57, 3  ;;  %v11860_v57 = vld [vmem:[#allocation2 + $0x10] sm:$0xf0] }
 0x3da   : > { %8799 = vmatpush3.bf16.msra.mxu1 %v9459_v3  ;;  %v9463_v3 = vld [vmem:[#allocation8 + $0x1f8] sm:$0xff]   ;;  %v5727_v25 = vrot.slane %v5725_v42, 4  ;;  %v12532_v42 = vrot.slane %v11541_v30, 4  ;;  %v12533_v30 = vld [vmem:[#allocation80_spill] sm:$0xff] }
 0x3db   : > { %8800 = vmatprep.subr.bf16.mxu1 %v9460_v28 }
 0x3dd   : > { %8769 = vmatmul.mubr.bf16.gmra.mrb[8].mxu1 %v5648_v35  ;;  %v11797_v51 = vpop.f32.mrb[100].mxu0  ;;  %v5697_v35 = vrot.slane %v5695_v40, 3 }
 0x3de   : > { %8772 = vmatprep.mubr.bf16.mxu1 %v5657_v18  ;;  %v11801_v23 = vpop.f32.mrb[101].mxu0  ;;  %8801 = vmatpush3.bf16.msra.mxu1 %v9460_v28  ;;  %v5693_v18 = vsel %vm2828_vm0, %v5683_v58, %v5692_v56 }
 0x3df   : > { %v11803_v19 = vpop.f32.mrb[102].mxu0  ;;  %8802 = vmatprep.subr.bf16.mxu1 %v9461_v47  ;;  %v5701_v33 = vor.u32 %v5700_v27, %v5697_v35 }
 0x3e0   : > { %v11805_v17 = vpop.f32.mrb[103].mxu0 }
 0x3e1   : > { %v5702_v1 = vsel %vm2828_vm0, %v5692_v56, %v5701_v33 }
 0x3e2   : > { %8803 = vmatpush3.bf16.msra.mxu1 %v9461_v47  ;;  %v5707_v47 = vshll.u32 %v5566_v4, 16  ;;  %v12531_v4 = vld [vmem:[#allocation61_spill] sm:$0xff] }
 0x3e3   : > { %8804 = vmatprep.subr.bf16.mxu1 %v9462_v22  ;;  %v5569_v58 = vmul.bf16 %v12531_v4, %v12530_v10 }
 0x3e4   : > { %v5709_v45 = vrot.slane %v5707_v47, 4 }
 0x3e5   : > { %8773 = vmatmul.mubr.bf16.gmra.mrb[12].mxu1 %v5666_v24  ;;  %v11811_v63 = vpop.f32.mrb[104].mxu0  ;;  %v5722_v24 = vshrl.u32 %v5568_v59, 16  ;;  %v5734_v35 = vshll.u32 %v5569_v58, 16 }
 0x3e6   : > { %8776 = vmatprep.mubr.bf16.mxu1 %v5675_v34  ;;  %v11815_v28 = vpop.f32.mrb[105].mxu0  ;;  %8805 = vmatpush3.bf16.msra.mxu1 %v9462_v22  ;;  %v5718_v34 = vrot.slane %v5716_v44, 4 }
 0x3e7   : > { %v11817_v12 = vpop.f32.mrb[106].mxu0  ;;  %8806 = vmatprep.subr.bf16.mxu1 %v9463_v3  ;;  %v5724_v20 = vrot.slane %v5722_v24, 3  ;;  %v5736_v26 = vrot.slane %v5734_v35, 4  ;;  %v6031_v24 = vrot.slane %v11860_v57, 4  ;;  %v12534_v35 = vld [vmem:[#allocation82_spill] sm:$0xff] }
 0x3e8   : > { %v11821_v39 = vpop.f32.mrb[107].mxu0  ;;  %v5719_v56 = vor.u32 %v5718_v34, %v5715_v36  ;;  %v9472_v34 = vld [vmem:[#allocation11] sm:$0xff]  }
 0x3e9   : > { %v5728_v27 = vor.u32 %v5727_v25, %v5724_v20  ;;  %8888 = vmatprep.subr.bf16.mxu0 %v9472_v34  ;;  %v9474_v20 = vld [vmem:[#allocation11 + $0x10] sm:$0xff]   ;;  %v9465_v25 = vld [vmem:[#allocation8 + $0x208] sm:$0xff]  }
 0x3ea   : > { %8807 = vmatpush3.bf16.msra.mxu1 %v9463_v3  ;;  %v5710_v3 = vor.u32 %v5709_v45, %v5706_v49  ;;  %8889 = vmatpush3.bf16.msra.mxu0 %v9472_v34  ;;  %v12537_v34 = vld [vmem:[#allocation85_spill] sm:$0xff] }
 0x3eb   : > { %8840 = vmatprep.subr.bf16.mxu1 %v11819_v29  ;;  %v5729_v8 = vsel %vm2828_vm0, %v5719_v56, %v5728_v27 }
 0x3ec   : > { %v5711_v15 = vsel %vm2828_vm0, %v5701_v33, %v5710_v3  ;;  %v5720_v32 = vsel %vm2828_vm0, %v5710_v3, %v5719_v56 }
 0x3ed   : > { %8777 = vmatmul.mubr.bf16.gmra.mrb[16].mxu1 %v5684_v21  ;;  %v11828_v2 = vpop.f32.mrb[108].mxu0  ;;  %v5731_v21 = vshrl.u32 %v5569_v58, 16 }
 0x3ee   : > { %8780 = vmatprep.mubr.bf16.mxu1 %v5693_v18  ;;  %v11830_v22 = vpop.f32.mrb[109].mxu0 }
 0x3ef   : > { %v11832_v14 = vpop.f32.mrb[110].mxu0  ;;  %v5733_v45 = vrot.slane %v5731_v21, 3  ;;  %v9475_v21 = vld [vmem:[#allocation11 + $0x18] sm:$0xff]  }
 0x3f0   : > { %v11836_v11 = vpop.f32.mrb[111].mxu0 }
 0x3f1   : > { %v5737_v44 = vor.u32 %v5736_v26, %v5733_v45  ;;  %v9476_v26 = vld [vmem:[#allocation11 + $0x20] sm:$0xff]  }
 0x3f3   : > { %v5738_v3 = vsel %vm2828_vm0, %v5728_v27, %v5737_v44  ;;  %v9467_v44 = vld [vmem:[#allocation8 + $0x218] sm:$0xff]  }
 0x3f5   : > { %8781 = vmatmul.mubr.bf16.gmra.mrb[20].mxu1 %v5702_v1  ;;  %v11840_v43 = vpop.f32.mrb[112].mxu0  ;;  %v6033_v1 = vsel %vm1762_vm2, %v6031_v24, %v12532_v42  ;;  %v12535_v24 = vld [vmem:[#allocation81_spill] sm:$0xff]  ;;  %v9468_v42 = vld [vmem:[#allocation8 + $0x220] sm:$0xff]  }
 0x3f6   : > { %8784 = vmatprep.mubr.bf16.mxu1 %v5711_v15  ;;  %v11842_v13 = vpop.f32.mrb[113].mxu0  ;;  %v9473_v15 = vld [vmem:[#allocation11 + $0x8] sm:$0xff]  }
 0x3f7   : > { %v11846_v40 = vpop.f32.mrb[114].mxu0  ;;  %8890 = vmatprep.subr.bf16.mxu0 %v9473_v15 }
 0x3f8   : > { %v11848_v47 = vpop.f32.mrb[115].mxu0  ;;  %8891 = vmatpush3.bf16.msra.mxu0 %v9473_v15  ;;  %v12538_v15 = vld [vmem:[#allocation60_spill] sm:$0xff] }
 0x3f9   : > { %8892 = vmatprep.subr.bf16.mxu0 %v9474_v20 }
 0x3fc   : > { %8893 = vmatpush3.bf16.msra.mxu0 %v9474_v20  ;;  %v9470_v20 = vld [vmem:[#allocation8 + $0x230] sm:$0xff]  }
 0x3fd   : > { %8785 = vmatmul.mubr.bf16.gmra.mrb[24].mxu1 %v5720_v32  ;;  %v11852_v18 = vpop.f32.mrb[116].mxu0  ;;  %8894 = vmatprep.subr.bf16.mxu0 %v9475_v21 }
 0x3fe   : > { %8788 = vmatprep.mubr.bf16.mxu1 %v5729_v8  ;;  %v11854_v49 = vpop.f32.mrb[117].mxu0  ;;  %v9466_v8 = vld [vmem:[#allocation8 + $0x210] sm:$0xff]  }
 0x3ff   : > { %v11856_v59 = vpop.f32.mrb[118].mxu0 }
 0x400   : > { %v11858_v33 = vpop.f32.mrb[119].mxu0  ;;  %8895 = vmatpush3.bf16.msra.mxu0 %v9475_v21  ;;  %v12540_v21 = vrot.slane %v11558_v50, 4  ;;  %v12546_v50 = vld [vmem:[#allocation59_spill] sm:$0xff] }
 0x401   : > { %8896 = vmatprep.subr.bf16.mxu0 %v9476_v26 }
 0x404   : > { %8897 = vmatpush3.bf16.msra.mxu0 %v9476_v26 }
 0x405   : > { %8789 = vmatmul.mubr.bf16.gmra.mrb[28].mxu1 %v5738_v3  ;;  %v11867_v36 = vpop.f32.mrb[120].mxu0  ;;  %v9477_v3 = vld [vmem:[#allocation11 + $0x28] sm:$0xff]  }
 0x406   : > { %8808 = vmatprep.mubr.bf16.mxu1 %v6033_v1  ;;  %v11869_v10 = vpop.f32.mrb[121].mxu0  ;;  %8898 = vmatprep.subr.bf16.mxu0 %v9477_v3  ;;  %v9469_v1 = vld [vmem:[#allocation8 + $0x228] sm:$0xff]  }
 0x407   : > { %v11871_v4 = vpop.f32.mrb[122].mxu0 }
 0x408   : > { %v11873_v58 = vpop.f32.mrb[123].mxu0  ;;  %8899 = vmatpush3.bf16.msra.mxu0 %v9477_v3  ;;  %v12544_v3 = vld [vmem:[#allocation64_spill] sm:$0xff] }
 0x40d   : > { %8809 = vmatmul.mubr.bf16.vlgmr.msra.gmra.mrb[0].mxu1 %v12533_v30  ;;  %v11876_v56 = vpop.f32.mrb[124].mxu0  ;;  %v12539_v30 = vld [vmem:[#allocation79_spill] sm:$0xff] }
 0x40e   : > { %8812 = vmatprep.mubr.bf16.mxu1 %v12534_v35  ;;  %8841 = vmatpush3.bf16.msra.mxu1 %v11819_v29  ;;  %v11880_v27 = vpop.f32.mrb[125].mxu0  ;;  %v12536_v29 = vld [vmem:[#allocation83_spill] sm:$0xff]  ;;  %v6047_v35 = vsel %vm1762_vm2, %v12540_v21, %v12539_v30  ;;  %v12549_v21 = vld [vmem:[#allocation90_spill] sm:$0xff] }
 0x40f   : > { %v11882_v32 = vpop.f32.mrb[126].mxu0  ;;  %8842 = vmatprep.subr.bf16.mxu1 %v9465_v25 }
 0x410   : > { %v11884_v45 = vpop.f32.mrb[127].mxu0 }
 0x412   : > { %8843 = vmatpush3.bf16.msra.mxu1 %v9465_v25  ;;  %v9471_v25 = vld [vmem:[#allocation8 + $0x238] sm:$0xff]  }
 0x413   : > { %8844 = vmatprep.subr.bf16.mxu1 %v9466_v8 }
 0x415   : > { %8813 = vmatmul.mubr.bf16.gmra.mrb[4].mxu1 %v12535_v24  ;;  %v12543_v24 = vld [vmem:[#allocation63_spill] sm:$0xff] }
 0x416   : > { %8816 = vmatprep.mubr.bf16.mxu1 %v12536_v29  ;;  %8845 = vmatpush3.bf16.msra.mxu1 %v9466_v8  ;;  %v12541_v8 = vrot.slane %v11562_v0, 4  ;;  %v12545_v29 = vld [vmem:[#allocation87_spill] sm:$0xff] }
 0x417   : > { %8846 = vmatprep.subr.bf16.mxu1 %v9467_v44 }
 0x418   : > { %v6049_v26 = vsel %vm1762_vm2, %v12539_v30, %v12541_v8 }
 0x41a   : > { %8847 = vmatpush3.bf16.msra.mxu1 %v9467_v44  ;;  %v12542_v44 = vld [vmem:[#allocation62_spill] sm:$0xff] }
 0x41b   : > { %8848 = vmatprep.subr.bf16.mxu1 %v9468_v42 }
 0x41d   : > { %8817 = vmatmul.mubr.bf16.gmra.mrb[8].mxu1 %v12537_v34  ;;  %v12547_v34 = vld [vmem:[#allocation88_spill] sm:$0xff] }
 0x41e   : > { %8820 = vmatprep.mubr.bf16.mxu1 %v12538_v15  ;;  %8849 = vmatpush3.bf16.msra.mxu1 %v9468_v42  ;;  %v6322_v42 = vmul.bf16 %v11860_v57, %v12546_v50  ;;  %v12548_v15 = vld [vmem:[#allocation89_spill] sm:$0xff]  ;;  %v6330_v57 = vmul.bf16 %v11778_v6, %v12518_v55  ;;  %v12552_v50 = vld [vmem:[#allocation66_spill] sm:$0xff] }
 0x41f   : > { %8850 = vmatprep.subr.bf16.mxu1 %v9469_v1 }
 0x420   : > { %v6360_v0 = vshll.u32 %v6322_v42, 16  ;;  %v6428_v8 = vshrl.u32 %v6330_v57, 16 }
 0x422   : > { %8851 = vmatpush3.bf16.msra.mxu1 %v9469_v1  ;;  %v6357_v1 = vshrl.u32 %v6322_v42, 16  ;;  %v6362_v30 = vrot.slane %v6360_v0, 5 }
 0x423   : > { %8852 = vmatprep.subr.bf16.mxu1 %v9470_v20 }
 0x425   : > { %8821 = vmatmul.mubr.bf16.gmra.mrb[12].mxu1 %v6047_v35 }
 0x426   : > { %8824 = vmatprep.mubr.bf16.mxu1 %v6049_v26  ;;  %8853 = vmatpush3.bf16.msra.mxu1 %v9470_v20  ;;  %v6359_v20 = vrot.slane %v6357_v1, 4  ;;  %v6431_v26 = vshll.u32 %v6330_v57, 16 }
 0x427   : > { %8854 = vmatprep.subr.bf16.mxu1 %v9471_v25 }
 0x42a   : > { %8855 = vmatpush3.bf16.msra.mxu1 %v9471_v25  ;;  %v6363_v25 = vor.u32 %v6362_v30, %v6359_v20  ;;  %v11942_v30 = vld [vmem:[%s12257_s6 + $0x1] ss:$0 sm:$0xff] }
 0x42c   : > { %v6372_v35 = vsel %vm2341_vm1, %v6363_v25, %v11654_v61 }
 0x42d   : > { %8825 = vmatmul.mubr.bf16.gmra.mrb[16].mxu1 %v12542_v44  ;;  %v6430_v44 = vrot.slane %v6428_v8, 4 }
 0x42e   : > { %8828 = vmatprep.mubr.bf16.mxu1 %v12543_v24  ;;  %v6433_v24 = vrot.slane %v6431_v26, 5 }
 0x430   : > { %v6434_v61 = vor.u32 %v6433_v24, %v6430_v44  ;;  %v12555_v24 = vld [vmem:[#allocation25_spill] sm:$0xff] }
 0x435   : > { %8829 = vmatmul.mubr.bf16.gmra.mrb[20].mxu1 %v12544_v3  ;;  %v12550_v3 = vld [vmem:[#allocation67_spill] sm:$0xff] }
 0x436   : > { %8832 = vmatprep.mubr.bf16.mxu1 %v12545_v29  ;;  %v12551_v29 = vld [vmem:[#allocation68_spill] sm:$0xff] }
 0x43d   : > { %8833 = vmatmul.mubr.bf16.gmra.mrb[24].mxu1 %v12547_v34 }
 0x43e   : > { %8836 = vmatprep.mubr.bf16.mxu1 %v12548_v15 }
 0x445   : > { %8837 = vmatmul.mubr.bf16.gmra.mrb[28].mxu1 %v12549_v21 }
 0x446   : > { %8856 = vmatprep.mubr.bf16.mxu1 %v6372_v35 }
 0x44d   : > { %8857 = vmatmul.mubr.bf16.vlgmr.msra.gmra.mrb[0].mxu1 %v11665_v38  ;;  %v6435_v38 = vsel %vm2341_vm1, %v12552_v50, %v6434_v61  ;;  %v12556_v50 = vld [vmem:[#allocation26_spill] sm:$0xff] }
 0x44e   : > { %8860 = vmatprep.mubr.bf16.mxu1 %v11668_v48  ;;  %v12553_v48 = vld [vmem:[#allocation91_spill] sm:$0xff] }
 0x44f   : > { %v6444_v55 = vsel %vm2341_vm1, %v6434_v61, %v12553_v48 }
 0x455   : > { %8861 = vmatmul.mubr.bf16.gmra.mrb[4].mxu1 %v11671_v7  ;;  %v12554_v7 = vld [vmem:[#allocation69_spill] sm:$0xff] }
 0x456   : > { %8864 = vmatprep.mubr.bf16.mxu1 %v11675_v60  ;;  %v6321_v60 = vld [vmem:[#allocation2 + $0x90] sm:$0x1f] }
 0x457   : > { %v6338_v6 = vmul.bf16 %v6321_v60, %v12519_v5  ;;  %v6856_v60 = vunpack.c.h.bf16 %v12556_v50 }
 0x459   : > { %v6500_v42 = vshrl.u32 %v6338_v6, 16  ;;  %v6503_v1 = vshll.u32 %v6338_v6, 16 }
 0x45b   : > { %v6502_v0 = vrot.slane %v6500_v42, 4  ;;  %v6505_v34 = vrot.slane %v6503_v1, 5 }
 0x45d   : > { %8865 = vmatmul.mubr.bf16.gmra.mrb[8].mxu1 %v12550_v3  ;;  %v6506_v15 = vor.u32 %v6505_v34, %v6502_v0  ;;  %v6857_v3 = vunpack.c.l.bf16 %v12555_v24 }
 0x45e   : > { %8868 = vmatprep.mubr.bf16.mxu1 %v12551_v29 }
 0x45f   : > { %v6507_v20 = vsel %vm2341_vm1, %v11720_v31, %v6506_v15 }
 0x465   : > { %8869 = vmatmul.mubr.bf16.gmra.mrb[12].mxu1 %v6435_v38 }
 0x466   : > { %8872 = vmatprep.mubr.bf16.mxu1 %v6444_v55  ;;  %v6858_v55 = vunpack.c.h.bf16 %v12555_v24 }
 0x46d   : > { %8873 = vmatmul.mubr.bf16.gmra.mrb[16].mxu1 %v12554_v7 }
 0x46e   : > { %8876 = vmatprep.mubr.bf16.mxu1 %v11712_v62  ;;  %v9478_v62 = vld [vmem:[#allocation11 + $0x30] sm:$0xff]  }
 0x46f   : > { %8900 = vmatprep.subr.bf16.mxu0 %v9478_v62 }
 0x470   : > { %8901 = vmatpush3.bf16.msra.mxu0 %v9478_v62 }
 0x475   : > { %8877 = vmatmul.mubr.bf16.gmra.mrb[20].mxu1 %v11715_v41  ;;  %v9479_v41 = vld [vmem:[#allocation11 + $0x38] sm:$0xff]  }
 0x476   : > { %8880 = vmatprep.mubr.bf16.mxu1 %v11718_v37  ;;  %8902 = vmatprep.subr.bf16.mxu0 %v9479_v41  ;;  %v11930_v37 = vld [vmem:[#allocation10] sm:$0xff]  }
 0x477   : > { %8903 = vmatpush3.bf16.msra.mxu0 %v9479_v41 }
 0x478   : > { %8936 = vmatprep.subr.bf16.mxu0 %v11930_v37 }
 0x47d   : > { %8881 = vmatmul.mubr.bf16.gmra.mrb[24].mxu1 %v11723_v46 }
 0x47e   : > { %8884 = vmatprep.mubr.bf16.mxu1 %v11729_v16  ;;  %v11936_v16 = vld [vmem:[%s12257_s6] ss:$0 sm:$0xff] }
 0x485   : > { %8885 = vmatmul.mubr.bf16.gmra.mrb[28].mxu1 %v6507_v20 }
 0x520   : > { %v8858_v46 = vpop.f32.mrb[0].mxu1 }
 0x521   : > { %v8984_v5 = vadd.f32 %v8858_v46, %v11783_v54  ;;  %v6606_v31 = vpop.f32.mrb[1].mxu1 }
 0x522   : > { %v8985_v25 = vadd.f32 %v6606_v31, %v11787_v53  ;;  %v8859_v21 = vpop.f32.mrb[2].mxu1  ;;  %v6855_v53 = vunpack.c.l.bf16 %v12556_v50  ;;  %v12557_v31 = vld [vmem:[#allocation27_spill] sm:$0xff] }
 0x523   : > { %v6772_v35 = vmul.f32 %v8984_v5, %v11936_v16  ;;  %v8986_v57 = vadd.f32 %v8859_v21, %v11789_v9  ;;  %v6609_v8 = vpop.f32.mrb[3].mxu1 }
 0x524   : > { %v6770_v26 = vmul.f32 %v8985_v25, %v11936_v16  ;;  %v8987_v44 = vadd.f32 %v6609_v8, %v11791_v52  ;;  %v6861_v25 = vunpack.c.l.bf16 %v12557_v31  ;;  %v12558_v8 = vld [vmem:[#allocation28_spill] sm:$0xff] }
 0x525   : > { %v6809_v54 = vadd.f32 %v11942_v30, %v6772_v35  ;;  %v6773_v29 = vmul.f32 %v8986_v57, %v11936_v16 }
 0x526   : > { %v6807_v61 = vadd.f32 %v11942_v30, %v6770_v26  ;;  %v6771_v38 = vmul.f32 %v8987_v44, %v11936_v16  ;;  %v6859_v26 = vunpack.c.l.bf16 %v12558_v8 }
 0x527   : > { %v6889_v48 = vadd.f32 %v6857_v3, %v6809_v54  ;;  %v6810_v9 = vadd.f32 %v11942_v30, %v6773_v29 }
 0x528   : > { %v6887_v7 = vadd.f32 %v6855_v53, %v6807_v61  ;;  %v6808_v52 = vadd.f32 %v11942_v30, %v6771_v38  ;;  %v8862_v6 = vpop.f32.mrb[4].mxu1 }
 0x529   : > { %v6921_v42 = vmul.f32 0.1, %v6889_v48  ;;  %v6890_v1 = vadd.f32 %v6858_v55, %v6810_v9  ;;  %v8988_v0 = vadd.f32 %v8862_v6, %v11797_v51  ;;  %v6622_v34 = vpop.f32.mrb[5].mxu1  ;;  %v6862_v55 = vunpack.c.h.bf16 %v12557_v31 }
 0x52a   : > { %v6888_v15 = vadd.f32 %v6856_v60, %v6808_v52  ;;  %v8989_v20 = vadd.f32 %v6622_v34, %v11801_v23  ;;  %v8863_v62 = vpop.f32.mrb[6].mxu1  ;;  %v6919_v41 = vmul.f32 0.1, %v6887_v7  ;;  %v6860_v52 = vunpack.c.h.bf16 %v12558_v8 }
 0x52b   : > { %v6922_v46 = vmul.f32 0.1, %v6890_v1  ;;  %v6776_v5 = vmul.f32 %v8988_v0, %v11936_v16  ;;  %v8990_v21 = vadd.f32 %v8863_v62, %v11803_v19  ;;  %v6625_v35 = vpop.f32.mrb[7].mxu1  ;;  %v6953_v54 = vmax.f32 %v6889_v48, %v6921_v42 }
 0x52c   : > { %v6774_v57 = vmul.f32 %v8989_v20, %v11936_v16  ;;  %v8991_v51 = vadd.f32 %v6625_v35, %v11805_v17  ;;  %v6920_v44 = vmul.f32 0.1, %v6888_v15  ;;  %v6951_v50 = vmax.f32 %v6887_v7, %v6919_v41  ;;  %v9481_v7 = vld [vmem:[#allocation10 + $0x8] sm:$0xff]  }
 0x52d   : > { %v6954_v24 = vmax.f32 %v6890_v1, %v6922_v46  ;;  %v6813_v23 = vadd.f32 %v11942_v30, %v6776_v5  ;;  %v6777_v3 = vmul.f32 %v8990_v21, %v11936_v16  ;;  %v12559_v5 = vld [vmem:[#allocation29_spill] sm:$0xff] }
 0x52e   : > { %v6811_v29 = vadd.f32 %v11942_v30, %v6774_v57  ;;  %v6775_v61 = vmul.f32 %v8991_v51, %v11936_v16  ;;  %v6952_v19 = vmax.f32 %v6888_v15, %v6920_v44  ;;  %v6865_v31 = vunpack.c.l.bf16 %v12559_v5  ;;  %v12560_v57 = vld [vmem:[#allocation30_spill] sm:$0xff] }
 0x52f   : > { %v7016_v53 = vpack.c.bf16 %v6954_v24, %v6953_v54  ;;  %v6893_v38 = vadd.f32 %v6861_v25, %v6813_v23  ;;  %v6814_v9 = vadd.f32 %v11942_v30, %v6777_v3  ;;  %v6863_v8 = vunpack.c.l.bf16 %v12560_v57 }
 0x530   : > { %v6891_v17 = vadd.f32 %v6859_v26, %v6811_v29  ;;  %v6812_v48 = vadd.f32 %v11942_v30, %v6775_v61  ;;  %v8866_v60 = vpop.f32.mrb[8].mxu1  ;;  %v7015_v6 = vpack.c.bf16 %v6952_v19, %v6951_v50 }
 0x531   : > { %v6894_v42 = vadd.f32 %v6862_v55, %v6814_v9  ;;  %v8992_v1 = vadd.f32 %v8866_v60, %v11811_v63  ;;  %v6638_v0 = vpop.f32.mrb[9].mxu1  ;;  %v6925_v34 = vmul.f32 0.1, %v6893_v38 }
 0x532   : > { %v6892_v15 = vadd.f32 %v6860_v52, %v6812_v48  ;;  %v8993_v20 = vadd.f32 %v6638_v0, %v11815_v28  ;;  %v8867_v62 = vpop.f32.mrb[10].mxu1  ;;  %8904 = vmatprep.mubr.bf16.mxu0 %v7015_v6  ;;  %v6923_v41 = vmul.f32 0.1, %v6891_v17 }
 0x533   : > { %v6780_v46 = vmul.f32 %v8992_v1, %v11936_v16  ;;  %v8994_v25 = vadd.f32 %v8867_v62, %v11817_v12  ;;  %v6641_v21 = vpop.f32.mrb[11].mxu1  ;;  %8905 = vmatmul.mubr.bf16.vlgmr.msra.gmra.mrb[128].mxu0 %v7016_v53  ;;  %v6926_v35 = vmul.f32 0.1, %v6894_v42  ;;  %v6957_v54 = vmax.f32 %v6893_v38, %v6925_v34  ;;  %v9482_v12 = vld [vmem:[#allocation10 + $0x10] sm:$0xff]   ;;  %v12561_v62 = vld [vmem:[#allocation31_spill] sm:$0xff] }
 0x534   : > { %v6778_v63 = vmul.f32 %v8993_v20, %v11936_v16  ;;  %v8995_v26 = vadd.f32 %v6641_v21, %v11821_v39  ;;  %8937 = vmatpush3.bf16.msra.mxu0 %v11930_v37  ;;  %v6924_v28 = vmul.f32 0.1, %v6892_v15  ;;  %v6955_v29 = vmax.f32 %v6891_v17, %v6923_v41 }
 0x535   : > { %v6817_v51 = vadd.f32 %v11942_v30, %v6780_v46  ;;  %v6781_v44 = vmul.f32 %v8994_v25, %v11936_v16  ;;  %v6958_v24 = vmax.f32 %v6894_v42, %v6926_v35  ;;  %8938 = vmatprep.subr.bf16.mxu0 %v9481_v7  ;;  %v6866_v37 = vunpack.c.h.bf16 %v12559_v5  ;;  %v9483_v42 = vld [vmem:[#allocation10 + $0x18] sm:$0xff]  }
 0x536   : > { %v6815_v23 = vadd.f32 %v11942_v30, %v6778_v63  ;;  %v6779_v3 = vmul.f32 %v8995_v26, %v11936_v16  ;;  %v6956_v61 = vmax.f32 %v6892_v15, %v6924_v28  ;;  %v6864_v38 = vunpack.c.h.bf16 %v12560_v57  ;;  %v9484_v26 = vld [vmem:[#allocation10 + $0x20] sm:$0xff]  }
 0x537   : > { %v6897_v50 = vadd.f32 %v6865_v31, %v6817_v51  ;;  %v6818_v39 = vadd.f32 %v11942_v30, %v6781_v44  ;;  %v7018_v19 = vpack.c.bf16 %v6958_v24, %v6957_v54  ;;  %v6869_v41 = vunpack.c.l.bf16 %v12561_v62  ;;  %v12562_v31 = vld [vmem:[#allocation32_spill] sm:$0xff] }
 0x538   : > { %v6895_v53 = vadd.f32 %v6863_v8, %v6815_v23  ;;  %v6816_v9 = vadd.f32 %v11942_v30, %v6779_v3  ;;  %v8870_v55 = vpop.f32.mrb[12].mxu1  ;;  %v7017_v48 = vpack.c.bf16 %v6956_v61, %v6955_v29  ;;  %8939 = vmatpush3.bf16.msra.mxu0 %v9481_v7  ;;  %v6867_v25 = vunpack.c.l.bf16 %v12562_v31 }
 0x539   : > { %v6898_v52 = vadd.f32 %v6866_v37, %v6818_v39  ;;  %v8996_v60 = vadd.f32 %v8870_v55, %v11828_v2  ;;  %v6654_v6 = vpop.f32.mrb[13].mxu1  ;;  %v6929_v17 = vmul.f32 0.1, %v6897_v50  ;;  %8940 = vmatprep.subr.bf16.mxu0 %v9482_v12  ;;  %v6868_v29 = vunpack.c.h.bf16 %v12562_v31 }
 0x53a   : > { %v6896_v1 = vadd.f32 %v6864_v38, %v6816_v9  ;;  %v8997_v0 = vadd.f32 %v6654_v6, %v11830_v22  ;;  %v8871_v34 = vpop.f32.mrb[14].mxu1  ;;  %8908 = vmatprep.mubr.bf16.mxu0 %v7017_v48  ;;  %v6927_v15 = vmul.f32 0.1, %v6895_v53  ;;  %v9485_v9 = vld [vmem:[#allocation10 + $0x28] sm:$0xff]  }
 0x53b   : > { %v6784_v20 = vmul.f32 %v8996_v60, %v11936_v16  ;;  %v8998_v46 = vadd.f32 %v8871_v34, %v11832_v14  ;;  %v6657_v7 = vpop.f32.mrb[15].mxu1  ;;  %8909 = vmatmul.mubr.bf16.gmra.mrb[132].mxu0 %v7018_v19  ;;  %v6930_v5 = vmul.f32 0.1, %v6898_v52  ;;  %v6961_v57 = vmax.f32 %v6897_v50, %v6929_v17  ;;  %v12563_v6 = vld [vmem:[#allocation33_spill] sm:$0xff]  ;;  %v12564_v34 = vld [vmem:[#allocation34_spill] sm:$0xff] }
 0x53c   : > { %v6782_v2 = vmul.f32 %v8997_v0, %v11936_v16  ;;  %v8999_v21 = vadd.f32 %v6657_v7, %v11836_v11  ;;  %v6928_v35 = vmul.f32 0.1, %v6896_v1  ;;  %8941 = vmatpush3.bf16.msra.mxu0 %v9482_v12  ;;  %v6959_v51 = vmax.f32 %v6895_v53, %v6927_v15 }
 0x53d   : > { %v6821_v22 = vadd.f32 %v11942_v30, %v6784_v20  ;;  %v6785_v63 = vmul.f32 %v8998_v46, %v11936_v16  ;;  %v6962_v8 = vmax.f32 %v6898_v52, %v6930_v5  ;;  %8942 = vmatprep.subr.bf16.mxu0 %v9483_v42  ;;  %v6870_v11 = vunpack.c.h.bf16 %v12561_v62  ;;  %v9486_v5 = vld [vmem:[#allocation10 + $0x30] sm:$0xff]  }
 0x53e   : > { %v6819_v14 = vadd.f32 %v11942_v30, %v6782_v2  ;;  %v6783_v28 = vmul.f32 %v8999_v21, %v11936_v16  ;;  %v6960_v44 = vmax.f32 %v6896_v1, %v6928_v35  ;;  %v6873_v17 = vunpack.c.l.bf16 %v12563_v6 }
 0x53f   : > { %v6901_v54 = vadd.f32 %v6869_v41, %v6821_v22  ;;  %v6822_v24 = vadd.f32 %v11942_v30, %v6785_v63  ;;  %v7020_v12 = vpack.c.bf16 %v6962_v8, %v6961_v57  ;;  %v6871_v15 = vunpack.c.l.bf16 %v12564_v34 }
 0x540   : > { %v6899_v23 = vadd.f32 %v6867_v25, %v6819_v14  ;;  %v6820_v3 = vadd.f32 %v11942_v30, %v6783_v28  ;;  %v8874_v61 = vpop.f32.mrb[16].mxu1  ;;  %v7019_v50 = vpack.c.bf16 %v6960_v44, %v6959_v51  ;;  %8943 = vmatpush3.bf16.msra.mxu0 %v9483_v42  ;;  %v6872_v8 = vunpack.c.h.bf16 %v12564_v34 }
 0x541   : > { %v6902_v39 = vadd.f32 %v6870_v11, %v6822_v24  ;;  %v9000_v37 = vadd.f32 %v8874_v61, %v11840_v43  ;;  %v6670_v19 = vpop.f32.mrb[17].mxu1  ;;  %v6933_v53 = vmul.f32 0.1, %v6901_v54  ;;  %8944 = vmatprep.subr.bf16.mxu0 %v9484_v26  ;;  %v9487_v24 = vld [vmem:[#allocation10 + $0x38] sm:$0xff]  }
 0x542   : > { %v6900_v38 = vadd.f32 %v6868_v29, %v6820_v3  ;;  %v9001_v55 = vadd.f32 %v6670_v19, %v11842_v13  ;;  %v8875_v48 = vpop.f32.mrb[18].mxu1  ;;  %8912 = vmatprep.mubr.bf16.mxu0 %v7019_v50  ;;  %v6931_v52 = vmul.f32 0.1, %v6899_v23  ;;  %v12565_v61 = vld [vmem:[#allocation35_spill] sm:$0xff] }
 0x543   : > { %v6788_v60 = vmul.f32 %v9000_v37, %v11936_v16  ;;  %v9002_v1 = vadd.f32 %v8875_v48, %v11846_v40  ;;  %v6673_v42 = vpop.f32.mrb[19].mxu1  ;;  %8913 = vmatmul.mubr.bf16.gmra.mrb[136].mxu0 %v7020_v12  ;;  %v6934_v0 = vmul.f32 0.1, %v6902_v39  ;;  %v6965_v46 = vmax.f32 %v6901_v54, %v6933_v53  ;;  %v12566_v53 = vld [vmem:[#allocation36_spill] sm:$0xff] }
 0x544   : > { %v6786_v43 = vmul.f32 %v9001_v55, %v11936_v16  ;;  %v9003_v20 = vadd.f32 %v6673_v42, %v11848_v47  ;;  %v6932_v62 = vmul.f32 0.1, %v6900_v38  ;;  %8945 = vmatpush3.bf16.msra.mxu0 %v9484_v26  ;;  %v6963_v31 = vmax.f32 %v6899_v23, %v6931_v52 }
 0x545   : > { %v6825_v13 = vadd.f32 %v11942_v30, %v6788_v60  ;;  %v6789_v41 = vmul.f32 %v9002_v1, %v11936_v16  ;;  %v6966_v7 = vmax.f32 %v6902_v39, %v6934_v0  ;;  %8946 = vmatprep.subr.bf16.mxu0 %v9485_v9  ;;  %v6874_v47 = vunpack.c.h.bf16 %v12563_v6 }
 0x546   : > { %v6823_v40 = vadd.f32 %v11942_v30, %v6786_v43  ;;  %v6787_v2 = vmul.f32 %v9003_v20, %v11936_v16  ;;  %v6964_v25 = vmax.f32 %v6900_v38, %v6932_v62  ;;  %v6877_v50 = vunpack.c.l.bf16 %v12565_v61 }
 0x547   : > { %v6905_v21 = vadd.f32 %v6873_v17, %v6825_v13  ;;  %v6826_v35 = vadd.f32 %v11942_v30, %v6789_v41  ;;  %v7022_v22 = vpack.c.bf16 %v6966_v7, %v6965_v46  ;;  %v6876_v20 = vunpack.c.h.bf16 %v12566_v53 }
 0x548   : > { %v6903_v63 = vadd.f32 %v6871_v15, %v6823_v40  ;;  %v6824_v57 = vadd.f32 %v11942_v30, %v6787_v2  ;;  %v8878_v26 = vpop.f32.mrb[20].mxu1  ;;  %v7021_v14 = vpack.c.bf16 %v6964_v25, %v6963_v31  ;;  %8947 = vmatpush3.bf16.msra.mxu0 %v9485_v9  ;;  %v6875_v9 = vunpack.c.l.bf16 %v12566_v53 }
 0x549   : > { %v6906_v28 = vadd.f32 %v6874_v47, %v6826_v35  ;;  %v9004_v51 = vadd.f32 %v8878_v26, %v11852_v18  ;;  %v6686_v44 = vpop.f32.mrb[21].mxu1  ;;  %v6937_v54 = vmul.f32 0.1, %v6905_v21  ;;  %8948 = vmatprep.subr.bf16.mxu0 %v9486_v5  ;;  %v12567_v35 = vld [vmem:[#allocation37_spill] sm:$0xff] }
 0x54a   : > { %v6904_v11 = vadd.f32 %v6872_v8, %v6824_v57  ;;  %v9005_v12 = vadd.f32 %v6686_v44, %v11854_v49  ;;  %v8879_v23 = vpop.f32.mrb[22].mxu1  ;;  %8916 = vmatprep.mubr.bf16.mxu0 %v7021_v14  ;;  %v6935_v3 = vmul.f32 0.1, %v6903_v63  ;;  %v6881_v47 = vunpack.c.l.bf16 %v12567_v35 }
 0x54b   : > { %v6792_v29 = vmul.f32 %v9004_v51, %v11936_v16  ;;  %v9006_v39 = vadd.f32 %v8879_v23, %v11856_v59  ;;  %v6689_v37 = vpop.f32.mrb[23].mxu1  ;;  %8917 = vmatmul.mubr.bf16.gmra.mrb[140].mxu0 %v7022_v22  ;;  %v6938_v19 = vmul.f32 0.1, %v6906_v28  ;;  %v6969_v52 = vmax.f32 %v6905_v21, %v6937_v54 }
 0x54c   : > { %v6790_v18 = vmul.f32 %v9005_v12, %v11936_v16  ;;  %v9007_v38 = vadd.f32 %v6689_v37, %v11858_v33  ;;  %v6936_v55 = vmul.f32 0.1, %v6904_v11  ;;  %8949 = vmatpush3.bf16.msra.mxu0 %v9486_v5  ;;  %v6967_v17 = vmax.f32 %v6903_v63, %v6935_v3 }
 0x54d   : > { %v6829_v49 = vadd.f32 %v11942_v30, %v6792_v29  ;;  %v6793_v48 = vmul.f32 %v9006_v39, %v11936_v16  ;;  %v6970_v60 = vmax.f32 %v6906_v28, %v6938_v19  ;;  %8950 = vmatprep.subr.bf16.mxu0 %v9487_v24  ;;  %v6878_v33 = vunpack.c.h.bf16 %v12565_v61 }
 0x54e   : > { %v6827_v59 = vadd.f32 %v11942_v30, %v6790_v18  ;;  %v6791_v6 = vmul.f32 %v9007_v38, %v11936_v16  ;;  %v6968_v1 = vmax.f32 %v6904_v11, %v6936_v55  ;;  %v6882_v29 = vunpack.c.h.bf16 %v12567_v35 }
 0x54f   : > { %v6909_v42 = vadd.f32 %v6877_v50, %v6829_v49  ;;  %v6830_v0 = vadd.f32 %v11942_v30, %v6793_v48  ;;  %v7024_v43 = vpack.c.bf16 %v6970_v60, %v6969_v52 }
 0x550   : > { %v6907_v34 = vadd.f32 %v6875_v9, %v6827_v59  ;;  %v6828_v15 = vadd.f32 %v11942_v30, %v6791_v6  ;;  %v8882_v62 = vpop.f32.mrb[24].mxu1  ;;  %v7023_v13 = vpack.c.bf16 %v6968_v1, %v6967_v17  ;;  %8951 = vmatpush3.bf16.msra.mxu0 %v9487_v24  ;;  %v12569_v59 = vld [vmem:[#allocation39_spill] sm:$0xff] }
 0x551   : > { %v6910_v41 = vadd.f32 %v6878_v33, %v6830_v0  ;;  %v9008_v46 = vadd.f32 %v8882_v62, %v11867_v36  ;;  %v6702_v7 = vpop.f32.mrb[25].mxu1  ;;  %v6941_v5 = vmul.f32 0.1, %v6909_v42  ;;  %v12568_v36 = vld [vmem:[#allocation38_spill] sm:$0xff]  ;;  %v6885_v6 = vunpack.c.l.bf16 %v12569_v59 }
 0x552   : > { %v6908_v40 = vadd.f32 %v6876_v20, %v6828_v15  ;;  %v9009_v2 = vadd.f32 %v6702_v7, %v11869_v10  ;;  %v8883_v31 = vpop.f32.mrb[26].mxu1  ;;  %8920 = vmatprep.mubr.bf16.mxu0 %v7023_v13  ;;  %v6939_v25 = vmul.f32 0.1, %v6907_v34  ;;  %v6879_v26 = vunpack.c.l.bf16 %v12568_v36 }
 0x553   : > { %v6796_v21 = vmul.f32 %v9008_v46, %v11936_v16  ;;  %v9010_v22 = vadd.f32 %v8883_v31, %v11871_v4  ;;  %v6705_v63 = vpop.f32.mrb[27].mxu1  ;;  %8921 = vmatmul.mubr.bf16.gmra.mrb[144].mxu0 %v7024_v43  ;;  %v6942_v57 = vmul.f32 0.1, %v6910_v41  ;;  %v6973_v44 = vmax.f32 %v6909_v42, %v6941_v5 }
 0x554   : > { %v6794_v8 = vmul.f32 %v9009_v2, %v11936_v16  ;;  %v9011_v14 = vadd.f32 %v6705_v63, %v11873_v58  ;;  %v6940_v28 = vmul.f32 0.1, %v6908_v40  ;;  %v6971_v11 = vmax.f32 %v6907_v34, %v6939_v25 }
 0x555   : > { %v6833_v10 = vadd.f32 %v11942_v30, %v6796_v21  ;;  %v6797_v51 = vmul.f32 %v9010_v22, %v11936_v16  ;;  %v6974_v54 = vmax.f32 %v6910_v41, %v6942_v57  ;;  %v6880_v39 = vunpack.c.h.bf16 %v12568_v36 }
 0x556   : > { %v6831_v24 = vadd.f32 %v11942_v30, %v6794_v8  ;;  %v6795_v4 = vmul.f32 %v9011_v14, %v11936_v16  ;;  %v6972_v12 = vmax.f32 %v6908_v40, %v6940_v28  ;;  %v6886_v40 = vunpack.c.h.bf16 %v12569_v59 }
 0x557   : > { %v6913_v23 = vadd.f32 %v6881_v47, %v6833_v10  ;;  %v6834_v3 = vadd.f32 %v11942_v30, %v6797_v51  ;;  %v7026_v61 = vpack.c.bf16 %v6974_v54, %v6973_v44  ;;  %v12572_v51 = vld [vmem:[#allocation24_spill] sm:$0xff]  ;;  %v12573_v44 = vld [vmem:[#allocation43_spill] sm:$0xff] }
 0x558   : > { %v6911_v58 = vadd.f32 %v6879_v26, %v6831_v24  ;;  %v6832_v50 = vadd.f32 %v11942_v30, %v6795_v4  ;;  %v8886_v37 = vpop.f32.mrb[28].mxu1  ;;  %v7025_v19 = vpack.c.bf16 %v6972_v12, %v6971_v11  ;;  %v12574_v54 = vld [vmem:[#allocation44_spill] sm:$0xff]  ;;  %v12575_v24 = vld [vmem:[#allocation45_spill] sm:$0xff]  ;;  %v12576_v4 = vld [vmem:[#allocation46_spill] sm:$0xff] }
 0x559   : > { %v6914_v18 = vadd.f32 %v6882_v29, %v6834_v3  ;;  %v9012_v53 = vadd.f32 %v8886_v37, %v11876_v56  ;;  %v6718_v9 = vpop.f32.mrb[29].mxu1  ;;  %v6945_v38 = vmul.f32 0.1, %v6913_v23  ;;  %v12570_v56 = vld [vmem:[#allocation40_spill] sm:$0xff]  ;;  %v12577_v11 = vld [vmem:[#allocation47_spill] sm:$0xff]  ;;  %v12580_v3 = vld [vmem:[#allocation50_spill] sm:$0xff] }
 0x55a   : > { %v6912_v55 = vadd.f32 %v6880_v39, %v6832_v50  ;;  %v9013_v49 = vadd.f32 %v6718_v9, %v11880_v27  ;;  %v8887_v48 = vpop.f32.mrb[30].mxu1  ;;  %8924 = vmatprep.mubr.bf16.mxu0 %v7025_v19  ;;  %v6943_v52 = vmul.f32 0.1, %v6911_v58  ;;  %v6883_v33 = vunpack.c.l.bf16 %v12570_v56  ;;  %v12578_v12 = vld [vmem:[#allocation48_spill] sm:$0xff]  ;;  %v12581_v29 = vld [vmem:[#allocation51_spill] sm:$0xff]  ;;  %v12584_v50 = vld [vmem:[#allocation53_spill] sm:$0xff] }
 0x55b   : > { %v6800_v60 = vmul.f32 %v9012_v53, %v11936_v16  ;;  %v9014_v17 = vadd.f32 %v8887_v48, %v11882_v32  ;;  %v6721_v1 = vpop.f32.mrb[31].mxu1  ;;  %8925 = vmatmul.mubr.bf16.gmra.mrb[148].mxu0 %v7026_v61  ;;  %v6946_v42 = vmul.f32 0.1, %v6914_v18  ;;  %v6977_v20 = vmax.f32 %v6913_v23, %v6945_v38  ;;  %v12579_v23 = vld [vmem:[#allocation49_spill] sm:$0xff]  ;;  %v12582_v61 = vld [vmem:[#allocation52_spill] sm:$0xff]  ;;  %v12586_v37 = vld [vmem:[#allocation55_spill] sm:$0xff] }
 0x55c   : > { %v6798_v0 = vmul.f32 %v9013_v49, %v11936_v16  ;;  %v9015_v43 = vadd.f32 %v6721_v1, %v11884_v45  ;;  %v6944_v34 = vmul.f32 0.1, %v6912_v55  ;;  %v6975_v41 = vmax.f32 %v6911_v58, %v6943_v52  ;;  %v12583_v58 = vld [vmem:[#allocation54_spill] sm:$0xff]  ;;  %v12585_v39 = vld [vmem:[#allocation56_spill] sm:$0xff]  ;;  %v12091_v19 = vld [vmem:[%s12260_s9] ss:$0 sm:$0xff] }
 0x55d   : > { %v6837_v27 = vadd.f32 %v11942_v30, %v6800_v60  ;;  %v6801_v15 = vmul.f32 %v9014_v17, %v11936_v16  ;;  %v6978_v62 = vmax.f32 %v6914_v18, %v6946_v42  ;;  %v6884_v25 = vunpack.c.h.bf16 %v12570_v56  ;;  %v12097_v53 = vld [vmem:[%s12260_s9 + $0x1] ss:$0 sm:$0xff] }
 0x55e   : > { %v6835_v13 = vadd.f32 %v11942_v30, %v6798_v0  ;;  %v6799_v32 = vmul.f32 %v9015_v43, %v11936_v16  ;;  %v6976_v46 = vmax.f32 %v6912_v55, %v6944_v34 }
 0x55f   : > { %v6917_v7 = vadd.f32 %v6885_v6, %v6837_v27  ;;  %v6838_v5 = vadd.f32 %v11942_v30, %v6801_v15  ;;  %v7028_v2 = vpack.c.bf16 %v6978_v62, %v6977_v20 }
 0x560   : > { %v6915_v45 = vadd.f32 %v6883_v33, %v6835_v13  ;;  %v6836_v31 = vadd.f32 %v11942_v30, %v6799_v32  ;;  %v7027_v21 = vpack.c.bf16 %v6976_v46, %v6975_v41  ;;  %v12571_v30 = vld [vmem:[#allocation41_spill] sm:$0xff] }
 0x561   : > { %v6918_v35 = vadd.f32 %v6886_v40, %v6838_v5  ;;  %v6949_v47 = vmul.f32 0.1, %v6917_v7 }
 0x562   : > { %v6916_v22 = vadd.f32 %v6884_v25, %v6836_v31  ;;  %8928 = vmatprep.mubr.bf16.mxu0 %v7027_v21  ;;  %v6947_v63 = vmul.f32 0.1, %v6915_v45 }
 0x563   : > { %8929 = vmatmul.mubr.bf16.gmra.mrb[152].mxu0 %v7028_v2  ;;  %v6950_v16 = vmul.f32 0.1, %v6918_v35  ;;  %v6981_v8 = vmax.f32 %v6917_v7, %v6949_v47 }
 0x564   : > { %v6948_v57 = vmul.f32 0.1, %v6916_v22  ;;  %v6979_v26 = vmax.f32 %v6915_v45, %v6947_v63 }
 0x565   : > { %v6982_v36 = vmax.f32 %v6918_v35, %v6950_v16 }
 0x566   : > { %v6980_v14 = vmax.f32 %v6916_v22, %v6948_v57 }
 0x567   : > { %v7030_v28 = vpack.c.bf16 %v6982_v36, %v6981_v8 }
 0x568   : > { %v7029_v10 = vpack.c.bf16 %v6980_v14, %v6979_v26 }
 0x56a   : > { %8932 = vmatprep.mubr.bf16.mxu0 %v7029_v10 }
 0x56b   : > { %8933 = vmatmul.mubr.bf16.gmra.mrb[156].mxu0 %v7030_v28 }
 0x56c   : > { %8952 = vmatprep.mubr.bf16.mxu0 %v12571_v30 }
 0x573   : > { %8953 = vmatmul.mubr.bf16.vlgmr.msra.gmra.mrb[128].mxu0 %v12572_v51 }
 0x574   : > { %8956 = vmatprep.mubr.bf16.mxu0 %v12573_v44 }
 0x57b   : > { %8957 = vmatmul.mubr.bf16.gmra.mrb[132].mxu0 %v12574_v54 }
 0x57c   : > { %8960 = vmatprep.mubr.bf16.mxu0 %v12575_v24 }
 0x583   : > { %8961 = vmatmul.mubr.bf16.gmra.mrb[136].mxu0 %v12576_v4 }
 0x584   : > { %8964 = vmatprep.mubr.bf16.mxu0 %v12577_v11 }
 0x58b   : > { %8965 = vmatmul.mubr.bf16.gmra.mrb[140].mxu0 %v12578_v12 }
 0x58c   : > { %8968 = vmatprep.mubr.bf16.mxu0 %v12579_v23 }
 0x593   : > { %8969 = vmatmul.mubr.bf16.gmra.mrb[144].mxu0 %v12580_v3 }
 0x594   : > { %8972 = vmatprep.mubr.bf16.mxu0 %v12581_v29 }
 0x59b   : > { %8973 = vmatmul.mubr.bf16.gmra.mrb[148].mxu0 %v12582_v61 }
 0x59c   : > { %8976 = vmatprep.mubr.bf16.mxu0 %v12583_v58 }
 0x5a3   : > { %8977 = vmatmul.mubr.bf16.gmra.mrb[152].mxu0 %v12584_v50 }
 0x5a4   : > { %8980 = vmatprep.mubr.bf16.mxu0 %v12585_v39 }
 0x5ab   : > { %8981 = vmatmul.mubr.bf16.gmra.mrb[156].mxu0 %v12586_v37 }
 0x646   : > { %v8954_v18 = vpop.f32.mrb[128].mxu0 }
 0x647   : > { %v7472_v9 = vmul.f32 %v8954_v18, %v12091_v19  ;;  %v7338_v38 = vpop.f32.mrb[129].mxu0 }
 0x648   : > { %v7470_v55 = vmul.f32 %v12091_v19, %v7338_v38  ;;  %v8955_v49 = vpop.f32.mrb[130].mxu0 }
 0x649   : > { %v7509_v48 = vadd.f32 %v12097_v53, %v7472_v9  ;;  %v7473_v52 = vmul.f32 %v8955_v49, %v12091_v19  ;;  %v7341_v60 = vpop.f32.mrb[131].mxu0 }
 0x64a   : > { %v7507_v59 = vadd.f32 %v12097_v53, %v7470_v55  ;;  %v7471_v6 = vmul.f32 %v12091_v19, %v7341_v60 }
 0x64b   : > { %v7541_v17 = vmul.f32 0.1, %v7509_v48  ;;  %v7510_v1 = vadd.f32 %v12097_v53, %v7473_v52 }
 0x64c   : > { %v7539_v42 = vmul.f32 0.1, %v7507_v59  ;;  %v7508_v0 = vadd.f32 %v12097_v53, %v7471_v6 }
 0x64d   : > { %v7573_v56 = vmax.f32 %v7509_v48, %v7541_v17  ;;  %v7542_v33 = vmul.f32 0.1, %v7510_v1 }
 0x64e   : > { %v7571_v43 = vmax.f32 %v7507_v59, %v7539_v42  ;;  %v7540_v34 = vmul.f32 0.1, %v7508_v0  ;;  %v8958_v27 = vpop.f32.mrb[132].mxu0 }
 0x64f   : > { %7605 = vst [vmem:[%s12109_s29 + $0x10] sm:$0xff] %v7573_v56  ;;  %v7574_v15 = vmax.f32 %v7510_v1, %v7542_v33  ;;  %v7476_v20 = vmul.f32 %v8958_v27, %v12091_v19  ;;  %v7354_v62 = vpop.f32.mrb[133].mxu0 }
 0x650   : > { %7603 = vst [vmem:[%s12109_s29] sm:$0xff] %v7571_v43  ;;  %v7572_v13 = vmax.f32 %v7508_v0, %v7540_v34  ;;  %v7474_v32 = vmul.f32 %v12091_v19, %v7354_v62  ;;  %v8959_v41 = vpop.f32.mrb[134].mxu0 }
 0x651   : > { %7606 = vst [vmem:[%s12109_s29 + $0x18] sm:$0xff] %v7574_v15  ;;  %v7513_v46 = vadd.f32 %v12097_v53, %v7476_v20  ;;  %v7477_v7 = vmul.f32 %v8959_v41, %v12091_v19  ;;  %v7357_v5 = vpop.f32.mrb[135].mxu0 }
 0x652   : > { %7604 = vst [vmem:[%s12109_s29 + $0x8] sm:$0xff] %v7572_v13  ;;  %v7511_v40 = vadd.f32 %v12097_v53, %v7474_v32  ;;  %v7475_v2 = vmul.f32 %v12091_v19, %v7357_v5 }
 0x653   : > { %v7545_v45 = vmul.f32 0.1, %v7513_v46  ;;  %v7514_v31 = vadd.f32 %v12097_v53, %v7477_v7 }
 0x654   : > { %v7543_v25 = vmul.f32 0.1, %v7511_v40  ;;  %v7512_v21 = vadd.f32 %v12097_v53, %v7475_v2 }
 0x655   : > { %v7577_v35 = vmax.f32 %v7513_v46, %v7545_v45  ;;  %v7546_v47 = vmul.f32 0.1, %v7514_v31 }
 0x656   : > { %v7575_v22 = vmax.f32 %v7511_v40, %v7543_v25  ;;  %v7544_v63 = vmul.f32 0.1, %v7512_v21  ;;  %v8962_v16 = vpop.f32.mrb[136].mxu0 }
 0x657   : > { %7609 = vst [vmem:[%s12109_s29 + $0x30] sm:$0xff] %v7577_v35  ;;  %v7578_v57 = vmax.f32 %v7514_v31, %v7546_v47  ;;  %v7480_v8 = vmul.f32 %v8962_v16, %v12091_v19  ;;  %v7370_v36 = vpop.f32.mrb[137].mxu0 }
 0x658   : > { %7607 = vst [vmem:[%s12109_s29 + $0x20] sm:$0xff] %v7575_v22  ;;  %v7576_v26 = vmax.f32 %v7512_v21, %v7544_v63  ;;  %v7478_v14 = vmul.f32 %v12091_v19, %v7370_v36  ;;  %v8963_v28 = vpop.f32.mrb[138].mxu0 }
 0x659   : > { %7610 = vst [vmem:[%s12109_s29 + $0x38] sm:$0xff] %v7578_v57  ;;  %v7517_v10 = vadd.f32 %v12097_v53, %v7480_v8  ;;  %v7481_v30 = vmul.f32 %v8963_v28, %v12091_v19  ;;  %v7373_v51 = vpop.f32.mrb[139].mxu0 }
 0x65a   : > { %7608 = vst [vmem:[%s12109_s29 + $0x28] sm:$0xff] %v7576_v26  ;;  %v7515_v44 = vadd.f32 %v12097_v53, %v7478_v14  ;;  %v7479_v54 = vmul.f32 %v12091_v19, %v7373_v51 }
 0x65b   : > { %v7549_v24 = vmul.f32 0.1, %v7517_v10  ;;  %v7518_v4 = vadd.f32 %v12097_v53, %v7481_v30 }
 0x65c   : > { %v7547_v11 = vmul.f32 0.1, %v7515_v44  ;;  %v7516_v12 = vadd.f32 %v12097_v53, %v7479_v54 }
 0x65d   : > { %v7581_v23 = vmax.f32 %v7517_v10, %v7549_v24  ;;  %v7550_v3 = vmul.f32 0.1, %v7518_v4 }
 0x65e   : > { %v7579_v29 = vmax.f32 %v7515_v44, %v7547_v11  ;;  %v7548_v61 = vmul.f32 0.1, %v7516_v12  ;;  %v8966_v58 = vpop.f32.mrb[140].mxu0 }
 0x65f   : > { %7613 = vst [vmem:[%s12109_s29 + $0x50] sm:$0xff] %v7581_v23  ;;  %v7582_v50 = vmax.f32 %v7518_v4, %v7550_v3  ;;  %v7484_v39 = vmul.f32 %v8966_v58, %v12091_v19  ;;  %v7386_v37 = vpop.f32.mrb[141].mxu0 }
 0x660   : > { %7611 = vst [vmem:[%s12109_s29 + $0x40] sm:$0xff] %v7579_v29  ;;  %v7580_v18 = vmax.f32 %v7516_v12, %v7548_v61  ;;  %v7482_v9 = vmul.f32 %v12091_v19, %v7386_v37  ;;  %v8967_v38 = vpop.f32.mrb[142].mxu0 }
 0x661   : > { %7614 = vst [vmem:[%s12109_s29 + $0x58] sm:$0xff] %v7582_v50  ;;  %v7521_v55 = vadd.f32 %v12097_v53, %v7484_v39  ;;  %v7485_v49 = vmul.f32 %v8967_v38, %v12091_v19  ;;  %v7389_v48 = vpop.f32.mrb[143].mxu0 }
 0x662   : > { %7612 = vst [vmem:[%s12109_s29 + $0x48] sm:$0xff] %v7580_v18  ;;  %v7519_v52 = vadd.f32 %v12097_v53, %v7482_v9  ;;  %v7483_v60 = vmul.f32 %v12091_v19, %v7389_v48 }
 0x663   : > { %v7553_v59 = vmul.f32 0.1, %v7521_v55  ;;  %v7522_v6 = vadd.f32 %v12097_v53, %v7485_v49 }
 0x664   : > { %v7551_v17 = vmul.f32 0.1, %v7519_v52  ;;  %v7520_v1 = vadd.f32 %v12097_v53, %v7483_v60 }
 0x665   : > { %v7585_v42 = vmax.f32 %v7521_v55, %v7553_v59  ;;  %v7554_v0 = vmul.f32 0.1, %v7522_v6 }
 0x666   : > { %v7583_v56 = vmax.f32 %v7519_v52, %v7551_v17  ;;  %v7552_v33 = vmul.f32 0.1, %v7520_v1  ;;  %v8970_v43 = vpop.f32.mrb[144].mxu0 }
 0x667   : > { %7617 = vst [vmem:[%s12109_s29 + $0x70] sm:$0xff] %v7585_v42  ;;  %v7586_v34 = vmax.f32 %v7522_v6, %v7554_v0  ;;  %v7488_v27 = vmul.f32 %v8970_v43, %v12091_v19  ;;  %v7402_v15 = vpop.f32.mrb[145].mxu0 }
 0x668   : > { %7615 = vst [vmem:[%s12109_s29 + $0x60] sm:$0xff] %v7583_v56  ;;  %v7584_v20 = vmax.f32 %v7520_v1, %v7552_v33  ;;  %v7486_v62 = vmul.f32 %v12091_v19, %v7402_v15  ;;  %v8971_v13 = vpop.f32.mrb[146].mxu0 }
 0x669   : > { %7618 = vst [vmem:[%s12109_s29 + $0x78] sm:$0xff] %v7586_v34  ;;  %v7525_v32 = vadd.f32 %v12097_v53, %v7488_v27  ;;  %v7489_v41 = vmul.f32 %v8971_v13, %v12091_v19  ;;  %v7405_v46 = vpop.f32.mrb[147].mxu0 }
 0x66a   : > { %7616 = vst [vmem:[%s12109_s29 + $0x68] sm:$0xff] %v7584_v20  ;;  %v7523_v7 = vadd.f32 %v12097_v53, %v7486_v62  ;;  %v7487_v5 = vmul.f32 %v12091_v19, %v7405_v46 }
 0x66b   : > { %v7557_v40 = vmul.f32 0.1, %v7525_v32  ;;  %v7526_v2 = vadd.f32 %v12097_v53, %v7489_v41 }
 0x66c   : > { %v7555_v45 = vmul.f32 0.1, %v7523_v7  ;;  %v7524_v31 = vadd.f32 %v12097_v53, %v7487_v5 }
 0x66d   : > { %v7589_v25 = vmax.f32 %v7525_v32, %v7557_v40  ;;  %v7558_v21 = vmul.f32 0.1, %v7526_v2 }
 0x66e   : > { %v7587_v35 = vmax.f32 %v7523_v7, %v7555_v45  ;;  %v7556_v47 = vmul.f32 0.1, %v7524_v31  ;;  %v8974_v22 = vpop.f32.mrb[148].mxu0 }
 0x66f   : > { %7621 = vst [vmem:[%s12109_s29 + $0x90] sm:$0xff] %v7589_v25  ;;  %v7590_v63 = vmax.f32 %v7526_v2, %v7558_v21  ;;  %v7492_v16 = vmul.f32 %v8974_v22, %v12091_v19  ;;  %v7418_v57 = vpop.f32.mrb[149].mxu0 }
 0x670   : > { %7619 = vst [vmem:[%s12109_s29 + $0x80] sm:$0xff] %v7587_v35  ;;  %v7588_v8 = vmax.f32 %v7524_v31, %v7556_v47  ;;  %v7490_v36 = vmul.f32 %v12091_v19, %v7418_v57  ;;  %v8975_v26 = vpop.f32.mrb[150].mxu0 }
 0x671   : > { %7622 = vst [vmem:[%s12109_s29 + $0x98] sm:$0xff] %v7590_v63  ;;  %v7529_v14 = vadd.f32 %v12097_v53, %v7492_v16  ;;  %v7493_v28 = vmul.f32 %v8975_v26, %v12091_v19  ;;  %v7421_v10 = vpop.f32.mrb[151].mxu0 }
 0x672   : > { %7620 = vst [vmem:[%s12109_s29 + $0x88] sm:$0xff] %v7588_v8  ;;  %v7527_v30 = vadd.f32 %v12097_v53, %v7490_v36  ;;  %v7491_v51 = vmul.f32 %v12091_v19, %v7421_v10 }
 0x673   : > { %v7561_v44 = vmul.f32 0.1, %v7529_v14  ;;  %v7530_v54 = vadd.f32 %v12097_v53, %v7493_v28 }
 0x674   : > { %v7559_v24 = vmul.f32 0.1, %v7527_v30  ;;  %v7528_v4 = vadd.f32 %v12097_v53, %v7491_v51 }
 0x675   : > { %v7593_v11 = vmax.f32 %v7529_v14, %v7561_v44  ;;  %v7562_v12 = vmul.f32 0.1, %v7530_v54 }
 0x676   : > { %v7591_v23 = vmax.f32 %v7527_v30, %v7559_v24  ;;  %v7560_v3 = vmul.f32 0.1, %v7528_v4  ;;  %v8978_v29 = vpop.f32.mrb[152].mxu0 }
 0x677   : > { %7625 = vst [vmem:[%s12109_s29 + $0xb0] sm:$0xff] %v7593_v11  ;;  %v7594_v61 = vmax.f32 %v7530_v54, %v7562_v12  ;;  %v7496_v58 = vmul.f32 %v8978_v29, %v12091_v19  ;;  %v7434_v50 = vpop.f32.mrb[153].mxu0 }
 0x678   : > { %7623 = vst [vmem:[%s12109_s29 + $0xa0] sm:$0xff] %v7591_v23  ;;  %v7592_v39 = vmax.f32 %v7528_v4, %v7560_v3  ;;  %v7494_v37 = vmul.f32 %v12091_v19, %v7434_v50  ;;  %v8979_v18 = vpop.f32.mrb[154].mxu0 }
 0x679   : > { %7626 = vst [vmem:[%s12109_s29 + $0xb8] sm:$0xff] %v7594_v61  ;;  %v7533_v9 = vadd.f32 %v12097_v53, %v7496_v58  ;;  %v7497_v38 = vmul.f32 %v8979_v18, %v12091_v19  ;;  %v7437_v55 = vpop.f32.mrb[155].mxu0 }
 0x67a   : > { %7624 = vst [vmem:[%s12109_s29 + $0xa8] sm:$0xff] %v7592_v39  ;;  %v7531_v49 = vadd.f32 %v12097_v53, %v7494_v37  ;;  %v7495_v48 = vmul.f32 %v12091_v19, %v7437_v55 }
 0x67b   : > { %v7565_v52 = vmul.f32 0.1, %v7533_v9  ;;  %v7534_v60 = vadd.f32 %v12097_v53, %v7497_v38 }
 0x67c   : > { %v7563_v59 = vmul.f32 0.1, %v7531_v49  ;;  %v7532_v6 = vadd.f32 %v12097_v53, %v7495_v48 }
 0x67d   : > { %v7597_v17 = vmax.f32 %v7533_v9, %v7565_v52  ;;  %v7566_v1 = vmul.f32 0.1, %v7534_v60 }
 0x67e   : > { %v7595_v42 = vmax.f32 %v7531_v49, %v7563_v59  ;;  %v7564_v0 = vmul.f32 0.1, %v7532_v6  ;;  %v8982_v56 = vpop.f32.mrb[156].mxu0 }
 0x67f   : > { %7629 = vst [vmem:[%s12109_s29 + $0xd0] sm:$0xff] %v7597_v17  ;;  %v7598_v33 = vmax.f32 %v7534_v60, %v7566_v1  ;;  %v7500_v43 = vmul.f32 %v8982_v56, %v12091_v19  ;;  %v7450_v34 = vpop.f32.mrb[157].mxu0 }
 0x680   : > { %7627 = vst [vmem:[%s12109_s29 + $0xc0] sm:$0xff] %v7595_v42  ;;  %v7596_v27 = vmax.f32 %v7532_v6, %v7564_v0  ;;  %v7498_v15 = vmul.f32 %v12091_v19, %v7450_v34  ;;  %v8983_v20 = vpop.f32.mrb[158].mxu0 }
 0x681   : > { %7630 = vst [vmem:[%s12109_s29 + $0xd8] sm:$0xff] %v7598_v33  ;;  %v7537_v62 = vadd.f32 %v12097_v53, %v7500_v43  ;;  %v7501_v13 = vmul.f32 %v8983_v20, %v12091_v19  ;;  %v7453_v32 = vpop.f32.mrb[159].mxu0 }
 0x682   : > { %7628 = vst [vmem:[%s12109_s29 + $0xc8] sm:$0xff] %v7596_v27  ;;  %v7535_v41 = vadd.f32 %v12097_v53, %v7498_v15  ;;  %v7499_v46 = vmul.f32 %v12091_v19, %v7453_v32 }
 0x683   : > { %v7569_v7 = vmul.f32 0.1, %v7537_v62  ;;  %v7538_v5 = vadd.f32 %v12097_v53, %v7501_v13 }
 0x684   : > { %v7567_v40 = vmul.f32 0.1, %v7535_v41  ;;  %v7536_v2 = vadd.f32 %v12097_v53, %v7499_v46 }
 0x685   : > { %v7601_v45 = vmax.f32 %v7537_v62, %v7569_v7  ;;  %v7570_v31 = vmul.f32 0.1, %v7538_v5 }
 0x686   : > { %v7599_v25 = vmax.f32 %v7535_v41, %v7567_v40  ;;  %v7568_v21 = vmul.f32 0.1, %v7536_v2 }
 0x687   : > { %7633 = vst [vmem:[%s12109_s29 + $0xf0] sm:$0xff] %v7601_v45  ;;  %v7602_v35 = vmax.f32 %v7538_v5, %v7570_v31 }
 0x688   : > { %7631 = vst [vmem:[%s12109_s29 + $0xe0] sm:$0xff] %v7599_v25  ;;  %v7600_v19 = vmax.f32 %v7536_v2, %v7568_v21 }
 0x689   : > { %7634 = vst [vmem:[%s12109_s29 + $0xf8] sm:$0xff] %v7602_v35 }
 0x68a   : > { %7632 = vst [vmem:[%s12109_s29 + $0xe8] sm:$0xff] %v7600_v19 }
 0x68b   : > { %9621 = shalt.err (!%p9618_p0)
}
 0x68c   : > { %s9622_s12 = scalar_lea.hbm %s12201_s20, 4096  ;;  %s9626_s11 = scalar_lea.hbm %s12588_s28, 8192 }
 0x68d   : > { %p9623_p10 = scmp.ne.s32.totalorder %s12201_s20, %s9622_s12  ;;  %p9627_p4 = scmp.lt.u32.totalorder %s12201_s20, %s12588_s28 }
 0x68e   : > { %p9628_p12 = scmp.lt.u32.totalorder %s9626_s11, %s9622_s12  ;;  %p9630_p8 = scmp.lt.u32.totalorder %s9622_s12, %s12201_s20 }
 0x68f   : > { %p9624_p2 = pnand %p9623_p10, %p12589_p11 }
 0x690   : > { %p9629_p7 = por %p9628_p12, %p9627_p4 }
 0x691   : > { %p9625_p3 = pneg %p9624_p2 }
 0x692   : > { %p9631_p13 = por %p9630_p8, %p9629_p7 }
 0x694   : > { %p9632_p1 = pnand %p9631_p13, %p9625_p3 }
 0x696   : > { %9635 = shalt.err (!%p9632_p1)
}
 0x697   : > { %s9693_s13 = smov 128   ;;  %s9694_s14 = smov 8  }
 0x698   : > { %9288 = dma.vmem_to_hbm [thread:$0]  (%p12589_p11), %s12203_s24, 4096, %s12201_s20, %s12210_s21, %s9693_s13, %s9693_s13, %s9694_s14  }
 0x699 PF: > { %s12590_s26 = sld [smem:[#allocation20_spill]]  ;;  %s12591_s17 = sld [smem:[#allocation18_spill]] }
 0x69a   : > { %s12592_s25 = sld [smem:[#allocation23_spill]] }
 0x69f   : > { %p9315_p6 = scmp.ge.s32.totalorder %s12590_s26, 2  ;;  %s7664_s30 = sand.u32 1, %s12591_s17  }
 0x6a0   : > { %p12593_p9 = scmp.ne.s32.totalorder %s12592_s25, 0  ;;  %s7665_s16 = scalar_lea.sflag [#allocation7], %s7664_s30 }
 0x6a2   : > { %p9304_p5 = pnand %p9315_p6, %p12593_p9 }
 0x6a4   : > { %9665 = dma.done.wait (!%p9304_p5), %s7665_s16, 4096  }
 0x6a5   : > { %9667 = vsyncadd (!%p9304_p5), %s7665_s16, 4294963200  ;;  %s12594_s20 = sld [smem:[#allocation21_spill]]  ;;  %s12595_s19 = sld [smem:[#allocation19_spill]] }
 0x6a6   : > { %s12596_s12 = sld [smem:[#allocation22_spill]]  ;;  %s12597_s17 = smov %s9674_s18 }
 0x6ab   : > { %p24_p0 = scmp.ge.s32.totalorder %s12594_s20, 4   ;;  %s12598_s18 = smov %s12595_s19 }
 0x6ac   : > { %s12599_s19 = smov %s12596_s12 }
 0x6ad   :  { %26 = sbr.rel (!%p24_p0) target bundleno = 8 (0x8), region = 125 }
 0x6b4   :  { %7670 = vsyncpa [#allocation6], 1 }
 0x6b5   :  { %7672 = vsyncpa [#allocation6 + $0x1], 1 }
 0x6b6   :  { %7673 = vsyncpa [#allocation9], 1 }
 0x6b7   :  { %7674 = vsyncpa [#allocation12], 1 }
 0x6b8   :  { %7675 = vsyncpa [#allocation7], 1 }
 0x6b9   :  { %7677 = vsyncpa [#allocation7 + $0x1], 1 }

</bundles_post_ra>
